<compile_context>
chip_gen: v7x
topology: tpu7x:2x2x1
jax: 0.10.0
libtpu: 0.0.40
codegen_flags: <defaults>
</compile_context>

<pallas_src>
import jax
import jax.numpy as jnp
from jax import lax
from jax.experimental import pallas as pl
from jax.experimental.pallas import tpu as pltpu


def _cross_attention_kernel(
    x_ref,        # (1, C, N)   full spatial extent (K/V source + residual base)
    xq_ref,       # (1, C, TQ)  query tile of x
    wq_ref,       # (2*C8, C)   fused [W_qA ; W_qB]
    bq_ref,       # (2*C8, 1)
    wkv_ref,      # (2*C8 + 2*C, C) fused [W_kA ; W_kB ; W_vA ; W_vB]
    bkv_ref,      # (2*C8 + 2*C, 1)
    gA_ref,       # (1, 1) SMEM
    gB_ref,       # (1, 1) SMEM
    out1_ref,     # (1, C, TQ)
    out2_ref,     # (1, C, TQ)
):
    f32 = jnp.float32
    C = x_ref.shape[1]
    C8 = wq_ref.shape[0] // 2

    x_full = x_ref[0].astype(f32)          # (C, N)   N on lanes (lane-dense)
    x_t = xq_ref[0].astype(f32)            # (C, TQ)

    # Fused K/V projection over the full spatial axis: (2C8+2C, C) @ (C, N).
    kv = (jnp.dot(wkv_ref[...].astype(f32), x_full,
                  preferred_element_type=f32)
          + bkv_ref[...].astype(f32))                       # (2C8+2C, N)
    # Fused Q projection restricted to this query tile: (2C8, C) @ (C, TQ).
    q = (jnp.dot(wq_ref[...].astype(f32), x_t,
                 preferred_element_type=f32)
         + bq_ref[...].astype(f32))                          # (2C8, TQ)

    qA_t = q[:C8]                          # (C8, TQ)
    qB_t = q[C8:]                          # (C8, TQ)
    kA = kv[:C8]                           # (C8, N)
    kB = kv[C8:2 * C8]                     # (C8, N)
    vA = kv[2 * C8:2 * C8 + C]             # (C,  N)
    vB = kv[2 * C8 + C:]                   # (C,  N)

    gA = gA_ref[0, 0]
    gB = gB_ref[0, 0]

    def attend(q_t, k, v):
        # s[n, m] = sum_c q_t[c, n] * k[c, m]  -> (TQ, N); contract dim 0 of
        # both operands directly (no .T / XLU transpose before the MXU).
        s = lax.dot_general(q_t, k, (((0,), (0,)), ((), ())),
                            preferred_element_type=f32)
        m = jnp.max(s, axis=-1, keepdims=True)
        e = jnp.exp(s - m)
        inv = pl.reciprocal(jnp.sum(e, axis=-1, keepdims=True), approx=False)
        p = (e * inv).astype(jnp.bfloat16)                   # (TQ, N)
        # f[c, n] = sum_m v[c, m] * p[n, m]  -> (C, TQ); bf16 MXU, f32 acc.
        return lax.dot_general(v.astype(jnp.bfloat16), p,
                               (((1,), (1,)), ((), ())),
                               preferred_element_type=f32)   # (C, TQ)

    # Chain B first and fully retired before chain A starts (halves the peak
    # live (TQ, N) probability footprint).
    f_B = attend(qB_t, kA, vA)
    out2_ref[0] = (gB * f_B + x_t).astype(out2_ref.dtype)    # out_task2

    f_A = attend(qA_t, kB, vB)
    out1_ref[0] = (gA * f_A + x_t).astype(out1_ref.dtype)    # out_task1


def cross_attention_pallas(x_ncdhw, params):
    B, C, D, H, W = x_ncdhw.shape
    N = D * H * W
    C8 = C // 8

    # (B, C, D, H, W) -> (B, C, N): pure reshape, no transpose (C, N layout).
    x_flat = x_ncdhw.reshape(B, C, N)

    # Query tile: 256-aligned tiles feed the v6e/v7x 256x256 MXU; 128 still
    # saturates v5e.  Fall back to the full extent for odd small N.
    if N % 256 == 0:
        tq = 256
    elif N % 128 == 0:
        tq = 128
    else:
        tq = N
    n_q_tiles = N // tq

    # Fused projection weights/biases, conv layout (C_out, C_in).
    w_q = jnp.concatenate([params["wqA"], params["wqB"]], axis=0)     # (2C8, C)
    b_q = jnp.concatenate([params["bqA"], params["bqB"]]).reshape(-1, 1)
    w_kv = jnp.concatenate(
        [params["wkA"], params["wkB"], params["wvA"], params["wvB"]], axis=0)
    b_kv = jnp.concatenate(
        [params["bkA"], params["bkB"], params["bvA"], params["bvB"]]
    ).reshape(-1, 1)

    in_specs = [
        pl.BlockSpec((1, C, N), lambda b, q: (b, 0, 0)),      # x (full, K/V)
        pl.BlockSpec((1, C, tq), lambda b, q: (b, 0, q)),     # x query tile
        pl.BlockSpec((2 * C8, C), lambda b, q: (0, 0)),       # fused W_q
        pl.BlockSpec((2 * C8, 1), lambda b, q: (0, 0)),       # fused b_q
        pl.BlockSpec((2 * C8 + 2 * C, C), lambda b, q: (0, 0)),  # fused W_kv
        pl.BlockSpec((2 * C8 + 2 * C, 1), lambda b, q: (0, 0)),  # fused b_kv
        pl.BlockSpec(memory_space=pltpu.SMEM),                # gamma_A
        pl.BlockSpec(memory_space=pltpu.SMEM),                # gamma_B
    ]
    out_specs = [
        pl.BlockSpec((1, C, tq), lambda b, q: (b, 0, q)),
        pl.BlockSpec((1, C, tq), lambda b, q: (b, 0, q)),
    ]
    out_shape = (
        jax.ShapeDtypeStruct((B, C, N), jnp.float32),
        jax.ShapeDtypeStruct((B, C, N), jnp.float32),
    )

    out1_flat, out2_flat = pl.pallas_call(
        _cross_attention_kernel,
        grid=(B, n_q_tiles),
        in_specs=in_specs,
        out_specs=out_specs,
        out_shape=out_shape,
        compiler_params=pltpu.CompilerParams(
            dimension_semantics=("parallel", "parallel"),
            vmem_limit_bytes=48 * 1024 * 1024,   # fits v7x's 64 MiB physical
        ),
    )(
        x_flat, x_flat,
        w_q, b_q, w_kv, b_kv,
        params["gA"], params["gB"],
    )

    # (B, C, N) -> (B, C, D, H, W): reshape only.
    return (out1_flat.reshape(B, C, D, H, W),
            out2_flat.reshape(B, C, D, H, W))


def cross_attention_reference(x, p):
    """Plain-JAX mirror of the PyTorch forward (for validation)."""
    B, C, D, H, W = x.shape
    N = D * H * W
    xf = x.reshape(B, C, N)

    def conv1(w, b):  # w: (C_out, C_in), b: (C_out,) -> (B, C_out, N)
        return jnp.einsum('oc,bcn->bon', w, xf) + b.reshape(1, -1, 1)

    QA = jnp.transpose(conv1(p["wqA"], p["bqA"]), (0, 2, 1))   # (B, N, C8)
    KA = conv1(p["wkA"], p["bkA"])                             # (B, C8, N)
    VA = conv1(p["wvA"], p["bvA"])                             # (B, C,  N)
    QB = jnp.transpose(conv1(p["wqB"], p["bqB"]), (0, 2, 1))
    KB = conv1(p["wkB"], p["bkB"])
    VB = conv1(p["wvB"], p["bvB"])

    attn_BA = jax.nn.softmax(jnp.einsum('bnc,bcm->bnm', QB, KA), axis=-1)
    F_B = jnp.einsum('bcm,bnm->bcn', VA, attn_BA).reshape(B, C, D, H, W)
    attn_AB = jax.nn.softmax(jnp.einsum('bnc,bcm->bnm', QA, KB), axis=-1)
    F_A = jnp.einsum('bcm,bnm->bcn', VB, attn_AB).reshape(B, C, D, H, W)

    out1 = p["gA"][0, 0] * F_A + x
    out2 = p["gB"][0, 0] * F_B + x
    return out1, out2


def init_params(key, C):
    C8 = C // 8
    ks = jax.random.split(key, 12)
    scale = 0.1

    def w(k, shape):
        return (scale * jax.random.normal(k, shape)).astype(jnp.float32)

    return {
        # Conv3d(kernel=1) weights in (C_out, C_in) layout, biases (C_out,).
        "wqA": w(ks[0], (C8, C)), "bqA": w(ks[1], (C8,)),
        "wkA": w(ks[2], (C8, C)), "bkA": w(ks[3], (C8,)),
        "wvA": w(ks[4], (C, C)),  "bvA": w(ks[5], (C,)),
        "wqB": w(ks[6], (C8, C)), "bqB": w(ks[7], (C8,)),
        "wkB": w(ks[8], (C8, C)), "bkB": w(ks[9], (C8,)),
        "wvB": w(ks[10], (C, C)), "bvB": w(ks[11], (C,)),
        # nn.Parameter(torch.zeros(1)) in the module; set nonzero here so the
        # attention path is actually exercised.
        "gA": jnp.full((1, 1), 0.3, dtype=jnp.float32),
        "gB": jnp.full((1, 1), -0.7, dtype=jnp.float32),
    }


if __name__ == "__main__":
    # C//8 = 2, N = D*H*W = 512 -> TQ = 256, grid = (2, 2): exercises both
    # the batch axis and the query-tile axis.
    B, C, D, H, W = 2, 16, 8, 8, 8
    key = jax.random.PRNGKey(0)
    kx, kp = jax.random.split(key)
    x = jax.random.normal(kx, (B, C, D, H, W), dtype=jnp.float32)
    params = init_params(kp, C)

    out1, out2 = cross_attention_pallas(x, params)
    out1, out2 = jax.block_until_ready((out1, out2))

    ref1, ref2 = cross_attention_reference(x, params)
    assert out1.shape == (B, C, D, H, W) and out2.shape == (B, C, D, H, W)
    # Tolerance covers the bf16 prob@V MXU matmul (f32 softmax + accumulation).
    assert jnp.allclose(out1, ref1, rtol=2e-3, atol=2e-3), "out_task1 mismatch"
    assert jnp.allclose(out2, ref2, rtol=2e-3, atol=2e-3), "out_task2 mismatch"

    print("KERNEL_OK")
</pallas_src>

<mosaic_0001>
module attributes {stable_mosaic.version = 11 : i64} {
  func.func @_cross_attention_kernel(%arg0: i32, %arg1: i32, %arg2: memref<1x16x512xf32, #tpu.memory_space<vmem>>, %arg3: memref<1x16x256xf32, #tpu.memory_space<vmem>>, %arg4: memref<4x16xf32, #tpu.memory_space<vmem>>, %arg5: memref<4x1xf32, #tpu.memory_space<vmem>>, %arg6: memref<36x16xf32, #tpu.memory_space<vmem>>, %arg7: memref<36x1xf32, #tpu.memory_space<vmem>>, %arg8: memref<1x1xf32, #tpu.memory_space<smem>>, %arg9: memref<1x1xf32, #tpu.memory_space<smem>>, %arg10: memref<1x16x256xf32, #tpu.memory_space<vmem>>, %arg11: memref<1x16x256xf32, #tpu.memory_space<vmem>>) attributes {dimension_semantics = [#tpu.dimension_semantics<parallel>, #tpu.dimension_semantics<parallel>], iteration_bounds = array<i64: 2, 2>, scalar_prefetch = 0 : i64, scratch_operands = 0 : i64, tpu.core_type = #tpu.core_type<tc>, window_params = [{transform_indices = @transform_0, window_bounds = array<i64: 1, 16, 512>}, {transform_indices = @transform_1, window_bounds = array<i64: 1, 16, 256>}, {pipeline_mode = #tpu.pipeline_mode<synchronous>, transform_indices = @transform_2, window_bounds = array<i64: 4, 16>}, {pipeline_mode = #tpu.pipeline_mode<synchronous>, transform_indices = @transform_3, window_bounds = array<i64: 4, 1>}, {pipeline_mode = #tpu.pipeline_mode<synchronous>, transform_indices = @transform_4, window_bounds = array<i64: 36, 16>}, {pipeline_mode = #tpu.pipeline_mode<synchronous>, transform_indices = @transform_5, window_bounds = array<i64: 36, 1>}, {transform_indices = @transform_6, window_bounds = array<i64: 1, 1>}, {transform_indices = @transform_7, window_bounds = array<i64: 1, 1>}, {transform_indices = @transform_8, window_bounds = array<i64: 1, 16, 256>}, {transform_indices = @transform_9, window_bounds = array<i64: 1, 16, 256>}]} {
    %c0 = arith.constant 0 : index
    %c0_0 = arith.constant 0 : index
    %c0_1 = arith.constant 0 : index
    %0 = vector.load %arg2[%c0, %c0_0, %c0_1] : memref<1x16x512xf32, #tpu.memory_space<vmem>>, vector<1x16x512xf32>
    %1 = vector.shape_cast %0 : vector<1x16x512xf32> to vector<16x512xf32>
    %c0_2 = arith.constant 0 : index
    %c0_3 = arith.constant 0 : index
    %c0_4 = arith.constant 0 : index
    %2 = vector.load %arg3[%c0_2, %c0_3, %c0_4] : memref<1x16x256xf32, #tpu.memory_space<vmem>>, vector<1x16x256xf32>
    %3 = vector.shape_cast %2 : vector<1x16x256xf32> to vector<16x256xf32>
    %c0_5 = arith.constant 0 : index
    %c0_6 = arith.constant 0 : index
    %4 = vector.load %arg6[%c0_5, %c0_6] : memref<36x16xf32, #tpu.memory_space<vmem>>, vector<36x16xf32>
    %cst = arith.constant dense<0.000000e+00> : vector<36x512xf32>
    %5 = tpu.matmul %4, %1, %cst {dimension_numbers = #tpu.dot_dimension_numbers<[1], [0], [0], [1], [0, 0, 1, 1], [], []>} : vector<36x16xf32>, vector<16x512xf32>, vector<36x512xf32> -> vector<36x512xf32>
    %c0_7 = arith.constant 0 : index
    %c0_8 = arith.constant 0 : index
    %6 = vector.load %arg7[%c0_7, %c0_8] : memref<36x1xf32, #tpu.memory_space<vmem>>, vector<36x1xf32>
    %7 = vector.broadcast %6 : vector<36x1xf32> to vector<36x512xf32>
    %8 = arith.addf %5, %7 : vector<36x512xf32>
    %c0_9 = arith.constant 0 : index
    %c0_10 = arith.constant 0 : index
    %9 = vector.load %arg4[%c0_9, %c0_10] : memref<4x16xf32, #tpu.memory_space<vmem>>, vector<4x16xf32>
    %cst_11 = arith.constant dense<0.000000e+00> : vector<4x256xf32>
    %10 = tpu.matmul %9, %3, %cst_11 {dimension_numbers = #tpu.dot_dimension_numbers<[1], [0], [0], [1], [0, 0, 1, 1], [], []>} : vector<4x16xf32>, vector<16x256xf32>, vector<4x256xf32> -> vector<4x256xf32>
    %c0_12 = arith.constant 0 : index
    %c0_13 = arith.constant 0 : index
    %11 = vector.load %arg5[%c0_12, %c0_13] : memref<4x1xf32, #tpu.memory_space<vmem>>, vector<4x1xf32>
    %12 = vector.broadcast %11 : vector<4x1xf32> to vector<4x256xf32>
    %13 = arith.addf %10, %12 : vector<4x256xf32>
    %14 = vector.extract_strided_slice %13 {offsets = [0, 0], sizes = [2, 256], strides = [1, 1]} : vector<4x256xf32> to vector<2x256xf32>
    %15 = vector.extract_strided_slice %13 {offsets = [2, 0], sizes = [2, 256], strides = [1, 1]} : vector<4x256xf32> to vector<2x256xf32>
    %16 = vector.extract_strided_slice %8 {offsets = [0, 0], sizes = [2, 512], strides = [1, 1]} : vector<36x512xf32> to vector<2x512xf32>
    %17 = vector.extract_strided_slice %8 {offsets = [2, 0], sizes = [2, 512], strides = [1, 1]} : vector<36x512xf32> to vector<2x512xf32>
    %18 = vector.extract_strided_slice %8 {offsets = [4, 0], sizes = [16, 512], strides = [1, 1]} : vector<36x512xf32> to vector<16x512xf32>
    %19 = vector.extract_strided_slice %8 {offsets = [20, 0], sizes = [16, 512], strides = [1, 1]} : vector<36x512xf32> to vector<16x512xf32>
    %c0_14 = arith.constant 0 : index
    %c0_15 = arith.constant 0 : index
    %20 = memref.load %arg8[%c0_14, %c0_15] : memref<1x1xf32, #tpu.memory_space<smem>>
    %c0_16 = arith.constant 0 : index
    %c0_17 = arith.constant 0 : index
    %21 = memref.load %arg9[%c0_16, %c0_17] : memref<1x1xf32, #tpu.memory_space<smem>>
    %cst_18 = arith.constant dense<0.000000e+00> : vector<256x512xf32>
    %22 = tpu.matmul %15, %16, %cst_18 {dimension_numbers = #tpu.dot_dimension_numbers<[0], [0], [1], [1], [0, 1, 1, 1], [], []>} : vector<2x256xf32>, vector<2x512xf32>, vector<256x512xf32> -> vector<256x512xf32>
    %cst_19 = arith.constant dense<0xFF800000> : vector<256xf32>
    %23 = vector.multi_reduction <maximumf>, %22, %cst_19 [1] : vector<256x512xf32> to vector<256xf32>
    %24 = vector.shape_cast %23 : vector<256xf32> to vector<256x1xf32>
    %25 = vector.broadcast %24 : vector<256x1xf32> to vector<256x512xf32>
    %26 = arith.subf %22, %25 : vector<256x512xf32>
    %27 = math.exp %26 : vector<256x512xf32>
    %cst_20 = arith.constant dense<0.000000e+00> : vector<256xf32>
    %28 = vector.multi_reduction <add>, %27, %cst_20 [1] : vector<256x512xf32> to vector<256xf32>
    %29 = vector.shape_cast %28 : vector<256xf32> to vector<256x1xf32>
    %30 = tpu.reciprocal %29 : vector<256x1xf32> -> vector<256x1xf32>
    %31 = vector.broadcast %30 : vector<256x1xf32> to vector<256x512xf32>
    %32 = arith.mulf %27, %31 : vector<256x512xf32>
    %33 = arith.truncf %32 : vector<256x512xf32> to vector<256x512xbf16>
    %34 = arith.truncf %18 : vector<16x512xf32> to vector<16x512xbf16>
    %cst_21 = arith.constant dense<0.000000e+00> : vector<16x256xf32>
    %35 = tpu.matmul %34, %33, %cst_21 {dimension_numbers = #tpu.dot_dimension_numbers<[1], [1], [0], [0], [0, 0, 1, 0], [], []>} : vector<16x512xbf16>, vector<256x512xbf16>, vector<16x256xf32> -> vector<16x256xf32>
    %36 = vector.broadcast %21 : f32 to vector<16x256xf32>
    %37 = arith.mulf %36, %35 : vector<16x256xf32>
    %38 = arith.addf %37, %3 : vector<16x256xf32>
    %c0_22 = arith.constant 0 : index
    %c0_23 = arith.constant 0 : index
    %c0_24 = arith.constant 0 : index
    %39 = vector.load %arg11[%c0_22, %c0_23, %c0_24] : memref<1x16x256xf32, #tpu.memory_space<vmem>>, vector<1x16x256xf32>
    %40 = vector.shape_cast %39 : vector<1x16x256xf32> to vector<16x256xf32>
    %41 = vector.shape_cast %38 : vector<16x256xf32> to vector<1x16x256xf32>
    tpu.vector_store %arg11[%c0_22, %c0_23, %c0_24], %41 {strides = array<i32>} : memref<1x16x256xf32, #tpu.memory_space<vmem>>, vector<1x16x256xf32>,
    %cst_25 = arith.constant dense<0.000000e+00> : vector<256x512xf32>
    %42 = tpu.matmul %14, %17, %cst_25 {dimension_numbers = #tpu.dot_dimension_numbers<[0], [0], [1], [1], [0, 1, 1, 1], [], []>} : vector<2x256xf32>, vector<2x512xf32>, vector<256x512xf32> -> vector<256x512xf32>
    %cst_26 = arith.constant dense<0xFF800000> : vector<256xf32>
    %43 = vector.multi_reduction <maximumf>, %42, %cst_26 [1] : vector<256x512xf32> to vector<256xf32>
    %44 = vector.shape_cast %43 : vector<256xf32> to vector<256x1xf32>
    %45 = vector.broadcast %44 : vector<256x1xf32> to vector<256x512xf32>
    %46 = arith.subf %42, %45 : vector<256x512xf32>
    %47 = math.exp %46 : vector<256x512xf32>
    %cst_27 = arith.constant dense<0.000000e+00> : vector<256xf32>
    %48 = vector.multi_reduction <add>, %47, %cst_27 [1] : vector<256x512xf32> to vector<256xf32>
    %49 = vector.shape_cast %48 : vector<256xf32> to vector<256x1xf32>
    %50 = tpu.reciprocal %49 : vector<256x1xf32> -> vector<256x1xf32>
    %51 = vector.broadcast %50 : vector<256x1xf32> to vector<256x512xf32>
    %52 = arith.mulf %47, %51 : vector<256x512xf32>
    %53 = arith.truncf %52 : vector<256x512xf32> to vector<256x512xbf16>
    %54 = arith.truncf %19 : vector<16x512xf32> to vector<16x512xbf16>
    %cst_28 = arith.constant dense<0.000000e+00> : vector<16x256xf32>
    %55 = tpu.matmul %54, %53, %cst_28 {dimension_numbers = #tpu.dot_dimension_numbers<[1], [1], [0], [0], [0, 0, 1, 0], [], []>} : vector<16x512xbf16>, vector<256x512xbf16>, vector<16x256xf32> -> vector<16x256xf32>
    %56 = vector.broadcast %20 : f32 to vector<16x256xf32>
    %57 = arith.mulf %56, %55 : vector<16x256xf32>
    %58 = arith.addf %57, %3 : vector<16x256xf32>
    %c0_29 = arith.constant 0 : index
    %c0_30 = arith.constant 0 : index
    %c0_31 = arith.constant 0 : index
    %59 = vector.load %arg10[%c0_29, %c0_30, %c0_31] : memref<1x16x256xf32, #tpu.memory_space<vmem>>, vector<1x16x256xf32>
    %60 = vector.shape_cast %59 : vector<1x16x256xf32> to vector<16x256xf32>
    %61 = vector.shape_cast %58 : vector<16x256xf32> to vector<1x16x256xf32>
    tpu.vector_store %arg10[%c0_29, %c0_30, %c0_31], %61 {strides = array<i32>} : memref<1x16x256xf32, #tpu.memory_space<vmem>>, vector<1x16x256xf32>,
    return
  }
  func.func @transform_0(%arg0: i32, %arg1: i32) -> (i32, i32, i32) {
    %c0_i32 = arith.constant 0 : i32
    %c0_i32_0 = arith.constant 0 : i32
    %c0_i32_1 = arith.constant 0 : i32
    return %arg0, %c0_i32, %c0_i32_0 : i32, i32, i32
  }
  func.func @transform_1(%arg0: i32, %arg1: i32) -> (i32, i32, i32) {
    %c0_i32 = arith.constant 0 : i32
    %c0_i32_0 = arith.constant 0 : i32
    return %arg0, %c0_i32, %arg1 : i32, i32, i32
  }
  func.func @transform_2(%arg0: i32, %arg1: i32) -> (i32, i32) {
    %c0_i32 = arith.constant 0 : i32
    %c0_i32_0 = arith.constant 0 : i32
    %c0_i32_1 = arith.constant 0 : i32
    return %c0_i32, %c0_i32_0 : i32, i32
  }
  func.func @transform_3(%arg0: i32, %arg1: i32) -> (i32, i32) {
    %c0_i32 = arith.constant 0 : i32
    %c0_i32_0 = arith.constant 0 : i32
    %c0_i32_1 = arith.constant 0 : i32
    return %c0_i32, %c0_i32_0 : i32, i32
  }
  func.func @transform_4(%arg0: i32, %arg1: i32) -> (i32, i32) {
    %c0_i32 = arith.constant 0 : i32
    %c0_i32_0 = arith.constant 0 : i32
    %c0_i32_1 = arith.constant 0 : i32
    return %c0_i32, %c0_i32_0 : i32, i32
  }
  func.func @transform_5(%arg0: i32, %arg1: i32) -> (i32, i32) {
    %c0_i32 = arith.constant 0 : i32
    %c0_i32_0 = arith.constant 0 : i32
    %c0_i32_1 = arith.constant 0 : i32
    return %c0_i32, %c0_i32_0 : i32, i32
  }
  func.func @transform_6(%arg0: i32, %arg1: i32) -> (i32, i32) {
    %c0_i32 = arith.constant 0 : i32
    %c0_i32_0 = arith.constant 0 : i32
    %c0_i32_1 = arith.constant 0 : i32
    return %c0_i32, %c0_i32_0 : i32, i32
  }
  func.func @transform_7(%arg0: i32, %arg1: i32) -> (i32, i32) {
    %c0_i32 = arith.constant 0 : i32
    %c0_i32_0 = arith.constant 0 : i32
    %c0_i32_1 = arith.constant 0 : i32
    return %c0_i32, %c0_i32_0 : i32, i32
  }
  func.func @transform_8(%arg0: i32, %arg1: i32) -> (i32, i32, i32) {
    %c0_i32 = arith.constant 0 : i32
    %c0_i32_0 = arith.constant 0 : i32
    return %arg0, %c0_i32, %arg1 : i32, i32, i32
  }
  func.func @transform_9(%arg0: i32, %arg1: i32) -> (i32, i32, i32) {
    %c0_i32 = arith.constant 0 : i32
    %c0_i32_0 = arith.constant 0 : i32
    return %arg0, %c0_i32, %arg1 : i32, i32, i32
  }
}

</mosaic_0001>

<bundles_post_ra>
// kernel: tpu_custom_call.1
= control target key start
LH: loop header
LB: loop body
LE: loop exit
PB: predicated region body
PF: predicated region fallthrough
CT: control target
= control target key end

     0   :  { %s9140_s0 = inlined_call_operand.hbm [shape: f32[2,16,512], index: 0, kind: input, shape index: {}]   ;;  %s9141_s1 = inlined_call_operand.hbm [shape: f32[2,16,512], index: 1, kind: input, shape index: {}]   ;;  %s9142_s2 = inlined_call_operand.vmem [shape: f32[4,16], index: 2, kind: input, shape index: {}]   ;;  %s9143_s3 = inlined_call_operand.vmem [shape: f32[4,1], index: 3, kind: input, shape index: {}]   ;;  %s9144_s4 = inlined_call_operand.vmem [shape: f32[36,16], index: 4, kind: input, shape index: {}]   ;;  %s9145_s5 = inlined_call_operand.vmem [shape: f32[36,1], index: 5, kind: input, shape index: {}]   ;;  %s9146_s6 = inlined_call_operand.<no memory space> [shape: f32[1,1], index: 6, kind: input, shape index: {}]   ;;  %s9147_s7 = inlined_call_operand.<no memory space> [shape: f32[1,1], index: 7, kind: input, shape index: {}]   ;;  %s9148_s8 = inlined_call_operand.hbm [shape: f32[2,16,512], index: 8, kind: output, shape index: {0}]   ;;  %s9149_s9 = inlined_call_operand.hbm [shape: f32[2,16,512], index: 9, kind: output, shape index: {1}]  }
   0x1   :  { %9535 = sst [smem:[#allocation126_spill]] %s9140_s0 }
   0x2   :  { %9536 = sst [smem:[#allocation127_spill]] %s9142_s2 }
   0x3   :  { %9537 = sst [smem:[#allocation128_spill]] %s9143_s3 }
   0x4   :  { %9538 = sst [smem:[#allocation129_spill]] %s9145_s5 }
   0x5   :  { %9539 = sst [smem:[#allocation130_spill]] %s9148_s8 }
   0x6   :  { %9540 = sst [smem:[#allocation131_spill]] %s9149_s9 }
   0x7   :  { %15 = sst [smem:[#allocation2]] %s9146_s6 }
   0x8   :  { %16 = sst [smem:[#allocation3]] %s9147_s7 }
   0x9   :  { %17 = vsyncpa [#allocation5], 0 }
   0xa   :  { %19 = vsyncpa [#allocation5 + $0x1], 0 }
   0xb   :  { %20 = vsyncpa [#allocation8], 0 }
   0xc   :  { %22 = vsyncpa [#allocation8 + $0x1], 0 }
   0xd   :  { %23 = vsyncpa [#allocation6], 0 }
   0xe   :  { %25 = vsyncpa [#allocation6 + $0x1], 0 }
   0xf   :  { %26 = vsyncpa [#allocation11], 0 }
  0x10   :  { %28 = vsyncpa [#allocation11 + $0x1], 0  ;;  %s5703_s13 = smov 0   ;;  %s5705_s14 = smov 0  }
  0x11   :  { %s5707_s15 = smov 0   ;;  %s5709_s16 = smov 0  }
  0x12   :  { %s5711_s6 = smov 0   ;;  %s5713_s17 = smov 0  }
  0x13   :  { %s5715_s7 = smov 0   ;;  %s5717_s18 = smov 0  }
  0x14   :  { %s5719_s19 = smov 0   ;;  %s5721_s20 = smov 0  }
  0x15   :  { %s5723_s21 = smov 0  }
  0x16 LB: > { %9541 = sst [smem:[#allocation16_spill]] %s5592_s13  ;;  %s9150_s22 = sadd.s32 4294967295, %s5632_s21   ;;  %s5632_s21 = sphi %s5723_s21, %s34_s21   ;;  %s5628_s20 = sphi %s5721_s20, %s10404_s20   ;;  %s5624_s19 = sphi %s5719_s19, %s10403_s19   ;;  %s5620_s18 = sphi %s5717_s18, %s10402_s18   ;;  %s5616_s7 = sphi %s5715_s7, %s10401_s7   ;;  %s5612_s17 = sphi %s5713_s17, %s10400_s17   ;;  %s5608_s6 = sphi %s5711_s6, %s10399_s6   ;;  %s5604_s16 = sphi %s5709_s16, %s10398_s16   ;;  %s5600_s15 = sphi %s5707_s15, %s10397_s15   ;;  %s5596_s14 = sphi %s5705_s14, %s10396_s14   ;;  %s5592_s13 = sphi %s5703_s13, %s10395_s13  }
  0x17   : > { %9542 = sst [smem:[#allocation17_spill]] %s5616_s7  ;;  %p60_p0 = scmp.ne.s32.totalorder %s5612_s17, %s5608_s6 }
  0x18   : > { %9543 = sst [smem:[#allocation18_spill]] %s5620_s18  ;;  %p9152_p1 = scmp.eq.s32.totalorder %s5632_s21, 0 }
  0x19   : > { %p66_p2 = scmp.ne.s32.totalorder %s5608_s6, %s5604_s16  ;;  %p5765_p3 = scmp.eq.s32.totalorder %s9150_s22, 0 }
  0x1a   : > { %p62_p4 = por %p9152_p1, %p60_p0  ;;  %p9151_p5 = scmp.lt.s32.totalorder %s5632_s21, 4 }
  0x1b   : > { %p5774_p6 = por %p5765_p3, %p66_p2  ;;  %s318_s27 = sand.u32 1, %s5612_s17  }
  0x1c   : > { %s4453_s28 = sshll.u32 %s318_s27, 6  ;;  %s4622_s29 = sshll.u32 %s5628_s20, 10 }
  0x1d   : > { %s9545_s26 = scalar_select %p5774_p6, 1, 0 }
  0x1e   : > { %s9546_s0 = sld [smem:[#allocation126_spill]]  ;;  %s322_s12 = scalar_lea.vmem [#allocation4], %s4453_s28 }
  0x1f   : > { %s329_s16 = sshll.u32 %s322_s12, 4  ;;  %p5789_p7 = pnand %p9151_p5, %p62_p4  ;;  %s5785_s16 = int_to_ptr.vmem [resolvable:$true] %s329_s16 }
  0x20   : > { %s5794_s22 = scalar_lea.sflag [#allocation5], %s318_s27 }
  0x21   : > { %p5416_p10 = pneg %p5789_p7 }
  0x24   : > { %s5783_s11 = scalar_lea.hbm %s9546_s0, %s4622_s29  ;;  %s5419_s10 = scalar_lea.hbm %s9546_s0, 2048 }
  0x25   : > { %s5414_s29 = scalar_lea.hbm %s5783_s11, 1024  ;;  %p5420_p13 = scmp.lt.u32.totalorder %s5783_s11, %s9546_s0 }
  0x26   : > { %p5415_p9 = scmp.ne.s32.totalorder %s5783_s11, %s5414_s29  ;;  %p5421_p0 = scmp.lt.u32.totalorder %s5419_s10, %s5414_s29 }
  0x27   : > { %p5423_p4 = scmp.lt.u32.totalorder %s5414_s29, %s5783_s11 }
  0x28   : > { %p5417_p11 = pnand %p5416_p10, %p5415_p9  ;;  %p5422_p2 = por %p5421_p0, %p5420_p13 }
  0x2a   : > { %p5418_p12 = pneg %p5417_p11  ;;  %p5424_p5 = por %p5423_p4, %p5422_p2 }
  0x2c   : > { %p5425_p1 = pnand %p5424_p5, %p5418_p12 }
  0x2e   : > { %5428 = shalt.err (!%p5425_p1)
}
  0x2f   : > { %s5429_s27 = scalar_lea.vmem %s5785_s16, 1024  ;;  %s5634_s28 = smov [#allocation4]  }
  0x30   : > { %p5430_p9 = scmp.ne.s32.totalorder %s5785_s16, %s5429_s27  ;;  %s5434_s30 = sshll.u32 %s5634_s28, 4  ;;  %s5435_s30 = int_to_ptr.vmem [resolvable:$false] %s5434_s30 }
  0x31   : > { %s5436_s23 = scalar_lea.vmem %s5435_s30, 2048  ;;  %p5437_p6 = scmp.lt.s32.totalorder %s5785_s16, %s5435_s30 }
  0x32   : > { %p5432_p11 = pnand %p5430_p9, %p5416_p10  ;;  %p5438_p13 = scmp.lt.s32.totalorder %s5436_s23, %s5429_s27 }
  0x34   : > { %p5433_p8 = pneg %p5432_p11  ;;  %p5439_p0 = por %p5438_p13, %p5437_p6 }
  0x36   : > { %p5440_p2 = pnand %p5439_p0, %p5433_p8 }
  0x38   : > { %5443 = shalt.err (!%p5440_p2)
}
  0x39   : > { %s9154_s29 = smov 512   ;;  %s5636_s10 = smov 32  }
  0x3a   : > { %4654 = dma.hbm_to_vmem [thread:$0]  (!%p5789_p7), %s5783_s11, 1024, %s5785_s16, %s5794_s22, %s9154_s29, %s9154_s29, %s5636_s10  }
  0x3b   : > { %p360_p1 = scmp.lt.s32.totalorder %s5632_s21, 5  ;;  %p9548_p5 = scmp.ge.s32.totalorder %s5632_s21, 1 }
  0x3c   : > { %s4450_s27 = sadd.s32 4294967294, %s5632_s21   ;;  %s43_s28 = sadd.s32 1, %s5624_s19 }
  0x3d   : > { %p5827_p6 = pnand %p9548_p5, %p360_p1  ;;  %p44_p8 = scmp.ge.s32.totalorder %s43_s28, 2 }
  0x3e   : > { %s81_s30 = sadd.s32 1, %s5600_s15  ;;  %p88_p10 = scmp.ne.s32.totalorder %s5600_s15, %s5596_s14 }
  0x3f   : > { %p94_p12 = scmp.ne.s32.totalorder %s5596_s14, %s5592_s13  ;;  %s10406_s28 = smov (%p44_p8, %s43_s28), 0 }
  0x40   : > { %9550 = sst [smem:[#allocation19_spill]] %s10406_s28  ;;  %s9551_s24 = sadd.s32 1, %s5628_s20 }
  0x41   : > { %s10408_s24 = smov (!%p44_p8, %s9551_s24), %s5628_s20  ;;  %s77_s22 = ssub.s32 %s5624_s19, %s10406_s28 }
  0x42   : > { %p9552_p7 = scmp.eq.s32.totalorder %s5632_s21, 0  ;;  %p48_p9 = scmp.ge.s32.totalorder %s10408_s24, 2 }
  0x43   : > { %p5853_p11 = por %p94_p12, %p5765_p3  ;;  %s9555_s23 = sadd.s32 4294967295, %s5632_s21  }
  0x44   : > { %p5847_p4 = por %p88_p10, %p9552_p7  ;;  %p246_p13 = scmp.eq.s32.totalorder %s9555_s23, 3 }
  0x45   : > { %s9554_s16 = scalar_select %p5853_p11, 1, 0 }
  0x46   : > { %p252_p0 = scmp.eq.s32.totalorder %s4450_s27, 3  ;;  %s10410_s24 = smov (%p48_p9, %s10408_s24), 0 }
  0x47   : > { %9556 = sst [smem:[#allocation20_spill]] %s10410_s24  ;;  %p5861_p2 = por %p246_p13, %p88_p10 }
  0x48   : > { %p5865_p1 = por %p252_p0, %p94_p12  ;;  %s50_s25 = ssub.s32 %s5628_s20, %s10410_s24 }
  0x49   : > { %s9557_s10 = scalar_select %p5861_p2, 1, 0 }
  0x4a   : > { %s9559_s29 = scalar_select %p5865_p1, 1, 0 }
  0x4b   : > { %9558 = sst [smem:[#allocation21_spill]] %s9557_s10  ;;  %s339_s0 = sand.u32 1, %s5600_s15  }
  0x4c   : > { %9560 = sst [smem:[#allocation22_spill]] %s9559_s29  ;;  %p51_p3 = scmp.eq.s32.totalorder %s50_s25, 0 }
  0x4d   : > { %s78_s28 = sor.u32 %s77_s22, %s50_s25  ;;  %s9561_s23 = sadd.s32 1, %s5612_s17 }
  0x4e   : > { %p79_p5 = scmp.eq.s32.totalorder %s78_s28, 0  ;;  %s4456_s8 = sshll.u32 %s339_s0, 5 }
  0x4f   : > { %s5875_s27 = scalar_select %p51_p3, %s5612_s17, %s9561_s23  }
  0x50   : > { %s5878_s13 = scalar_select %p79_p5, %s5600_s15, %s81_s30  }
  0x51   : > { %s4457_s9 = sshll.u32 %s5624_s19, 1  ;;  %s4458_s18 = sshll.u32 %s5628_s20, 3 }
  0x52   : > { %s349_s10 = sadd.s32 %s4458_s18, %s4457_s9  ;;  %s343_s7 = scalar_lea.vmem [#allocation7], %s4456_s8 }
  0x53   : > { %s352_s2 = sshll.u32 %s343_s7, 4  ;;  %s4459_s5 = sshll.u32 %s349_s10, 7  ;;  %s5882_s2 = int_to_ptr.vmem [resolvable:$true] %s352_s2 }
  0x54   : > { %s5887_s3 = scalar_lea.hbm %s9141_s1, %s4459_s5  ;;  %p9562_p8 = scmp.lt.s32.totalorder %s5632_s21, 4 }
  0x55   : > { %s5897_s8 = scalar_lea.sflag [#allocation8], %s339_s0  ;;  %s5444_s9 = scalar_lea.hbm %s5887_s3, 512 }
  0x56   : > { %p5893_p10 = pnand %p9562_p8, %p5847_p4  ;;  %p5445_p12 = scmp.ne.s32.totalorder %s5887_s3, %s5444_s9 }
  0x57   : > { %s5449_s18 = scalar_lea.hbm %s9141_s1, 2048  ;;  %p5450_p4 = scmp.lt.u32.totalorder %s5887_s3, %s9141_s1 }
  0x58   : > { %p5446_p7 = pneg %p5893_p10  ;;  %p5451_p0 = scmp.lt.u32.totalorder %s5449_s18, %s5444_s9 }
  0x59   : > { %p5453_p5 = scmp.lt.u32.totalorder %s5444_s9, %s5887_s3 }
  0x5a   : > { %p5447_p9 = pnand %p5446_p7, %p5445_p12  ;;  %p5452_p3 = por %p5451_p0, %p5450_p4 }
  0x5c   : > { %p5448_p13 = pneg %p5447_p9  ;;  %p5454_p8 = por %p5453_p5, %p5452_p3 }
  0x5e   : > { %p5455_p1 = pnand %p5454_p8, %p5448_p13 }
  0x60   : > { %5458 = shalt.err (!%p5455_p1)
}
  0x61   : > { %s5459_s0 = scalar_lea.vmem %s5882_s2, 512  ;;  %s5637_s24 = smov [#allocation7]  }
  0x62   : > { %p5460_p12 = scmp.ne.s32.totalorder %s5882_s2, %s5459_s0  ;;  %s5464_s22 = sshll.u32 %s5637_s24, 4  ;;  %s5465_s22 = int_to_ptr.vmem [resolvable:$false] %s5464_s22 }
  0x63   : > { %s5466_s11 = scalar_lea.vmem %s5465_s22, 1024  ;;  %p5467_p11 = scmp.lt.s32.totalorder %s5882_s2, %s5465_s22 }
  0x64   : > { %p5462_p9 = pnand %p5460_p12, %p5446_p7  ;;  %p5468_p4 = scmp.lt.s32.totalorder %s5466_s11, %s5459_s0 }
  0x66   : > { %p5463_p2 = pneg %p5462_p9  ;;  %p5469_p0 = por %p5468_p4, %p5467_p11 }
  0x68   : > { %p5470_p3 = pnand %p5469_p0, %p5463_p2 }
  0x6a   : > { %5473 = shalt.err (!%p5470_p3)
}
  0x6b   : > { %s5638_s10 = smov 256   ;;  %s5639_s25 = smov 16  }
  0x6c   : > { %s9564_s23 = smov 512   ;;  %364 = sbr.rel (%p5827_p6) target bundleno = 2504 (0x9c8), region = 52 }
  0x6d   : > { %4657 = dma.hbm_to_vmem [thread:$0]  (!%p5893_p10), %s5887_s3, 512, %s5882_s2, %s5897_s8, %s9564_s23, %s5638_s10, %s5639_s25  }
  0x73   : > { %s366_s9 = sand.u32 1, %s5608_s6   ;;  %p9565_p11 = scmp.ne.s32.totalorder %s9545_s26, 0 }
  0x74   : > { %s4461_s5 = sshll.u32 %s366_s9, 6  ;;  %s367_s7 = scalar_lea.sflag [#allocation5], %s366_s9 }
  0x75   : > { %s5929_s18 = scalar_lea.vmem [#allocation4], %s4461_s5 }
  0x76   : > { %5575 = dma.done.wait (%p9565_p11), %s367_s7, 1024  }
  0x77   : > { %5577 = vsyncadd (%p9565_p11), %s367_s7, 4294966272  ;;  %s5936_s28 = sand.u32 1, %s5596_s14   ;;  %p9566_p6 = scmp.ne.s32.totalorder %s9554_s16, 0 }
  0x78   : > { %s5939_s2 = sshll.u32 %s5936_s28, 5  ;;  %s376_s3 = scalar_lea.sflag [#allocation8], %s5936_s28 }
  0x79   : > { %s5943_s12 = scalar_lea.vmem [#allocation7], %s5939_s2 }
  0x7a   : > { %5579 = dma.done.wait (%p9566_p6), %s376_s3, 512  }
  0x7b   : > { %5581 = vsyncadd (%p9566_p6), %s376_s3, 4294966784  ;;  %v9166_v0 = vmov 0.0   ;;  %v5641_v1 = vmov 0   ;;  %v428_v2 = vld [vmem:[%s5929_s18 + $0x8] sm:$0xff]  ;;  %v427_v4 = vld [vmem:[%s5929_s18] sm:$0xff]  ;;  %vm474_vm0 = vcmask 130048  }
  0x7c   : > { %554 = vmatprep.mubr.f32.mxu0 %v9166_v0  ;;  %649 = vmatprep.mubr.f32.mxu1 %v9166_v0  ;;  %v432_v3 = vld [vmem:[%s5929_s18 + $0x28] sm:$0xff]  ;;  %v431_v6 = vld [vmem:[%s5929_s18 + $0x20] sm:$0xff]  ;;  %v438_v9 = vld [vmem:[%s5943_s12 + $0x18] sm:$0xff]  ;;  %s9567_s30 = sld [smem:[#allocation128_spill]]  ;;  %s9568_s10 = sld [smem:[#allocation129_spill]]  ;;  %vm930_vm1 = vcmask 1041408  }
  0x7d   : > { %4764 = vset.pattern.permute.xlu0 %v5641_v1  ;;  %v4623_v5 = vpack.c.bf16 %v432_v3, %v428_v2  ;;  %v436_v7 = vld [vmem:[%s5943_s12 + $0x8] sm:$0xff]  ;;  %v4625_v8 = vpack.c.bf16 %v431_v6, %v427_v4  ;;  %v435_v10 = vld [vmem:[%s5943_s12] sm:$0xff]  ;;  %v437_v11 = vld [vmem:[%s5943_s12 + $0x10] sm:$0xff]  ;;  %s9569_s16 = sld [smem:[#allocation127_spill]]  ;;  %vm833_vm2 = vcmask 15360   ;;  %vm2401_vm3 = vcmask 1045504  }
  0x7e   : > { %v4631_v12 = vpack.c.bf16 %v438_v9, %v436_v7  ;;  %v439_v13 = vld [vmem:[%s9144_s4] sm:$0xff]  ;;  %v4633_v14 = vpack.c.bf16 %v437_v11, %v435_v10  ;;  %v430_v15 = vld [vmem:[%s5929_s18 + $0x18] sm:$0xff]  ;;  %v429_v18 = vld [vmem:[%s5929_s18 + $0x10] sm:$0xff]  ;;  %s762_s24 = sld [smem:[#allocation3]]  ;;  %s7502_s22 = scalar_lea.vmem [#allocation10], %s5939_s2 }
  0x7f   : > { %4624 = vmatprep.subr.bf16.mxu0 %v4623_v5  ;;  %v434_v16 = vld [vmem:[%s5929_s18 + $0x38] sm:$0xff]  ;;  %v433_v19 = vld [vmem:[%s5929_s18 + $0x30] sm:$0xff]  ;;  %v440_v22 = vld [vmem:[%s9144_s4 + $0x8] sm:$0xff]  ;;  %s10374_s5 = sld [smem:[#allocation17_spill]]  ;;  %s10377_s7 = sld [smem:[#allocation18_spill]] }
  0x80   : > { %4626 = vmatpush1.bf16.msra.mxu0 %v4625_v8  ;;  %v4627_v17 = vpack.c.bf16 %v434_v16, %v430_v15  ;;  %v4629_v20 = vpack.c.bf16 %v433_v19, %v429_v18  ;;  %v441_v24 = vld [vmem:[%s9144_s4 + $0x10] sm:$0xff]  ;;  %v442_v25 = vld [vmem:[%s9144_s4 + $0x18] sm:$0xff]  ;;  %v443_v26 = vld [vmem:[%s9144_s4 + $0x20] sm:$0xf]  ;;  %s10383_s18 = sld [smem:[#allocation21_spill]]  ;;  %s4301_s3 = sshll.u32 %s7502_s22, 4  ;;  %s9021_s3 = int_to_ptr.vmem [resolvable:$true] %s4301_s3 }
  0x81   : > { %4632 = vmatprep.subr.bf16.mxu0 %v4631_v12  ;;  %s4268_s25 = scalar_lea.sflag [#allocation11], %s5936_s28  ;;  %s5642_s23 = smov [#allocation10]  }
  0x82   : > { %v681_v21 = vld [vmem:[%s9567_s30] sm:$0xf]  ;;  %4628 = vmatprep.subr.bf16.mxu1 %v4627_v17  ;;  %s5478_s9 = sshll.u32 %s5642_s23, 4  ;;  %s5479_s9 = int_to_ptr.vmem [resolvable:$false] %s5478_s9 }
  0x83   : > { %4465 = vmatmul.mubr.msk.f32.vlgmr.msra.gmra.mrb[0].mxu0 %vm474_vm0, %v439_v13  ;;  %4630 = vmatpush1.bf16.msra.mxu1 %v4629_v20  ;;  %v444_v23 = vld [vmem:[%s9568_s10] sm:$0xff]  ;;  %p5481_p13 = scmp.lt.s32.totalorder %s9021_s3, %s5479_s9 }
  0x84   : > { %4634 = vmatpush1.bf16.msra.mxu0 %v4633_v14  ;;  %560 = vmatprep.mubr.f32.mxu0 %v9166_v0  ;;  %v680_v27 = vld [vmem:[%s9569_s16] sm:$0xf] }
  0x85   : > { %684 = vperm.xlu0 %4764, %v681_v21   ;;  %s4614_s26 = sshll.u32 %s10374_s5, 1  ;;  %s4615_s16 = sshll.u32 %s10377_s7, 3 }
  0x86   : > { %4470 = vmatmul.mubr.msk.f32.vlgmr.msra.gmra.mrb[0].mxu1 %vm474_vm0, %v439_v13  ;;  %s9025_s8 = sadd.s32 %s4615_s16, %s4614_s26  ;;  %p10386_p1 = scmp.ne.s32.totalorder %s10383_s18, 0 }
  0x87   : > { %4466 = vmatmul.mubr.msk.f32.gmra.mrb[2].mxu0 %vm474_vm0, %v440_v22  ;;  %655 = vmatprep.mubr.f32.mxu1 %v9166_v0  ;;  %s4616_s29 = sshll.u32 %s9025_s8, 7  ;;  %s5480_s5 = scalar_lea.vmem %s5479_s9, 1024 }
  0x88   : > { %566 = vmatprep.mubr.f32.mxu0 %v9166_v0 }
  0x89   : > { %451 = vperm.xlu0 %4764, %v444_v23  }
  0x8a   : > { %4471 = vmatmul.mubr.msk.f32.gmra.mrb[2].mxu1 %vm474_vm0, %v440_v22 }
  0x8b   : > { %4467 = vmatmul.mubr.msk.f32.gmra.mrb[4].mxu0 %vm474_vm0, %v441_v24  ;;  %661 = vmatprep.mubr.f32.mxu1 %v9166_v0 }
  0x8c   : > { %572 = vmatprep.mubr.f32.mxu0 %v9166_v0 }
  0x8e   : > { %4472 = vmatmul.mubr.msk.f32.gmra.mrb[4].mxu1 %vm474_vm0, %v441_v24 }
  0x8f   : > { %4468 = vmatmul.mubr.msk.f32.gmra.mrb[6].mxu0 %vm474_vm0, %v442_v25  ;;  %667 = vmatprep.mubr.f32.mxu1 %v9166_v0 }
  0x90   : > { %578 = vmatprep.mubr.f32.mxu0 %v9166_v0 }
  0x92   : > { %4473 = vmatmul.mubr.msk.f32.gmra.mrb[6].mxu1 %vm474_vm0, %v442_v25 }
  0x93   : > { %4469 = vmatmul.mubr.msk.f32.gmra.mrb[8].mxu0 %vm474_vm0, %v443_v26  ;;  %673 = vmatprep.mubr.f32.mxu1 %v9166_v0 }
  0x94   : > { %754 = vmatprep.mubr.f32.mxu0 %v9166_v0 }
  0x96   : > { %4474 = vmatmul.mubr.msk.f32.gmra.mrb[8].mxu1 %vm474_vm0, %v443_v26 }
  0x97   : > { %4475 = vmatmul.mubr.msk.f32.vlgmr.msra.gmra.mrb[10].mxu0 %vm474_vm0, %v680_v27  ;;  %1007 = vmatprep.mubr.f32.mxu1 %v9166_v0 }
  0x98   : > { %1264 = vmatprep.mubr.f32.mxu0 %v9166_v0 }
 0x104   : > { %v685_v28 = vpop.permute.xlu0 %684 }
 0x108   : > { %v452_v29 = vpop.permute.xlu0 %451 }
 0x156   : > { %v556_v30 = vpop.f32.mrb[0].mxu0 }
 0x157   : > { %v558_v31 = vpop.f32.mrb[1].mxu0  ;;  %v6012_v33 = vadd.f32 %v556_v30, %v452_v29 }
 0x158   : > { %v6010_v32 = vadd.f32 %v558_v31, %v452_v29 }
 0x159   : > { %9571 = vst [vmem:[#allocation24_spill] sm:$0xff] %v6012_v33  ;;  %v651_v36 = vpop.f32.mrb[0].mxu1 }
 0x15a   : > { %9570 = vst [vmem:[#allocation23_spill] sm:$0xff] %v6010_v32  ;;  %v6014_v34 = vpop.f32.mrb[2].mxu0  ;;  %4476 = vmatprep.subr.msk.mxu1 %vm930_vm1, %v6010_v32  ;;  %v6022_v37 = vadd.f32 %v651_v36, %v452_v29  ;;  %v653_v38 = vpop.f32.mrb[1].mxu1 }
 0x15b   : > { %9572 = vst [vmem:[#allocation25_spill] sm:$0xff] %v6014_v34  ;;  %v6018_v35 = vpop.f32.mrb[3].mxu0  ;;  %4477 = vmatpush1.msk.msra.mxu1 %vm930_vm1, %v6012_v33  ;;  %v6024_v39 = vadd.f32 %v653_v38, %v452_v29 }
 0x15c   : > { %9573 = vst [vmem:[#allocation26_spill] sm:$0xff] %v6018_v35  ;;  %9574 = vst [vmem:[#allocation27_spill] sm:$0xff] %v6022_v37 }
 0x15d   : > { %9575 = vst [vmem:[#allocation28_spill] sm:$0xff] %v6024_v39  ;;  %4510 = vmatprep.subr.msk.mxu0 %vm930_vm1, %v6024_v39  ;;  %v6049_v52 = vpop.f32.mrb[2].mxu1 }
 0x15e   : > { %v6026_v40 = vpop.f32.mrb[4].mxu0  ;;  %4511 = vmatpush1.msk.msra.mxu0 %vm930_vm1, %v6022_v37  ;;  %9584 = vst [vmem:[#allocation37_spill] sm:$0xff] %v6049_v52  ;;  %v6051_v53 = vpop.f32.mrb[3].mxu1 }
 0x15f   : > { %9576 = vst [vmem:[#allocation29_spill] sm:$0xff] %v6026_v40  ;;  %v6028_v41 = vpop.f32.mrb[5].mxu0  ;;  %9585 = vst [vmem:[#allocation38_spill] sm:$0xff] %v6051_v53 }
 0x160   : > { %9577 = vst [vmem:[#allocation30_spill] sm:$0xff] %v6028_v41 }
 0x161   : > { %v6053_v54 = vpop.f32.mrb[4].mxu1 }
 0x162   : > { %v6034_v42 = vpop.f32.mrb[6].mxu0  ;;  %9586 = vst [vmem:[#allocation39_spill] sm:$0xff] %v6053_v54  ;;  %v6055_v55 = vpop.f32.mrb[5].mxu1 }
 0x163   : > { %9578 = vst [vmem:[#allocation31_spill] sm:$0xff] %v6034_v42  ;;  %v6036_v43 = vpop.f32.mrb[7].mxu0  ;;  %9587 = vst [vmem:[#allocation40_spill] sm:$0xff] %v6055_v55 }
 0x164   : > { %9579 = vst [vmem:[#allocation32_spill] sm:$0xff] %v6036_v43 }
 0x165   : > { %v6057_v57 = vpop.f32.mrb[6].mxu1 }
 0x166   : > { %v6038_v44 = vpop.f32.mrb[8].mxu0  ;;  %9588 = vst [vmem:[#allocation41_spill] sm:$0xff] %v6057_v57  ;;  %v6061_v58 = vpop.f32.mrb[7].mxu1 }
 0x167   : > { %9580 = vst [vmem:[#allocation33_spill] sm:$0xff] %v6038_v44  ;;  %v6040_v45 = vpop.f32.mrb[9].mxu0  ;;  %9589 = vst [vmem:[#allocation42_spill] sm:$0xff] %v6061_v58 }
 0x168   : > { %9581 = vst [vmem:[#allocation34_spill] sm:$0xff] %v6040_v45 }
 0x169   : > { %v6065_v59 = vpop.f32.mrb[8].mxu1 }
 0x16a   : > { %v756_v46 = vpop.f32.mrb[10].mxu0  ;;  %9590 = vst [vmem:[#allocation43_spill] sm:$0xff] %v6065_v59  ;;  %v6067_v60 = vpop.f32.mrb[9].mxu1 }
 0x16b   : > { %v6042_v47 = vadd.f32 %v756_v46, %v685_v28  ;;  %v758_v48 = vpop.f32.mrb[11].mxu0  ;;  %9591 = vst [vmem:[#allocation44_spill] sm:$0xff] %v6067_v60 }
 0x16c   : > { %v6045_v50 = vadd.f32 %v758_v48, %v685_v28 }
 0x16d   : > { %9582 = vst [vmem:[#allocation35_spill] sm:$0xff] %v6042_v47  ;;  %v765_v49 = vrot.slane %v6042_v47, 2 }
 0x16e   : > { %9583 = vst [vmem:[#allocation36_spill] sm:$0xff] %v6045_v50  ;;  %v766_v51 = vrot.slane %v6045_v50, 2 }
 0x16f   : > { %769 = vxpose.xlu1.b32.start.end [1/1] (short) %v765_v49, 128 }
 0x1ac   : > { %801 = vxpose.xlu1.b32.start.end [1/1] (short) %v766_v51, 128 }
 0x1ca   : > { %4765 = vset.pattern.permute.xlu1 %v5641_v1 }
 0x1ef   : > { %v785_v56 = vpop.trf.xlu1 }
 0x1f0   : > { %4478 = vmatmul.mubr.msk.f32.vlgmr.msra.gmra.mrb[10].mxu1 %vm833_vm2, %v785_v56  ;;  %4512 = vmatmul.mubr.msk.f32.vlgmr.msra.gmra.mrb[12].mxu0 %vm833_vm2, %v785_v56 }
 0x1f1   : > { %1270 = vmatprep.mubr.f32.mxu0 %v9166_v0  ;;  %1013 = vmatprep.mubr.f32.mxu1 %v9166_v0 }
 0x1f3   : > { %v786_v61 = vpop.trf.xlu1 }
 0x1f4   : > { %4479 = vmatmul.mubr.msk.f32.gmra.mrb[12].mxu1 %vm833_vm2, %v786_v61  ;;  %4513 = vmatmul.mubr.msk.f32.gmra.mrb[14].mxu0 %vm833_vm2, %v786_v61 }
 0x1f5   : > { %1276 = vmatprep.mubr.f32.mxu0 %v9166_v0  ;;  %1019 = vmatprep.mubr.f32.mxu1 %v9166_v0 }
 0x1f7   : > { %v787_v62 = vpop.trf.xlu1 }
 0x1f8   : > { %4480 = vmatmul.mubr.msk.f32.gmra.mrb[14].mxu1 %vm833_vm2, %v787_v62  ;;  %4514 = vmatmul.mubr.msk.f32.gmra.mrb[16].mxu0 %vm833_vm2, %v787_v62 }
 0x1f9   : > { %1282 = vmatprep.mubr.f32.mxu0 %v9166_v0  ;;  %1025 = vmatprep.mubr.f32.mxu1 %v9166_v0 }
 0x1fb   : > { %v788_v63 = vpop.trf.xlu1 }
 0x1fc   : > { %4481 = vmatmul.mubr.msk.f32.gmra.mrb[16].mxu1 %vm833_vm2, %v788_v63  ;;  %4515 = vmatmul.mubr.msk.f32.gmra.mrb[18].mxu0 %vm833_vm2, %v788_v63 }
 0x1fd   : > { %1288 = vmatprep.mubr.f32.mxu0 %v9166_v0  ;;  %1031 = vmatprep.mubr.f32.mxu1 %v9166_v0 }
 0x1ff   : > { %v789_v1 = vpop.trf.xlu1 }
 0x200   : > { %4482 = vmatmul.mubr.msk.f32.gmra.mrb[18].mxu1 %vm833_vm2, %v789_v1  ;;  %4516 = vmatmul.mubr.msk.f32.gmra.mrb[20].mxu0 %vm833_vm2, %v789_v1 }
 0x201   : > { %1294 = vmatprep.mubr.f32.mxu0 %v9166_v0  ;;  %1037 = vmatprep.mubr.f32.mxu1 %v9166_v0 }
 0x203   : > { %v790_v2 = vpop.trf.xlu1 }
 0x204   : > { %4483 = vmatmul.mubr.msk.f32.gmra.mrb[20].mxu1 %vm833_vm2, %v790_v2  ;;  %4517 = vmatmul.mubr.msk.f32.gmra.mrb[22].mxu0 %vm833_vm2, %v790_v2 }
 0x205   : > { %1300 = vmatprep.mubr.f32.mxu0 %v9166_v0  ;;  %1043 = vmatprep.mubr.f32.mxu1 %v9166_v0 }
 0x207   : > { %v791_v3 = vpop.trf.xlu1 }
 0x208   : > { %4484 = vmatmul.mubr.msk.f32.gmra.mrb[22].mxu1 %vm833_vm2, %v791_v3  ;;  %4518 = vmatmul.mubr.msk.f32.gmra.mrb[24].mxu0 %vm833_vm2, %v791_v3 }
 0x209   : > { %1049 = vmatprep.mubr.f32.mxu1 %v9166_v0  ;;  %1306 = vmatprep.mubr.f32.mxu0 %v9166_v0 }
 0x20b   : > { %v792_v4 = vpop.trf.xlu1 }
 0x20c   : > { %4485 = vmatmul.mubr.msk.f32.gmra.mrb[24].mxu1 %vm833_vm2, %v792_v4  ;;  %4519 = vmatmul.mubr.msk.f32.gmra.mrb[26].mxu0 %vm833_vm2, %v792_v4 }
 0x20d   : > { %1055 = vmatprep.mubr.f32.mxu1 %v9166_v0  ;;  %1312 = vmatprep.mubr.f32.mxu0 %v9166_v0 }
 0x20f   : > { %v793_v5 = vpop.trf.xlu1 }
 0x210   : > { %4486 = vmatmul.mubr.msk.f32.gmra.mrb[26].mxu1 %vm833_vm2, %v793_v5  ;;  %4520 = vmatmul.mubr.msk.f32.gmra.mrb[28].mxu0 %vm833_vm2, %v793_v5 }
 0x211   : > { %1061 = vmatprep.mubr.f32.mxu1 %v9166_v0  ;;  %1318 = vmatprep.mubr.f32.mxu0 %v9166_v0 }
 0x213   : > { %v794_v6 = vpop.trf.xlu1 }
 0x214   : > { %4487 = vmatmul.mubr.msk.f32.gmra.mrb[28].mxu1 %vm833_vm2, %v794_v6  ;;  %4521 = vmatmul.mubr.msk.f32.gmra.mrb[30].mxu0 %vm833_vm2, %v794_v6 }
 0x215   : > { %1067 = vmatprep.mubr.f32.mxu1 %v9166_v0  ;;  %1324 = vmatprep.mubr.f32.mxu0 %v9166_v0 }
 0x217   : > { %v795_v7 = vpop.trf.xlu1 }
 0x218   : > { %4488 = vmatmul.mubr.msk.f32.gmra.mrb[30].mxu1 %vm833_vm2, %v795_v7  ;;  %4522 = vmatmul.mubr.msk.f32.gmra.mrb[32].mxu0 %vm833_vm2, %v795_v7 }
 0x219   : > { %1073 = vmatprep.mubr.f32.mxu1 %v9166_v0  ;;  %1330 = vmatprep.mubr.f32.mxu0 %v9166_v0 }
 0x21b   : > { %v796_v8 = vpop.trf.xlu1 }
 0x21c   : > { %4489 = vmatmul.mubr.msk.f32.gmra.mrb[32].mxu1 %vm833_vm2, %v796_v8  ;;  %4523 = vmatmul.mubr.msk.f32.gmra.mrb[34].mxu0 %vm833_vm2, %v796_v8 }
 0x21d   : > { %1079 = vmatprep.mubr.f32.mxu1 %v9166_v0  ;;  %1336 = vmatprep.mubr.f32.mxu0 %v9166_v0 }
 0x21f   : > { %v797_v9 = vpop.trf.xlu1 }
 0x220   : > { %4490 = vmatmul.mubr.msk.f32.gmra.mrb[34].mxu1 %vm833_vm2, %v797_v9  ;;  %4524 = vmatmul.mubr.msk.f32.gmra.mrb[36].mxu0 %vm833_vm2, %v797_v9 }
 0x221   : > { %1085 = vmatprep.mubr.f32.mxu1 %v9166_v0  ;;  %1342 = vmatprep.mubr.f32.mxu0 %v9166_v0 }
 0x223   : > { %v798_v10 = vpop.trf.xlu1 }
 0x224   : > { %4491 = vmatmul.mubr.msk.f32.gmra.mrb[36].mxu1 %vm833_vm2, %v798_v10  ;;  %4525 = vmatmul.mubr.msk.f32.gmra.mrb[38].mxu0 %vm833_vm2, %v798_v10 }
 0x225   : > { %1091 = vmatprep.mubr.f32.mxu1 %v9166_v0  ;;  %1348 = vmatprep.mubr.f32.mxu0 %v9166_v0 }
 0x227   : > { %v799_v11 = vpop.trf.xlu1 }
 0x228   : > { %4492 = vmatmul.mubr.msk.f32.gmra.mrb[38].mxu1 %vm833_vm2, %v799_v11  ;;  %4526 = vmatmul.mubr.msk.f32.gmra.mrb[40].mxu0 %vm833_vm2, %v799_v11 }
 0x229   : > { %1097 = vmatprep.mubr.f32.mxu1 %v9166_v0  ;;  %1354 = vmatprep.mubr.f32.mxu0 %v9166_v0 }
 0x22b   : > { %v800_v12 = vpop.trf.xlu1 }
 0x22c   : > { %4493 = vmatmul.mubr.msk.f32.gmra.mrb[40].mxu1 %vm833_vm2, %v800_v12  ;;  %4527 = vmatmul.mubr.msk.f32.gmra.mrb[42].mxu0 %vm833_vm2, %v800_v12 }
 0x22d   : > { %1103 = vmatprep.mubr.f32.mxu1 %v9166_v0  ;;  %1360 = vmatprep.mubr.f32.mxu0 %v9166_v0 }
 0x22f   : > { %v817_v13 = vpop.trf.xlu1 }
 0x230   : > { %4494 = vmatmul.mubr.msk.f32.gmra.mrb[42].mxu1 %vm833_vm2, %v817_v13  ;;  %4528 = vmatmul.mubr.msk.f32.gmra.mrb[44].mxu0 %vm833_vm2, %v817_v13 }
 0x231   : > { %1109 = vmatprep.mubr.f32.mxu1 %v9166_v0  ;;  %1366 = vmatprep.mubr.f32.mxu0 %v9166_v0 }
 0x233   : > { %v818_v14 = vpop.trf.xlu1 }
 0x234   : > { %4495 = vmatmul.mubr.msk.f32.gmra.mrb[44].mxu1 %vm833_vm2, %v818_v14  ;;  %4529 = vmatmul.mubr.msk.f32.gmra.mrb[46].mxu0 %vm833_vm2, %v818_v14 }
 0x235   : > { %1115 = vmatprep.mubr.f32.mxu1 %v9166_v0  ;;  %1372 = vmatprep.mubr.f32.mxu0 %v9166_v0 }
 0x237   : > { %v819_v15 = vpop.trf.xlu1 }
 0x238   : > { %4496 = vmatmul.mubr.msk.f32.gmra.mrb[46].mxu1 %vm833_vm2, %v819_v15  ;;  %4530 = vmatmul.mubr.msk.f32.gmra.mrb[48].mxu0 %vm833_vm2, %v819_v15 }
 0x239   : > { %1121 = vmatprep.mubr.f32.mxu1 %v9166_v0  ;;  %1378 = vmatprep.mubr.f32.mxu0 %v9166_v0 }
 0x23b   : > { %v820_v16 = vpop.trf.xlu1 }
 0x23c   : > { %4497 = vmatmul.mubr.msk.f32.gmra.mrb[48].mxu1 %vm833_vm2, %v820_v16  ;;  %4531 = vmatmul.mubr.msk.f32.gmra.mrb[50].mxu0 %vm833_vm2, %v820_v16 }
 0x23d   : > { %1127 = vmatprep.mubr.f32.mxu1 %v9166_v0  ;;  %1384 = vmatprep.mubr.f32.mxu0 %v9166_v0 }
 0x23f   : > { %v821_v17 = vpop.trf.xlu1 }
 0x240   : > { %4498 = vmatmul.mubr.msk.f32.gmra.mrb[50].mxu1 %vm833_vm2, %v821_v17  ;;  %4532 = vmatmul.mubr.msk.f32.gmra.mrb[52].mxu0 %vm833_vm2, %v821_v17 }
 0x241   : > { %1133 = vmatprep.mubr.f32.mxu1 %v9166_v0  ;;  %1390 = vmatprep.mubr.f32.mxu0 %v9166_v0 }
 0x243   : > { %v822_v18 = vpop.trf.xlu1 }
 0x244   : > { %4499 = vmatmul.mubr.msk.f32.gmra.mrb[52].mxu1 %vm833_vm2, %v822_v18  ;;  %4533 = vmatmul.mubr.msk.f32.gmra.mrb[54].mxu0 %vm833_vm2, %v822_v18 }
 0x245   : > { %1139 = vmatprep.mubr.f32.mxu1 %v9166_v0  ;;  %1396 = vmatprep.mubr.f32.mxu0 %v9166_v0 }
 0x247   : > { %v823_v19 = vpop.trf.xlu1 }
 0x248   : > { %4500 = vmatmul.mubr.msk.f32.gmra.mrb[54].mxu1 %vm833_vm2, %v823_v19  ;;  %4534 = vmatmul.mubr.msk.f32.gmra.mrb[56].mxu0 %vm833_vm2, %v823_v19 }
 0x249   : > { %1145 = vmatprep.mubr.f32.mxu1 %v9166_v0  ;;  %1402 = vmatprep.mubr.f32.mxu0 %v9166_v0 }
 0x24b   : > { %v824_v20 = vpop.trf.xlu1 }
 0x24c   : > { %4501 = vmatmul.mubr.msk.f32.gmra.mrb[56].mxu1 %vm833_vm2, %v824_v20  ;;  %4535 = vmatmul.mubr.msk.f32.gmra.mrb[58].mxu0 %vm833_vm2, %v824_v20 }
 0x24d   : > { %1151 = vmatprep.mubr.f32.mxu1 %v9166_v0  ;;  %1408 = vmatprep.mubr.f32.mxu0 %v9166_v0 }
 0x24f   : > { %v825_v21 = vpop.trf.xlu1 }
 0x250   : > { %4502 = vmatmul.mubr.msk.f32.gmra.mrb[58].mxu1 %vm833_vm2, %v825_v21  ;;  %4536 = vmatmul.mubr.msk.f32.gmra.mrb[60].mxu0 %vm833_vm2, %v825_v21 }
 0x251   : > { %1157 = vmatprep.mubr.f32.mxu1 %v9166_v0  ;;  %1414 = vmatprep.mubr.f32.mxu0 %v9166_v0 }
 0x253   : > { %v826_v22 = vpop.trf.xlu1 }
 0x254   : > { %4503 = vmatmul.mubr.msk.f32.gmra.mrb[60].mxu1 %vm833_vm2, %v826_v22  ;;  %4537 = vmatmul.mubr.msk.f32.gmra.mrb[62].mxu0 %vm833_vm2, %v826_v22 }
 0x255   : > { %1163 = vmatprep.mubr.f32.mxu1 %v9166_v0  ;;  %1420 = vmatprep.mubr.f32.mxu0 %v9166_v0 }
 0x257   : > { %v827_v23 = vpop.trf.xlu1 }
 0x258   : > { %4504 = vmatmul.mubr.msk.f32.gmra.mrb[62].mxu1 %vm833_vm2, %v827_v23  ;;  %4538 = vmatmul.mubr.msk.f32.gmra.mrb[64].mxu0 %vm833_vm2, %v827_v23 }
 0x259   : > { %1169 = vmatprep.mubr.f32.mxu1 %v9166_v0  ;;  %1426 = vmatprep.mubr.f32.mxu0 %v9166_v0 }
 0x25b   : > { %v828_v24 = vpop.trf.xlu1 }
 0x25c   : > { %4505 = vmatmul.mubr.msk.f32.gmra.mrb[64].mxu1 %vm833_vm2, %v828_v24  ;;  %4539 = vmatmul.mubr.msk.f32.gmra.mrb[66].mxu0 %vm833_vm2, %v828_v24 }
 0x25d   : > { %1175 = vmatprep.mubr.f32.mxu1 %v9166_v0  ;;  %1432 = vmatprep.mubr.f32.mxu0 %v9166_v0 }
 0x25f   : > { %v829_v25 = vpop.trf.xlu1 }
 0x260   : > { %4506 = vmatmul.mubr.msk.f32.gmra.mrb[66].mxu1 %vm833_vm2, %v829_v25  ;;  %4540 = vmatmul.mubr.msk.f32.gmra.mrb[68].mxu0 %vm833_vm2, %v829_v25 }
 0x261   : > { %1181 = vmatprep.mubr.f32.mxu1 %v9166_v0  ;;  %1438 = vmatprep.mubr.f32.mxu0 %v9166_v0 }
 0x263   : > { %v830_v26 = vpop.trf.xlu1 }
 0x264   : > { %4507 = vmatmul.mubr.msk.f32.gmra.mrb[68].mxu1 %vm833_vm2, %v830_v26  ;;  %4541 = vmatmul.mubr.msk.f32.gmra.mrb[70].mxu0 %vm833_vm2, %v830_v26 }
 0x265   : > { %1187 = vmatprep.mubr.f32.mxu1 %v9166_v0  ;;  %1444 = vmatprep.mubr.f32.mxu0 %v9166_v0 }
 0x267   : > { %v831_v27 = vpop.trf.xlu1 }
 0x268   : > { %4508 = vmatmul.mubr.msk.f32.gmra.mrb[70].mxu1 %vm833_vm2, %v831_v27  ;;  %4542 = vmatmul.mubr.msk.f32.gmra.mrb[72].mxu0 %vm833_vm2, %v831_v27 }
 0x269   : > { %1193 = vmatprep.mubr.f32.mxu1 %v9166_v0  ;;  %1450 = vmatprep.mubr.f32.mxu0 %v9166_v0 }
 0x26b   : > { %v832_v28 = vpop.trf.xlu1 }
 0x26c   : > { %4509 = vmatmul.mubr.msk.f32.gmra.mrb[72].mxu1 %vm833_vm2, %v832_v28  ;;  %4543 = vmatmul.mubr.msk.f32.gmra.mrb[74].mxu0 %vm833_vm2, %v832_v28 }
 0x2c3   : > { %v6191_v29 = vpop.f32.mrb[10].mxu1  ;;  %v6193_v30 = vpop.f32.mrb[12].mxu0 }
 0x2c4   : > { %v6195_v31 = vpop.f32.mrb[11].mxu1  ;;  %v6197_v36 = vpop.f32.mrb[13].mxu0 }
 0x2c5   : > { %v1457_v38 = vmax.f32 %v6191_v29, %v6195_v31 }
 0x2c7   : > { %v6201_v46 = vpop.f32.mrb[12].mxu1  ;;  %v6203_v48 = vpop.f32.mrb[14].mxu0  ;;  %v1458_v49 = vmax.f32 %v1457_v38, %v6193_v30 }
 0x2c8   : > { %v6206_v51 = vpop.f32.mrb[13].mxu1  ;;  %v6208_v56 = vpop.f32.mrb[15].mxu0 }
 0x2c9   : > { %v1462_v61 = vmax.f32 %v6201_v46, %v6206_v51  ;;  %v1459_v62 = vmax.f32 %v1458_v49, %v6197_v36 }
 0x2cb   : > { %v6213_v63 = vpop.f32.mrb[16].mxu0  ;;  %1460 = vmax.xlane.f32.xlu0 %v1459_v62  ;;  %v6215_v1 = vpop.f32.mrb[14].mxu1  ;;  %v1463_v2 = vmax.f32 %v1462_v61, %v6203_v48 }
 0x2cc   : > { %v6218_v3 = vpop.f32.mrb[15].mxu1  ;;  %v6220_v4 = vpop.f32.mrb[17].mxu0 }
 0x2cd   : > { %v1467_v5 = vmax.f32 %v6215_v1, %v6218_v3  ;;  %v1464_v6 = vmax.f32 %v1463_v2, %v6208_v56 }
 0x2cf   : > { %v6225_v7 = vpop.f32.mrb[18].mxu0  ;;  %1465 = vmax.xlane.f32.xlu0 %v1464_v6  ;;  %v6227_v8 = vpop.f32.mrb[16].mxu1  ;;  %v1468_v9 = vmax.f32 %v1467_v5, %v6213_v63 }
 0x2d0   : > { %v6230_v10 = vpop.f32.mrb[17].mxu1  ;;  %v6232_v11 = vpop.f32.mrb[19].mxu0 }
 0x2d1   : > { %v1472_v12 = vmax.f32 %v6227_v8, %v6230_v10  ;;  %v1469_v13 = vmax.f32 %v1468_v9, %v6220_v4 }
 0x2d3   : > { %v6237_v14 = vpop.f32.mrb[20].mxu0  ;;  %1470 = vmax.xlane.f32.xlu0 %v1469_v13  ;;  %v6239_v15 = vpop.f32.mrb[18].mxu1  ;;  %v1473_v16 = vmax.f32 %v1472_v12, %v6225_v7 }
 0x2d4   : > { %v6242_v17 = vpop.f32.mrb[19].mxu1  ;;  %v6244_v18 = vpop.f32.mrb[21].mxu0 }
 0x2d5   : > { %v1477_v19 = vmax.f32 %v6239_v15, %v6242_v17  ;;  %v1474_v20 = vmax.f32 %v1473_v16, %v6232_v11 }
 0x2d7   : > { %v6249_v21 = vpop.f32.mrb[22].mxu0  ;;  %1475 = vmax.xlane.f32.xlu0 %v1474_v20  ;;  %v6251_v22 = vpop.f32.mrb[20].mxu1  ;;  %v1478_v23 = vmax.f32 %v1477_v19, %v6237_v14 }
 0x2d8   : > { %v6254_v24 = vpop.f32.mrb[21].mxu1  ;;  %v6256_v25 = vpop.f32.mrb[23].mxu0 }
 0x2d9   : > { %v1482_v26 = vmax.f32 %v6251_v22, %v6254_v24  ;;  %v1479_v27 = vmax.f32 %v1478_v23, %v6244_v18 }
 0x2db   : > { %v6261_v28 = vpop.f32.mrb[24].mxu0  ;;  %1480 = vmax.xlane.f32.xlu0 %v1479_v27  ;;  %v6263_v38 = vpop.f32.mrb[22].mxu1  ;;  %v1483_v49 = vmax.f32 %v1482_v26, %v6249_v21 }
 0x2dc   : > { %v6266_v61 = vpop.f32.mrb[23].mxu1  ;;  %v6268_v62 = vpop.f32.mrb[25].mxu0 }
 0x2dd   : > { %v1487_v2 = vmax.f32 %v6263_v38, %v6266_v61  ;;  %v1484_v5 = vmax.f32 %v1483_v49, %v6256_v25 }
 0x2df   : > { %1485 = vmax.xlane.f32.xlu0 %v1484_v5  ;;  %v6273_v6 = vpop.f32.mrb[24].mxu1  ;;  %v6275_v9 = vpop.f32.mrb[26].mxu0  ;;  %v1488_v12 = vmax.f32 %v1487_v2, %v6261_v28 }
 0x2e0   : > { %v6278_v13 = vpop.f32.mrb[25].mxu1  ;;  %v6280_v16 = vpop.f32.mrb[27].mxu0 }
 0x2e1   : > { %v1492_v19 = vmax.f32 %v6273_v6, %v6278_v13  ;;  %v1489_v20 = vmax.f32 %v1488_v12, %v6268_v62 }
 0x2e3   : > { %v1493_v23 = vmax.f32 %v1492_v19, %v6275_v9  ;;  %1490 = vmax.xlane.f32.xlu0 %v1489_v20  ;;  %v6286_v26 = vpop.f32.mrb[26].mxu1  ;;  %v6288_v27 = vpop.f32.mrb[28].mxu0 }
 0x2e4   : > { %v6290_v49 = vpop.f32.mrb[27].mxu1  ;;  %v6292_v5 = vpop.f32.mrb[29].mxu0 }
 0x2e5   : > { %v1497_v2 = vmax.f32 %v6286_v26, %v6290_v49  ;;  %v1494_v0 = vmax.f32 %v1493_v23, %v6280_v16 }
 0x2e7   : > { %v1498_v60 = vmax.f32 %v1497_v2, %v6288_v27  ;;  %1495 = vmax.xlane.f32.xlu0 %v1494_v0  ;;  %v6298_v12 = vpop.f32.mrb[28].mxu1  ;;  %v6300_v19 = vpop.f32.mrb[30].mxu0 }
 0x2e8   : > { %v6302_v20 = vpop.f32.mrb[29].mxu1  ;;  %v6304_v59 = vpop.f32.mrb[31].mxu0 }
 0x2e9   : > { %v1502_v45 = vmax.f32 %v6298_v12, %v6302_v20  ;;  %v1499_v44 = vmax.f32 %v1498_v60, %v6292_v5 }
 0x2eb   : > { %v1503_v58 = vmax.f32 %v1502_v45, %v6300_v19  ;;  %1500 = vmax.xlane.f32.xlu1 %v1499_v44  ;;  %v6310_v23 = vpop.f32.mrb[30].mxu1  ;;  %v6312_v2 = vpop.f32.mrb[32].mxu0 }
 0x2ec   : > { %v6314_v0 = vpop.f32.mrb[31].mxu1  ;;  %v6316_v57 = vpop.f32.mrb[33].mxu0 }
 0x2ed   : > { %v1507_v43 = vmax.f32 %v6310_v23, %v6314_v0  ;;  %v1504_v42 = vmax.f32 %v1503_v58, %v6304_v59 }
 0x2ef   : > { %v1508_v37 = vmax.f32 %v1507_v43, %v6312_v2  ;;  %1505 = vmax.xlane.f32.xlu0 %v1504_v42  ;;  %v6322_v60 = vpop.f32.mrb[32].mxu1  ;;  %v6324_v45 = vpop.f32.mrb[34].mxu0 }
 0x2f0   : > { %v6326_v44 = vpop.f32.mrb[33].mxu1  ;;  %v6328_v33 = vpop.f32.mrb[35].mxu0 }
 0x2f1   : > { %9592 = vst [vmem:[#allocation45_spill] sm:$0xff] %v6328_v33  ;;  %v1512_v54 = vmax.f32 %v6322_v60, %v6326_v44  ;;  %v1509_v40 = vmax.f32 %v1508_v37, %v6316_v57 }
 0x2f3   : > { %v1513_v39 = vmax.f32 %v1512_v54, %v6324_v45  ;;  %1510 = vmax.xlane.f32.xlu0 %v1509_v40  ;;  %v6334_v58 = vpop.f32.mrb[34].mxu1  ;;  %v6336_v43 = vpop.f32.mrb[36].mxu0 }
 0x2f4   : > { %9593 = vst [vmem:[#allocation46_spill] sm:$0xff] %v6334_v58  ;;  %9594 = vst [vmem:[#allocation47_spill] sm:$0xff] %v6336_v43  ;;  %v6338_v42 = vpop.f32.mrb[35].mxu1  ;;  %v6340_v32 = vpop.f32.mrb[37].mxu0 }
 0x2f5   : > { %9595 = vst [vmem:[#allocation48_spill] sm:$0xff] %v6338_v42  ;;  %9596 = vst [vmem:[#allocation49_spill] sm:$0xff] %v6340_v32  ;;  %v1517_v55 = vmax.f32 %v6334_v58, %v6338_v42  ;;  %v1514_v41 = vmax.f32 %v1513_v39, %v6328_v33 }
 0x2f7   : > { %v1518_v52 = vmax.f32 %v1517_v55, %v6336_v43  ;;  %1515 = vmax.xlane.f32.xlu0 %v1514_v41  ;;  %v6346_v37 = vpop.f32.mrb[36].mxu1  ;;  %v6348_v54 = vpop.f32.mrb[38].mxu0 }
 0x2f8   : > { %9597 = vst [vmem:[#allocation50_spill] sm:$0xff] %v6346_v37  ;;  %9598 = vst [vmem:[#allocation51_spill] sm:$0xff] %v6348_v54  ;;  %v6350_v40 = vpop.f32.mrb[37].mxu1  ;;  %v6352_v34 = vpop.f32.mrb[39].mxu0 }
 0x2f9   : > { %9599 = vst [vmem:[#allocation52_spill] sm:$0xff] %v6350_v40  ;;  %9600 = vst [vmem:[#allocation53_spill] sm:$0xff] %v6352_v34  ;;  %v1522_v53 = vmax.f32 %v6346_v37, %v6350_v40  ;;  %v1519_v35 = vmax.f32 %v1518_v52, %v6340_v32 }
 0x2fb   : > { %v1523_v47 = vmax.f32 %v1522_v53, %v6348_v54  ;;  %1520 = vmax.xlane.f32.xlu0 %v1519_v35  ;;  %v6358_v39 = vpop.f32.mrb[38].mxu1  ;;  %v6360_v55 = vpop.f32.mrb[40].mxu0 }
 0x2fc   : > { %9601 = vst [vmem:[#allocation54_spill] sm:$0xff] %v6358_v39  ;;  %9602 = vst [vmem:[#allocation55_spill] sm:$0xff] %v6360_v55  ;;  %v6362_v41 = vpop.f32.mrb[39].mxu1  ;;  %v6364_v50 = vpop.f32.mrb[41].mxu0 }
 0x2fd   : > { %9603 = vst [vmem:[#allocation56_spill] sm:$0xff] %v6362_v41  ;;  %9604 = vst [vmem:[#allocation57_spill] sm:$0xff] %v6364_v50  ;;  %v1527_v43 = vmax.f32 %v6358_v39, %v6362_v41  ;;  %v1524_v42 = vmax.f32 %v1523_v47, %v6352_v34 }
 0x2ff   : > { %v1528_v40 = vmax.f32 %v1527_v43, %v6360_v55  ;;  %1525 = vmax.xlane.f32.xlu0 %v1524_v42  ;;  %v6370_v52 = vpop.f32.mrb[40].mxu1  ;;  %v6372_v53 = vpop.f32.mrb[42].mxu0 }
 0x300   : > { %9605 = vst [vmem:[#allocation58_spill] sm:$0xff] %v6370_v52  ;;  %9606 = vst [vmem:[#allocation59_spill] sm:$0xff] %v6372_v53  ;;  %v6374_v35 = vpop.f32.mrb[41].mxu1  ;;  %v6376_v54 = vpop.f32.mrb[43].mxu0 }
 0x301   : > { %9607 = vst [vmem:[#allocation60_spill] sm:$0xff] %v6374_v35  ;;  %9608 = vst [vmem:[#allocation61_spill] sm:$0xff] %v6376_v54  ;;  %v1532_v37 = vmax.f32 %v6370_v52, %v6374_v35  ;;  %v1529_v32 = vmax.f32 %v1528_v40, %v6364_v50 }
 0x303   : > { %v1533_v41 = vmax.f32 %v1532_v37, %v6372_v53  ;;  %1530 = vmax.xlane.f32.xlu0 %v1529_v32  ;;  %v6382_v47 = vpop.f32.mrb[42].mxu1  ;;  %v6384_v43 = vpop.f32.mrb[44].mxu0 }
 0x304   : > { %9609 = vst [vmem:[#allocation62_spill] sm:$0xff] %v6382_v47  ;;  %9610 = vst [vmem:[#allocation63_spill] sm:$0xff] %v6384_v43  ;;  %v6386_v42 = vpop.f32.mrb[43].mxu1  ;;  %v6388_v55 = vpop.f32.mrb[45].mxu0 }
 0x305   : > { %9611 = vst [vmem:[#allocation64_spill] sm:$0xff] %v6386_v42  ;;  %9612 = vst [vmem:[#allocation65_spill] sm:$0xff] %v6388_v55  ;;  %v1537_v39 = vmax.f32 %v6382_v47, %v6386_v42  ;;  %v1534_v34 = vmax.f32 %v1533_v41, %v6376_v54 }
 0x307   : > { %v1538_v35 = vmax.f32 %v1537_v39, %v6384_v43  ;;  %1535 = vmax.xlane.f32.xlu0 %v1534_v34  ;;  %v6394_v40 = vpop.f32.mrb[44].mxu1  ;;  %v6396_v37 = vpop.f32.mrb[46].mxu0 }
 0x308   : > { %9613 = vst [vmem:[#allocation66_spill] sm:$0xff] %v6394_v40  ;;  %9614 = vst [vmem:[#allocation67_spill] sm:$0xff] %v6396_v37  ;;  %v6398_v32 = vpop.f32.mrb[45].mxu1  ;;  %v6400_v53 = vpop.f32.mrb[47].mxu0 }
 0x309   : > { %9615 = vst [vmem:[#allocation68_spill] sm:$0xff] %v6398_v32  ;;  %9616 = vst [vmem:[#allocation69_spill] sm:$0xff] %v6400_v53  ;;  %v1542_v52 = vmax.f32 %v6394_v40, %v6398_v32  ;;  %v1539_v50 = vmax.f32 %v1538_v35, %v6388_v55 }
 0x30b   : > { %v1543_v42 = vmax.f32 %v1542_v52, %v6396_v37  ;;  %1540 = vmax.xlane.f32.xlu0 %v1539_v50  ;;  %v6406_v41 = vpop.f32.mrb[46].mxu1  ;;  %v6408_v39 = vpop.f32.mrb[48].mxu0 }
 0x30c   : > { %9617 = vst [vmem:[#allocation70_spill] sm:$0xff] %v6406_v41  ;;  %9618 = vst [vmem:[#allocation71_spill] sm:$0xff] %v6408_v39  ;;  %v6410_v34 = vpop.f32.mrb[47].mxu1  ;;  %v6412_v43 = vpop.f32.mrb[49].mxu0 }
 0x30d   : > { %9619 = vst [vmem:[#allocation72_spill] sm:$0xff] %v6410_v34  ;;  %9620 = vst [vmem:[#allocation73_spill] sm:$0xff] %v6412_v43  ;;  %v1547_v47 = vmax.f32 %v6406_v41, %v6410_v34  ;;  %v1544_v54 = vmax.f32 %v1543_v42, %v6400_v53 }
 0x30f   : > { %v1548_v32 = vmax.f32 %v1547_v47, %v6408_v39  ;;  %1545 = vmax.xlane.f32.xlu0 %v1544_v54  ;;  %v6418_v35 = vpop.f32.mrb[48].mxu1  ;;  %v6420_v52 = vpop.f32.mrb[50].mxu0 }
 0x310   : > { %9621 = vst [vmem:[#allocation74_spill] sm:$0xff] %v6418_v35  ;;  %9622 = vst [vmem:[#allocation75_spill] sm:$0xff] %v6420_v52  ;;  %v6422_v50 = vpop.f32.mrb[49].mxu1  ;;  %v6424_v37 = vpop.f32.mrb[51].mxu0 }
 0x311   : > { %9623 = vst [vmem:[#allocation76_spill] sm:$0xff] %v6422_v50  ;;  %9624 = vst [vmem:[#allocation77_spill] sm:$0xff] %v6424_v37  ;;  %v1552_v40 = vmax.f32 %v6418_v35, %v6422_v50  ;;  %v1549_v55 = vmax.f32 %v1548_v32, %v6412_v43 }
 0x313   : > { %v1553_v34 = vmax.f32 %v1552_v40, %v6420_v52  ;;  %1550 = vmax.xlane.f32.xlu0 %v1549_v55  ;;  %v6430_v42 = vpop.f32.mrb[50].mxu1  ;;  %v6432_v47 = vpop.f32.mrb[52].mxu0 }
 0x314   : > { %9625 = vst [vmem:[#allocation78_spill] sm:$0xff] %v6430_v42  ;;  %9626 = vst [vmem:[#allocation79_spill] sm:$0xff] %v6432_v47  ;;  %v6434_v54 = vpop.f32.mrb[51].mxu1  ;;  %v6436_v39 = vpop.f32.mrb[53].mxu0 }
 0x315   : > { %9627 = vst [vmem:[#allocation80_spill] sm:$0xff] %v6434_v54  ;;  %9628 = vst [vmem:[#allocation81_spill] sm:$0xff] %v6436_v39  ;;  %v1557_v41 = vmax.f32 %v6430_v42, %v6434_v54  ;;  %v1554_v53 = vmax.f32 %v1553_v34, %v6424_v37 }
 0x317   : > { %v1558_v50 = vmax.f32 %v1557_v41, %v6432_v47  ;;  %1555 = vmax.xlane.f32.xlu0 %v1554_v53  ;;  %v6442_v32 = vpop.f32.mrb[52].mxu1  ;;  %v6444_v40 = vpop.f32.mrb[54].mxu0 }
 0x318   : > { %9629 = vst [vmem:[#allocation82_spill] sm:$0xff] %v6442_v32  ;;  %9630 = vst [vmem:[#allocation83_spill] sm:$0xff] %v6444_v40  ;;  %v6446_v55 = vpop.f32.mrb[53].mxu1  ;;  %v6448_v52 = vpop.f32.mrb[55].mxu0 }
 0x319   : > { %9631 = vst [vmem:[#allocation84_spill] sm:$0xff] %v6446_v55  ;;  %9632 = vst [vmem:[#allocation85_spill] sm:$0xff] %v6448_v52  ;;  %v1562_v35 = vmax.f32 %v6442_v32, %v6446_v55  ;;  %v1559_v43 = vmax.f32 %v1558_v50, %v6436_v39 }
 0x31b   : > { %v1563_v54 = vmax.f32 %v1562_v35, %v6444_v40  ;;  %1560 = vmax.xlane.f32.xlu0 %v1559_v43  ;;  %v6454_v34 = vpop.f32.mrb[54].mxu1  ;;  %v6456_v41 = vpop.f32.mrb[56].mxu0 }
 0x31c   : > { %9633 = vst [vmem:[#allocation86_spill] sm:$0xff] %v6454_v34  ;;  %9634 = vst [vmem:[#allocation87_spill] sm:$0xff] %v6456_v41  ;;  %v6458_v53 = vpop.f32.mrb[55].mxu1  ;;  %v6460_v47 = vpop.f32.mrb[57].mxu0 }
 0x31d   : > { %9635 = vst [vmem:[#allocation88_spill] sm:$0xff] %v6458_v53  ;;  %9636 = vst [vmem:[#allocation89_spill] sm:$0xff] %v6460_v47  ;;  %v1567_v42 = vmax.f32 %v6454_v34, %v6458_v53  ;;  %v1564_v37 = vmax.f32 %v1563_v54, %v6448_v52 }
 0x31f   : > { %v1568_v55 = vmax.f32 %v1567_v42, %v6456_v41  ;;  %1565 = vmax.xlane.f32.xlu0 %v1564_v37  ;;  %v6466_v50 = vpop.f32.mrb[56].mxu1  ;;  %v6468_v35 = vpop.f32.mrb[58].mxu0 }
 0x320   : > { %9637 = vst [vmem:[#allocation90_spill] sm:$0xff] %v6466_v50  ;;  %9638 = vst [vmem:[#allocation91_spill] sm:$0xff] %v6468_v35  ;;  %v6470_v43 = vpop.f32.mrb[57].mxu1  ;;  %v6472_v40 = vpop.f32.mrb[59].mxu0 }
 0x321   : > { %9639 = vst [vmem:[#allocation92_spill] sm:$0xff] %v6470_v43  ;;  %9640 = vst [vmem:[#allocation93_spill] sm:$0xff] %v6472_v40  ;;  %v1572_v32 = vmax.f32 %v6466_v50, %v6470_v43  ;;  %v1569_v39 = vmax.f32 %v1568_v55, %v6460_v47 }
 0x323   : > { %v1573_v53 = vmax.f32 %v1572_v32, %v6468_v35  ;;  %1570 = vmax.xlane.f32.xlu0 %v1569_v39  ;;  %v6478_v54 = vpop.f32.mrb[58].mxu1  ;;  %v6480_v42 = vpop.f32.mrb[60].mxu0 }
 0x324   : > { %9641 = vst [vmem:[#allocation94_spill] sm:$0xff] %v6478_v54  ;;  %9642 = vst [vmem:[#allocation95_spill] sm:$0xff] %v6480_v42  ;;  %v6482_v37 = vpop.f32.mrb[59].mxu1  ;;  %v6484_v41 = vpop.f32.mrb[61].mxu0 }
 0x325   : > { %9643 = vst [vmem:[#allocation96_spill] sm:$0xff] %v6482_v37  ;;  %9644 = vst [vmem:[#allocation97_spill] sm:$0xff] %v6484_v41  ;;  %v1577_v34 = vmax.f32 %v6478_v54, %v6482_v37  ;;  %v1574_v52 = vmax.f32 %v1573_v53, %v6472_v40 }
 0x327   : > { %v1578_v43 = vmax.f32 %v1577_v34, %v6480_v42  ;;  %1575 = vmax.xlane.f32.xlu0 %v1574_v52  ;;  %v6490_v55 = vpop.f32.mrb[60].mxu1  ;;  %v6492_v32 = vpop.f32.mrb[62].mxu0 }
 0x328   : > { %9645 = vst [vmem:[#allocation98_spill] sm:$0xff] %v6490_v55  ;;  %9646 = vst [vmem:[#allocation99_spill] sm:$0xff] %v6492_v32  ;;  %v6494_v39 = vpop.f32.mrb[61].mxu1  ;;  %v6496_v35 = vpop.f32.mrb[63].mxu0 }
 0x329   : > { %9647 = vst [vmem:[#allocation100_spill] sm:$0xff] %v6494_v39  ;;  %9648 = vst [vmem:[#allocation101_spill] sm:$0xff] %v6496_v35  ;;  %v1582_v50 = vmax.f32 %v6490_v55, %v6494_v39  ;;  %v1579_v47 = vmax.f32 %v1578_v43, %v6484_v41 }
 0x32b   : > { %v1583_v37 = vmax.f32 %v1582_v50, %v6492_v32  ;;  %1580 = vmax.xlane.f32.xlu0 %v1579_v47  ;;  %v6502_v53 = vpop.f32.mrb[62].mxu1  ;;  %v6504_v34 = vpop.f32.mrb[64].mxu0 }
 0x32c   : > { %9649 = vst [vmem:[#allocation102_spill] sm:$0xff] %v6502_v53  ;;  %9650 = vst [vmem:[#allocation103_spill] sm:$0xff] %v6504_v34  ;;  %v6506_v52 = vpop.f32.mrb[63].mxu1  ;;  %v6508_v42 = vpop.f32.mrb[65].mxu0 }
 0x32d   : > { %9651 = vst [vmem:[#allocation104_spill] sm:$0xff] %v6506_v52  ;;  %9652 = vst [vmem:[#allocation105_spill] sm:$0xff] %v6508_v42  ;;  %v1587_v54 = vmax.f32 %v6502_v53, %v6506_v52  ;;  %v1584_v40 = vmax.f32 %v1583_v37, %v6496_v35 }
 0x32f   : > { %v1588_v39 = vmax.f32 %v1587_v54, %v6504_v34  ;;  %1585 = vmax.xlane.f32.xlu0 %v1584_v40  ;;  %v6514_v43 = vpop.f32.mrb[64].mxu1  ;;  %v6516_v50 = vpop.f32.mrb[66].mxu0 }
 0x330   : > { %9653 = vst [vmem:[#allocation106_spill] sm:$0xff] %v6514_v43  ;;  %9654 = vst [vmem:[#allocation107_spill] sm:$0xff] %v6516_v50  ;;  %v6518_v47 = vpop.f32.mrb[65].mxu1  ;;  %v6520_v32 = vpop.f32.mrb[67].mxu0 }
 0x331   : > { %9655 = vst [vmem:[#allocation108_spill] sm:$0xff] %v6518_v47  ;;  %9656 = vst [vmem:[#allocation109_spill] sm:$0xff] %v6520_v32  ;;  %v1592_v55 = vmax.f32 %v6514_v43, %v6518_v47  ;;  %v1589_v41 = vmax.f32 %v1588_v39, %v6508_v42 }
 0x333   : > { %v1593_v52 = vmax.f32 %v1592_v55, %v6516_v50  ;;  %1590 = vmax.xlane.f32.xlu0 %v1589_v41  ;;  %v6526_v37 = vpop.f32.mrb[66].mxu1  ;;  %v6528_v54 = vpop.f32.mrb[68].mxu0 }
 0x334   : > { %9657 = vst [vmem:[#allocation110_spill] sm:$0xff] %v6526_v37  ;;  %9658 = vst [vmem:[#allocation111_spill] sm:$0xff] %v6528_v54  ;;  %v6530_v40 = vpop.f32.mrb[67].mxu1  ;;  %v6532_v34 = vpop.f32.mrb[69].mxu0 }
 0x335   : > { %9659 = vst [vmem:[#allocation112_spill] sm:$0xff] %v6530_v40  ;;  %9660 = vst [vmem:[#allocation113_spill] sm:$0xff] %v6532_v34  ;;  %v1597_v53 = vmax.f32 %v6526_v37, %v6530_v40  ;;  %v1594_v35 = vmax.f32 %v1593_v52, %v6520_v32 }
 0x337   : > { %v1598_v47 = vmax.f32 %v1597_v53, %v6528_v54  ;;  %1595 = vmax.xlane.f32.xlu0 %v1594_v35  ;;  %v6538_v39 = vpop.f32.mrb[68].mxu1  ;;  %v6540_v55 = vpop.f32.mrb[70].mxu0 }
 0x338   : > { %9661 = vst [vmem:[#allocation114_spill] sm:$0xff] %v6538_v39  ;;  %9662 = vst [vmem:[#allocation115_spill] sm:$0xff] %v6540_v55  ;;  %v6542_v41 = vpop.f32.mrb[69].mxu1  ;;  %v6544_v50 = vpop.f32.mrb[71].mxu0 }
 0x339   : > { %9663 = vst [vmem:[#allocation116_spill] sm:$0xff] %v6542_v41  ;;  %9664 = vst [vmem:[#allocation117_spill] sm:$0xff] %v6544_v50  ;;  %v1599_v43 = vmax.f32 %v1598_v47, %v6532_v34  ;;  %v1602_v42 = vmax.f32 %v6538_v39, %v6542_v41 }
 0x33b   : > { %1600 = vmax.xlane.f32.xlu1 %v1599_v43  ;;  %v6550_v40 = vmax.f32 %v1602_v42, %v6540_v55  ;;  %v6552_v52 = vpop.f32.mrb[70].mxu1  ;;  %v6554_v35 = vpop.f32.mrb[72].mxu0 }
 0x33c   : > { %9666 = vst [vmem:[#allocation119_spill] sm:$0xff] %v6552_v52  ;;  %9667 = vst [vmem:[#allocation120_spill] sm:$0xff] %v6554_v35  ;;  %v6556_v53 = vpop.f32.mrb[71].mxu1  ;;  %v6558_v54 = vpop.f32.mrb[73].mxu0 }
 0x33d   : > { %9665 = vst [vmem:[#allocation118_spill] sm:$0xff] %v6550_v40  ;;  %9668 = vst [vmem:[#allocation121_spill] sm:$0xff] %v6556_v53  ;;  %v1607_v37 = vmax.f32 %v6552_v52, %v6556_v53 }
 0x33f   : > { %v6565_v41 = vmax.f32 %v1607_v37, %v6554_v35  ;;  %v6567_v43 = vpop.f32.mrb[72].mxu1  ;;  %v6569_v42 = vpop.f32.mrb[74].mxu0 }
 0x340   : > { %9669 = vst [vmem:[#allocation122_spill] sm:$0xff] %v6567_v43  ;;  %9670 = vst [vmem:[#allocation123_spill] sm:$0xff] %v6569_v42  ;;  %v6571_v55 = vpop.f32.mrb[73].mxu1  ;;  %v6573_v39 = vpop.f32.mrb[75].mxu0 }
 0x341   : > { %9671 = vst [vmem:[#allocation124_spill] sm:$0xff] %v6571_v55  ;;  %9672 = vst [vmem:[#allocation125_spill] sm:$0xff] %v6573_v39  ;;  %v1612_v34 = vmax.f32 %v6567_v43, %v6571_v55 }
 0x343   : > { %v6580_v52 = vmax.f32 %v1612_v34, %v6569_v42 }
 0x358   : > { %v1461_v47 = vpop.xlane.xlu0 %1460 }
 0x359   : > { %v1617_v35 = vsub.f32 %v6191_v29, %v1461_v47  ;;  %v1618_v32 = vsub.f32 %v6195_v31, %v1461_v47  ;;  %v1619_v58 = vsub.f32 %v6193_v30, %v1461_v47  ;;  %v1620_v50 = vsub.f32 %v6197_v36, %v1461_v47 }
 0x35b   : > { %v1745_v40 = vmul.f32 1.442695, %v1617_v35  ;;  %v1747_v55 = vmul.f32 1.442695, %v1618_v32  ;;  %v1749_v43 = vmul.f32 1.442695, %v1619_v58 }
 0x35c   : > { %v1751_v33 = vmul.f32 1.442695, %v1620_v50  ;;  %v1466_v53 = vpop.xlane.xlu0 %1465 }
 0x35d   : > { %4766 = vpow2.f32 %v1745_v40  ;;  %v1621_v34 = vsub.f32 %v6201_v46, %v1466_v53  ;;  %v1622_v42 = vsub.f32 %v6206_v51, %v1466_v53  ;;  %v1623_v37 = vsub.f32 %v6203_v48, %v1466_v53 }
 0x35e   : > { %4768 = vpow2.f32 %v1747_v55  ;;  %v1624_v29 = vsub.f32 %v6208_v56, %v1466_v53 }
 0x35f   : > { %4770 = vpow2.f32 %v1749_v43  ;;  %v1753_v31 = vmul.f32 1.442695, %v1621_v34  ;;  %v1755_v30 = vmul.f32 1.442695, %v1622_v42  ;;  %v1757_v39 = vmul.f32 1.442695, %v1623_v37 }
 0x360   : > { %4772 = vpow2.f32 %v1751_v33  ;;  %v1759_v36 = vmul.f32 1.442695, %v1624_v29  ;;  %v1471_v32 = vpop.xlane.xlu0 %1470 }
 0x361   : > { %4774 = vpow2.f32 %v1753_v31  ;;  %v1625_v58 = vsub.f32 %v6215_v1, %v1471_v32  ;;  %v1626_v50 = vsub.f32 %v6218_v3, %v1471_v32  ;;  %v1627_v46 = vsub.f32 %v6213_v63, %v1471_v32 }
 0x362   : > { %4776 = vpow2.f32 %v1755_v30  ;;  %v1628_v48 = vsub.f32 %v6220_v4, %v1471_v32 }
 0x363   : > { %4778 = vpow2.f32 %v1757_v39  ;;  %v1761_v51 = vmul.f32 1.442695, %v1625_v58  ;;  %v1763_v56 = vmul.f32 1.442695, %v1626_v50  ;;  %v1765_v40 = vmul.f32 1.442695, %v1627_v46 }
 0x364   : > { %4780 = vpow2.f32 %v1759_v36  ;;  %v1767_v55 = vmul.f32 1.442695, %v1628_v48  ;;  %v1476_v35 = vpop.xlane.xlu0 %1475 }
 0x365   : > { %4782 = vpow2.f32 %v1761_v51  ;;  %v1629_v33 = vsub.f32 %v6227_v8, %v1476_v35  ;;  %v1630_v53 = vsub.f32 %v6230_v10, %v1476_v35  ;;  %v1631_v1 = vsub.f32 %v6225_v7, %v1476_v35 }
 0x366   : > { %4784 = vpow2.f32 %v1763_v56  ;;  %v1632_v63 = vsub.f32 %v6232_v11, %v1476_v35 }
 0x367   : > { %v6600_v3 = vpop.eup %4766  ;;  %4786 = vpow2.f32 %v1765_v40  ;;  %v1769_v4 = vmul.f32 1.442695, %v1629_v33  ;;  %v1771_v39 = vmul.f32 1.442695, %v1630_v53  ;;  %v1773_v47 = vmul.f32 1.442695, %v1631_v1 }
 0x368   : > { %v6602_v43 = vpop.eup %4768  ;;  %4788 = vpow2.f32 %v1767_v55  ;;  %v1775_v42 = vmul.f32 1.442695, %v1632_v63  ;;  %v1481_v37 = vpop.xlane.xlu0 %1480 }
 0x369   : > { %v6604_v34 = vpop.eup %4770  ;;  %4790 = vpow2.f32 %v1769_v4  ;;  %v1633_v8 = vsub.f32 %v6239_v15, %v1481_v37  ;;  %v1634_v7 = vsub.f32 %v6242_v17, %v1481_v37  ;;  %v1635_v10 = vsub.f32 %v6237_v14, %v1481_v37 }
 0x36a   : > { %v6609_v11 = vpop.eup %4772  ;;  %4792 = vpow2.f32 %v1771_v39  ;;  %v1636_v29 = vsub.f32 %v6244_v18, %v1481_v37  ;;  %v2001_v31 = vadd.f32 %v6602_v43, %v6600_v3 }
 0x36b   : > { %v6614_v30 = vpop.eup %4774  ;;  %4794 = vpow2.f32 %v1773_v47  ;;  %v1777_v36 = vmul.f32 1.442695, %v1633_v8  ;;  %v1779_v32 = vmul.f32 1.442695, %v1634_v7  ;;  %v1781_v58 = vmul.f32 1.442695, %v1635_v10 }
 0x36c   : > { %v6616_v50 = vpop.eup %4776  ;;  %4796 = vpow2.f32 %v1775_v42  ;;  %v1783_v15 = vmul.f32 1.442695, %v1636_v29  ;;  %v1486_v17 = vpop.xlane.xlu0 %1485  ;;  %v2002_v14 = vadd.f32 %v6604_v34, %v2001_v31 }
 0x36d   : > { %v6619_v46 = vpop.eup %4778  ;;  %4798 = vpow2.f32 %v1777_v36  ;;  %v1637_v18 = vsub.f32 %v6251_v22, %v1486_v17  ;;  %v1638_v48 = vsub.f32 %v6254_v24, %v1486_v17  ;;  %v1639_v51 = vsub.f32 %v6249_v21, %v1486_v17 }
 0x36e   : > { %v6624_v56 = vpop.eup %4780  ;;  %4800 = vpow2.f32 %v1779_v32  ;;  %v1640_v40 = vsub.f32 %v6256_v25, %v1486_v17  ;;  %v2003_v55 = vadd.f32 %v6609_v11, %v2002_v14  ;;  %v2006_v35 = vadd.f32 %v6616_v50, %v6614_v30 }
 0x36f   : > { %v6630_v33 = vpop.eup %4782  ;;  %4802 = vpow2.f32 %v1781_v58  ;;  %v1785_v53 = vmul.f32 1.442695, %v1637_v18  ;;  %v1787_v1 = vmul.f32 1.442695, %v1638_v48  ;;  %v1789_v22 = vmul.f32 1.442695, %v1639_v51 }
 0x370   : > { %v6632_v63 = vpop.eup %4784  ;;  %4804 = vpow2.f32 %v1783_v15  ;;  %v1791_v21 = vmul.f32 1.442695, %v1640_v40  ;;  %2004 = vadd.xlane.f32.xlu0 %v2003_v55  ;;  %v1491_v24 = vpop.xlane.xlu0 %1490  ;;  %v2007_v4 = vadd.f32 %v6619_v46, %v2006_v35 }
 0x371   : > { %v6635_v25 = vpop.eup %4786  ;;  %4806 = vpow2.f32 %v1785_v53  ;;  %v1641_v39 = vsub.f32 %v6263_v38, %v1491_v24  ;;  %v1642_v47 = vsub.f32 %v6266_v61, %v1491_v24  ;;  %v1643_v42 = vsub.f32 %v6261_v28, %v1491_v24 }
 0x372   : > { %v6640_v37 = vpop.eup %4788  ;;  %4808 = vpow2.f32 %v1787_v1  ;;  %v1644_v8 = vsub.f32 %v6268_v62, %v1491_v24  ;;  %v2008_v7 = vadd.f32 %v6624_v56, %v2007_v4  ;;  %v2011_v10 = vadd.f32 %v6632_v63, %v6630_v33 }
 0x373   : > { %v6646_v29 = vpop.eup %4790  ;;  %4810 = vpow2.f32 %v1789_v22  ;;  %v1793_v31 = vmul.f32 1.442695, %v1641_v39  ;;  %v1795_v36 = vmul.f32 1.442695, %v1642_v47  ;;  %v1797_v38 = vmul.f32 1.442695, %v1643_v42 }
 0x374   : > { %v6648_v32 = vpop.eup %4792  ;;  %4812 = vpow2.f32 %v1791_v21  ;;  %v1799_v28 = vmul.f32 1.442695, %v1644_v8  ;;  %2009 = vadd.xlane.f32.xlu0 %v2008_v7  ;;  %v1496_v61 = vpop.xlane.xlu0 %1495  ;;  %v2012_v58 = vadd.f32 %v6635_v25, %v2011_v10 }
 0x375   : > { %v6651_v62 = vpop.eup %4794  ;;  %4814 = vpow2.f32 %v1793_v31  ;;  %v1645_v15 = vsub.f32 %v6273_v6, %v1496_v61  ;;  %v1646_v17 = vsub.f32 %v6278_v13, %v1496_v61  ;;  %v1647_v14 = vsub.f32 %v6275_v9, %v1496_v61 }
 0x376   : > { %v6656_v18 = vpop.eup %4796  ;;  %4816 = vpow2.f32 %v1795_v36  ;;  %v1648_v48 = vsub.f32 %v6280_v16, %v1496_v61  ;;  %v2013_v51 = vadd.f32 %v6640_v37, %v2012_v58  ;;  %v2016_v40 = vadd.f32 %v6648_v32, %v6646_v29 }
 0x377   : > { %v6662_v55 = vpop.eup %4798  ;;  %4818 = vpow2.f32 %v1797_v38  ;;  %v1801_v35 = vmul.f32 1.442695, %v1645_v15  ;;  %v1803_v53 = vmul.f32 1.442695, %v1646_v17  ;;  %v1805_v6 = vmul.f32 1.442695, %v1647_v14 }
 0x378   : > { %v6664_v1 = vpop.eup %4800  ;;  %4820 = vpow2.f32 %v1799_v28  ;;  %v1807_v9 = vmul.f32 1.442695, %v1648_v48  ;;  %2014 = vadd.xlane.f32.xlu0 %v2013_v51  ;;  %v1501_v13 = vpop.xlane.xlu1 %1500  ;;  %v2017_v22 = vadd.f32 %v6651_v62, %v2016_v40 }
 0x379   : > { %v6667_v16 = vpop.eup %4802  ;;  %4822 = vpow2.f32 %v1801_v35  ;;  %v1649_v21 = vsub.f32 %v6286_v26, %v1501_v13  ;;  %v1650_v24 = vsub.f32 %v6290_v49, %v1501_v13  ;;  %v1651_v4 = vsub.f32 %v6288_v27, %v1501_v13 }
 0x37a   : > { %v6672_v39 = vpop.eup %4804  ;;  %4824 = vpow2.f32 %v1803_v53  ;;  %v1652_v47 = vsub.f32 %v6292_v5, %v1501_v13  ;;  %v2018_v42 = vadd.f32 %v6656_v18, %v2017_v22  ;;  %v2021_v8 = vadd.f32 %v6664_v1, %v6662_v55 }
 0x37b   : > { %v6678_v7 = vpop.eup %4806  ;;  %4826 = vpow2.f32 %v1805_v6  ;;  %v1809_v10 = vmul.f32 1.442695, %v1649_v21  ;;  %v1811_v31 = vmul.f32 1.442695, %v1650_v24  ;;  %v1813_v26 = vmul.f32 1.442695, %v1651_v4 }
 0x37c   : > { %v6680_v36 = vpop.eup %4808  ;;  %4828 = vpow2.f32 %v1807_v9  ;;  %v1815_v27 = vmul.f32 1.442695, %v1652_v47  ;;  %2019 = vadd.xlane.f32.xlu0 %v2018_v42  ;;  %v1506_v49 = vpop.xlane.xlu0 %1505  ;;  %v2022_v38 = vadd.f32 %v6667_v16, %v2021_v8 }
 0x37d   : > { %v6683_v5 = vpop.eup %4810  ;;  %4830 = vpow2.f32 %v1809_v10  ;;  %v1653_v28 = vsub.f32 %v6298_v12, %v1506_v49  ;;  %v1654_v61 = vsub.f32 %v6302_v20, %v1506_v49  ;;  %v1655_v58 = vsub.f32 %v6300_v19, %v1506_v49 }
 0x37e   : > { %v6688_v15 = vpop.eup %4812  ;;  %4832 = vpow2.f32 %v1811_v31  ;;  %v1656_v17 = vsub.f32 %v6304_v59, %v1506_v49  ;;  %v2023_v14 = vadd.f32 %v6672_v39, %v2022_v38  ;;  %v2026_v48 = vadd.f32 %v6680_v36, %v6678_v7 }
 0x37f   : > { %v6694_v51 = vpop.eup %4814  ;;  %4834 = vpow2.f32 %v1813_v26  ;;  %v1817_v40 = vmul.f32 1.442695, %v1653_v28  ;;  %v1819_v35 = vmul.f32 1.442695, %v1654_v61  ;;  %v1821_v12 = vmul.f32 1.442695, %v1655_v58 }
 0x380   : > { %v6696_v53 = vpop.eup %4816  ;;  %4836 = vpow2.f32 %v1815_v27  ;;  %v1823_v19 = vmul.f32 1.442695, %v1656_v17  ;;  %2024 = vadd.xlane.f32.xlu0 %v2023_v14  ;;  %v1511_v20 = vpop.xlane.xlu0 %1510  ;;  %v2027_v6 = vadd.f32 %v6683_v5, %v2026_v48  ;;  %v9673_v61 = vld [vmem:[#allocation45_spill] sm:$0xff] }
 0x381   : > { %v6699_v59 = vpop.eup %4818  ;;  %4838 = vpow2.f32 %v1817_v40  ;;  %v1657_v9 = vsub.f32 %v6310_v23, %v1511_v20  ;;  %v1658_v13 = vsub.f32 %v6314_v0, %v1511_v20  ;;  %v1659_v22 = vsub.f32 %v6312_v2, %v1511_v20 }
 0x382   : > { %v6704_v21 = vpop.eup %4820  ;;  %4840 = vpow2.f32 %v1819_v35  ;;  %v1660_v24 = vsub.f32 %v6316_v57, %v1511_v20  ;;  %v2028_v4 = vadd.f32 %v6688_v15, %v2027_v6  ;;  %v2031_v47 = vadd.f32 %v6696_v53, %v6694_v51 }
 0x383   : > { %v6710_v42 = vpop.eup %4822  ;;  %4842 = vpow2.f32 %v1821_v12  ;;  %v1825_v8 = vmul.f32 1.442695, %v1657_v9  ;;  %v1827_v10 = vmul.f32 1.442695, %v1658_v13  ;;  %v1829_v23 = vmul.f32 1.442695, %v1659_v22 }
 0x384   : > { %v6712_v31 = vpop.eup %4824  ;;  %4844 = vpow2.f32 %v1823_v19  ;;  %v1831_v2 = vmul.f32 1.442695, %v1660_v24  ;;  %2029 = vadd.xlane.f32.xlu0 %v2028_v4  ;;  %v1516_v0 = vpop.xlane.xlu0 %1515  ;;  %v2032_v26 = vadd.f32 %v6699_v59, %v2031_v47  ;;  %v9675_v19 = vld [vmem:[#allocation117_spill] sm:$0xff]  ;;  %v9677_v22 = vld [vmem:[#allocation46_spill] sm:$0xff]  ;;  %v9678_v4 = vld [vmem:[#allocation48_spill] sm:$0xff] }
 0x385   : > { %v6715_v57 = vpop.eup %4826  ;;  %4846 = vpow2.f32 %v1825_v8  ;;  %v1661_v27 = vsub.f32 %v6322_v60, %v1516_v0  ;;  %v1662_v49 = vsub.f32 %v6326_v44, %v1516_v0  ;;  %v1663_v38 = vsub.f32 %v6324_v45, %v1516_v0  ;;  %v9674_v44 = vld [vmem:[#allocation118_spill] sm:$0xff]  ;;  %v9679_v8 = vld [vmem:[#allocation47_spill] sm:$0xff] }
 0x386   : > { %v6720_v28 = vpop.eup %4828  ;;  %4848 = vpow2.f32 %v1827_v10  ;;  %v1664_v58 = vsub.f32 %v9673_v61, %v1516_v0  ;;  %v2033_v17 = vadd.f32 %v6704_v21, %v2032_v26  ;;  %v2036_v14 = vadd.f32 %v6712_v31, %v6710_v42 }
 0x387   : > { %v6726_v48 = vpop.eup %4830  ;;  %4850 = vpow2.f32 %v1829_v23  ;;  %v1833_v40 = vmul.f32 1.442695, %v1661_v27  ;;  %v1835_v35 = vmul.f32 1.442695, %v1662_v49  ;;  %v1837_v60 = vmul.f32 1.442695, %v1663_v38 }
 0x388   : > { %v6728_v12 = vpop.eup %4832  ;;  %4852 = vpow2.f32 %v1831_v2  ;;  %v1839_v45 = vmul.f32 1.442695, %v1664_v58  ;;  %2034 = vadd.xlane.f32.xlu1 %v2033_v17  ;;  %v9676_v20 = vmax.f32 %v9674_v44, %v9675_v19  ;;  %v1521_v6 = vpop.xlane.xlu0 %1520  ;;  %v2037_v9 = vadd.f32 %v6715_v57, %v2036_v14  ;;  %v9680_v2 = vld [vmem:[#allocation49_spill] sm:$0xff] }
 0x389   : > { %v6734_v13 = vpop.eup %4834  ;;  %4854 = vpow2.f32 %v1833_v40  ;;  %v1665_v24 = vsub.f32 %v9677_v22, %v1521_v6  ;;  %v1666_v47 = vsub.f32 %v9678_v4, %v1521_v6  ;;  %v1667_v10 = vsub.f32 %v9679_v8, %v1521_v6 }
 0x38a   : > { %1605 = vmax.xlane.f32.xlu0 %v9676_v20  ;;  %v6739_v23 = vpop.eup %4836  ;;  %4856 = vpow2.f32 %v1835_v35  ;;  %v1668_v0 = vsub.f32 %v9680_v2, %v1521_v6  ;;  %v2038_v26 = vadd.f32 %v6720_v28, %v2037_v9  ;;  %v2041_v27 = vadd.f32 %v6728_v12, %v6726_v48  ;;  %v9684_v6 = vld [vmem:[#allocation50_spill] sm:$0xff]  ;;  %v9685_v9 = vld [vmem:[#allocation52_spill] sm:$0xff] }
 0x38b   : > { %v6745_v49 = vpop.eup %4838  ;;  %4858 = vpow2.f32 %v1837_v60  ;;  %v1841_v38 = vmul.f32 1.442695, %v1665_v24  ;;  %v1843_v61 = vmul.f32 1.442695, %v1666_v47  ;;  %v1845_v58 = vmul.f32 1.442695, %v1667_v10 }
 0x38c   : > { %9681 = vst [vmem:[#allocation45_spill] sm:$0xff] %v6745_v49  ;;  %v6747_v17 = vpop.eup %4840  ;;  %4860 = vpow2.f32 %v1839_v45  ;;  %v1847_v14 = vmul.f32 1.442695, %v1668_v0  ;;  %v9682_v40 = vmax.f32 %v6565_v41, %v6558_v54  ;;  %v1526_v35 = vpop.xlane.xlu0 %1525  ;;  %v2042_v44 = vadd.f32 %v6734_v13, %v2041_v27  ;;  %v9686_v24 = vld [vmem:[#allocation51_spill] sm:$0xff]  ;;  %v9688_v45 = vld [vmem:[#allocation53_spill] sm:$0xff] }
 0x38d   : > { %v6753_v20 = vpop.eup %4842  ;;  %4862 = vpow2.f32 %v1841_v38  ;;  %v1669_v60 = vsub.f32 %v9684_v6, %v1526_v35  ;;  %v1670_v22 = vsub.f32 %v9685_v9, %v1526_v35  ;;  %v1671_v4 = vsub.f32 %v9686_v24, %v1526_v35  ;;  %v9694_v24 = vld [vmem:[#allocation54_spill] sm:$0xff] }
 0x38e   : > { %2039 = vadd.xlane.f32.xlu0 %v2038_v26  ;;  %1610 = vmax.xlane.f32.xlu1 %v9682_v40  ;;  %9683 = vst [vmem:[#allocation118_spill] sm:$0xff] %v6753_v20  ;;  %v6758_v47 = vpop.eup %4844  ;;  %4864 = vpow2.f32 %v1843_v61  ;;  %v1672_v8 = vsub.f32 %v9688_v45, %v1526_v35  ;;  %v2043_v41 = vadd.f32 %v6739_v23, %v2042_v44  ;;  %v9691_v61 = vld [vmem:[#allocation125_spill] sm:$0xff] }
 0x38f   : > { %9687 = vst [vmem:[#allocation117_spill] sm:$0xff] %v6758_v47  ;;  %v2046_v10 = vadd.f32 %v6747_v17, %v6745_v49  ;;  %v6764_v2 = vpop.eup %4846  ;;  %4866 = vpow2.f32 %v1845_v58  ;;  %v1849_v0 = vmul.f32 1.442695, %v1669_v60  ;;  %v1851_v26 = vmul.f32 1.442695, %v1670_v22  ;;  %v9695_v60 = vld [vmem:[#allocation56_spill] sm:$0xff] }
 0x390   : > { %9689 = vst [vmem:[#allocation46_spill] sm:$0xff] %v6764_v2  ;;  %v1853_v27 = vmul.f32 1.442695, %v1671_v4  ;;  %v6766_v38 = vpop.eup %4848  ;;  %4868 = vpow2.f32 %v1847_v14  ;;  %v1855_v40 = vmul.f32 1.442695, %v1672_v8  ;;  %v9692_v6 = vmax.f32 %v6580_v52, %v9691_v61  ;;  %v1531_v35 = vpop.xlane.xlu0 %1530  ;;  %v9696_v4 = vld [vmem:[#allocation55_spill] sm:$0xff] }
 0x391   : > { %9690 = vst [vmem:[#allocation48_spill] sm:$0xff] %v6766_v38  ;;  %v2047_v44 = vadd.f32 %v6753_v20, %v2046_v10  ;;  %v6772_v9 = vpop.eup %4850  ;;  %4870 = vpow2.f32 %v1849_v0  ;;  %v1673_v58 = vsub.f32 %v9694_v24, %v1531_v35  ;;  %v1674_v22 = vsub.f32 %v9695_v60, %v1531_v35  ;;  %v9698_v14 = vld [vmem:[#allocation57_spill] sm:$0xff] }
 0x392   : > { %2044 = vadd.xlane.f32.xlu1 %v2043_v41  ;;  %1615 = vmax.xlane.f32.xlu0 %v9692_v6  ;;  %9693 = vst [vmem:[#allocation47_spill] sm:$0xff] %v6772_v9  ;;  %v1675_v45 = vsub.f32 %v9696_v4, %v1531_v35  ;;  %v6777_v49 = vpop.eup %4852  ;;  %4872 = vpow2.f32 %v1851_v26  ;;  %v1676_v8 = vsub.f32 %v9698_v14, %v1531_v35 }
 0x393   : > { %9697 = vst [vmem:[#allocation49_spill] sm:$0xff] %v6777_v49  ;;  %v2048_v52 = vadd.f32 %v6758_v47, %v2047_v44  ;;  %v2051_v41 = vadd.f32 %v6766_v38, %v6764_v2  ;;  %v6783_v10 = vpop.eup %4854  ;;  %4874 = vpow2.f32 %v1853_v27  ;;  %v1857_v0 = vmul.f32 1.442695, %v1673_v58  ;;  %v9702_v44 = vld [vmem:[#allocation58_spill] sm:$0xff]  ;;  %v9703_v2 = vld [vmem:[#allocation60_spill] sm:$0xff]  ;;  %v9704_v47 = vld [vmem:[#allocation59_spill] sm:$0xff] }
 0x394   : > { %9699 = vst [vmem:[#allocation50_spill] sm:$0xff] %v6783_v10  ;;  %v1859_v6 = vmul.f32 1.442695, %v1674_v22  ;;  %v1861_v24 = vmul.f32 1.442695, %v1675_v45  ;;  %v6785_v20 = vpop.eup %4856  ;;  %4876 = vpow2.f32 %v1855_v40  ;;  %v1536_v4 = vpop.xlane.xlu0 %1535  ;;  %v9706_v22 = vld [vmem:[#allocation61_spill] sm:$0xff] }
 0x395   : > { %9700 = vst [vmem:[#allocation52_spill] sm:$0xff] %v6785_v20  ;;  %v1863_v60 = vmul.f32 1.442695, %v1676_v8  ;;  %v2052_v26 = vadd.f32 %v6772_v9, %v2051_v41  ;;  %v6788_v35 = vpop.eup %4858  ;;  %4878 = vpow2.f32 %v1857_v0  ;;  %v1677_v14 = vsub.f32 %v9702_v44, %v1536_v4 }
 0x396   : > { %2049 = vadd.xlane.f32.xlu0 %v2048_v52  ;;  %9701 = vst [vmem:[#allocation51_spill] sm:$0xff] %v6788_v35  ;;  %v1678_v38 = vsub.f32 %v9703_v2, %v1536_v4  ;;  %v1679_v27 = vsub.f32 %v9704_v47, %v1536_v4  ;;  %v6793_v58 = vpop.eup %4860  ;;  %4880 = vpow2.f32 %v1859_v6  ;;  %v1680_v45 = vsub.f32 %v9706_v22, %v1536_v4 }
 0x397   : > { %9705 = vst [vmem:[#allocation53_spill] sm:$0xff] %v6793_v58  ;;  %v2053_v40 = vadd.f32 %v6777_v49, %v2052_v26  ;;  %v2056_v8 = vadd.f32 %v6785_v20, %v6783_v10  ;;  %v6799_v52 = vpop.eup %4862  ;;  %4882 = vpow2.f32 %v1861_v24  ;;  %v1865_v41 = vmul.f32 1.442695, %v1677_v14  ;;  %v9710_v26 = vld [vmem:[#allocation62_spill] sm:$0xff]  ;;  %v9711_v10 = vld [vmem:[#allocation64_spill] sm:$0xff]  ;;  %v9712_v20 = vld [vmem:[#allocation63_spill] sm:$0xff] }
 0x398   : > { %9707 = vst [vmem:[#allocation125_spill] sm:$0xff] %v6799_v52  ;;  %v1867_v0 = vmul.f32 1.442695, %v1678_v38  ;;  %v1869_v44 = vmul.f32 1.442695, %v1679_v27  ;;  %v6801_v9 = vpop.eup %4864  ;;  %4884 = vpow2.f32 %v1863_v60  ;;  %v1541_v2 = vpop.xlane.xlu0 %1540  ;;  %v9714_v38 = vld [vmem:[#allocation65_spill] sm:$0xff] }
 0x399   : > { %9708 = vst [vmem:[#allocation54_spill] sm:$0xff] %v6801_v9  ;;  %v1871_v47 = vmul.f32 1.442695, %v1680_v45  ;;  %2054 = vadd.xlane.f32.xlu1 %v2053_v40  ;;  %v2057_v6 = vadd.f32 %v6788_v35, %v2056_v8  ;;  %v6804_v4 = vpop.eup %4866  ;;  %4886 = vpow2.f32 %v1865_v41  ;;  %v1681_v22 = vsub.f32 %v9710_v26, %v1541_v2 }
 0x39a   : > { %9709 = vst [vmem:[#allocation56_spill] sm:$0xff] %v6804_v4  ;;  %v1682_v49 = vsub.f32 %v9711_v10, %v1541_v2  ;;  %v1683_v24 = vsub.f32 %v9712_v20, %v1541_v2  ;;  %v6809_v14 = vpop.eup %4868  ;;  %4888 = vpow2.f32 %v1867_v0  ;;  %v1684_v27 = vsub.f32 %v9714_v38, %v1541_v2 }
 0x39b   : > { %9713 = vst [vmem:[#allocation55_spill] sm:$0xff] %v6809_v14  ;;  %v2058_v60 = vadd.f32 %v6793_v58, %v2057_v6  ;;  %v2061_v45 = vadd.f32 %v6801_v9, %v6799_v52  ;;  %v6815_v40 = vpop.eup %4870  ;;  %4890 = vpow2.f32 %v1869_v44  ;;  %v1873_v8 = vmul.f32 1.442695, %v1681_v22  ;;  %v9718_v6 = vld [vmem:[#allocation66_spill] sm:$0xff]  ;;  %v9719_v52 = vld [vmem:[#allocation68_spill] sm:$0xff]  ;;  %v9720_v58 = vld [vmem:[#allocation67_spill] sm:$0xff] }
 0x39c   : > { %9715 = vst [vmem:[#allocation57_spill] sm:$0xff] %v6815_v40  ;;  %v1875_v41 = vmul.f32 1.442695, %v1682_v49  ;;  %v1877_v26 = vmul.f32 1.442695, %v1683_v24  ;;  %v6817_v35 = vpop.eup %4872  ;;  %4892 = vpow2.f32 %v1871_v47  ;;  %v1546_v10 = vpop.xlane.xlu0 %1545  ;;  %v9722_v49 = vld [vmem:[#allocation69_spill] sm:$0xff] }
 0x39d   : > { %9716 = vst [vmem:[#allocation58_spill] sm:$0xff] %v6817_v35  ;;  %v1879_v20 = vmul.f32 1.442695, %v1684_v27  ;;  %2059 = vadd.xlane.f32.xlu0 %v2058_v60  ;;  %v2062_v0 = vadd.f32 %v6804_v4, %v2061_v45  ;;  %v6820_v2 = vpop.eup %4874  ;;  %4894 = vpow2.f32 %v1873_v8  ;;  %v1685_v38 = vsub.f32 %v9718_v6, %v1546_v10 }
 0x39e   : > { %9717 = vst [vmem:[#allocation60_spill] sm:$0xff] %v6820_v2  ;;  %v1686_v9 = vsub.f32 %v9719_v52, %v1546_v10  ;;  %v1687_v44 = vsub.f32 %v9720_v58, %v1546_v10  ;;  %v6825_v22 = vpop.eup %4876  ;;  %4896 = vpow2.f32 %v1875_v41  ;;  %v1688_v24 = vsub.f32 %v9722_v49, %v1546_v10 }
 0x39f   : > { %9721 = vst [vmem:[#allocation59_spill] sm:$0xff] %v6825_v22  ;;  %v2063_v47 = vadd.f32 %v6809_v14, %v2062_v0  ;;  %v2066_v27 = vadd.f32 %v6817_v35, %v6815_v40  ;;  %v6831_v60 = vpop.eup %4878  ;;  %4898 = vpow2.f32 %v1877_v26  ;;  %v1881_v45 = vmul.f32 1.442695, %v1685_v38  ;;  %v9726_v0 = vld [vmem:[#allocation70_spill] sm:$0xff]  ;;  %v9727_v40 = vld [vmem:[#allocation72_spill] sm:$0xff]  ;;  %v9728_v35 = vld [vmem:[#allocation71_spill] sm:$0xff] }
 0x3a0   : > { %9723 = vst [vmem:[#allocation61_spill] sm:$0xff] %v6831_v60  ;;  %v1883_v8 = vmul.f32 1.442695, %v1686_v9  ;;  %v1885_v6 = vmul.f32 1.442695, %v1687_v44  ;;  %v6833_v4 = vpop.eup %4880  ;;  %4900 = vpow2.f32 %v1879_v20  ;;  %v1551_v52 = vpop.xlane.xlu0 %1550  ;;  %v9730_v9 = vld [vmem:[#allocation73_spill] sm:$0xff] }
 0x3a1   : > { %9724 = vst [vmem:[#allocation62_spill] sm:$0xff] %v6833_v4  ;;  %v1887_v58 = vmul.f32 1.442695, %v1688_v24  ;;  %2064 = vadd.xlane.f32.xlu1 %v2063_v47  ;;  %v2067_v41 = vadd.f32 %v6820_v2, %v2066_v27  ;;  %v6836_v10 = vpop.eup %4882  ;;  %4902 = vpow2.f32 %v1881_v45  ;;  %v1689_v49 = vsub.f32 %v9726_v0, %v1551_v52 }
 0x3a2   : > { %9725 = vst [vmem:[#allocation64_spill] sm:$0xff] %v6836_v10  ;;  %v1690_v14 = vsub.f32 %v9727_v40, %v1551_v52  ;;  %v1691_v26 = vsub.f32 %v9728_v35, %v1551_v52  ;;  %v6841_v38 = vpop.eup %4884  ;;  %4904 = vpow2.f32 %v1883_v8  ;;  %v1692_v44 = vsub.f32 %v9730_v9, %v1551_v52 }
 0x3a3   : > { %9729 = vst [vmem:[#allocation63_spill] sm:$0xff] %v6841_v38  ;;  %v2068_v20 = vadd.f32 %v6825_v22, %v2067_v41  ;;  %v2071_v24 = vadd.f32 %v6833_v4, %v6831_v60  ;;  %v6847_v47 = vpop.eup %4886  ;;  %4906 = vpow2.f32 %v1885_v6  ;;  %v1889_v27 = vmul.f32 1.442695, %v1689_v49  ;;  %v9734_v41 = vld [vmem:[#allocation74_spill] sm:$0xff]  ;;  %v9735_v60 = vld [vmem:[#allocation76_spill] sm:$0xff]  ;;  %v9736_v22 = vld [vmem:[#allocation75_spill] sm:$0xff] }
 0x3a4   : > { %9731 = vst [vmem:[#allocation65_spill] sm:$0xff] %v6847_v47  ;;  %v1891_v45 = vmul.f32 1.442695, %v1690_v14  ;;  %v1893_v0 = vmul.f32 1.442695, %v1691_v26  ;;  %v6849_v2 = vpop.eup %4888  ;;  %4908 = vpow2.f32 %v1887_v58  ;;  %v1556_v40 = vpop.xlane.xlu0 %1555  ;;  %v9738_v14 = vld [vmem:[#allocation77_spill] sm:$0xff] }
 0x3a5   : > { %9732 = vst [vmem:[#allocation66_spill] sm:$0xff] %v6849_v2  ;;  %v1895_v35 = vmul.f32 1.442695, %v1692_v44  ;;  %2069 = vadd.xlane.f32.xlu0 %v2068_v20  ;;  %v2072_v8 = vadd.f32 %v6836_v10, %v2071_v24  ;;  %v6852_v52 = vpop.eup %4890  ;;  %4910 = vpow2.f32 %v1889_v27  ;;  %v1693_v9 = vsub.f32 %v9734_v41, %v1556_v40 }
 0x3a6   : > { %9733 = vst [vmem:[#allocation68_spill] sm:$0xff] %v6852_v52  ;;  %v1694_v4 = vsub.f32 %v9735_v60, %v1556_v40  ;;  %v1695_v6 = vsub.f32 %v9736_v22, %v1556_v40  ;;  %v6857_v49 = vpop.eup %4892  ;;  %4912 = vpow2.f32 %v1891_v45  ;;  %v1696_v26 = vsub.f32 %v9738_v14, %v1556_v40 }
 0x3a7   : > { %9737 = vst [vmem:[#allocation67_spill] sm:$0xff] %v6857_v49  ;;  %v2073_v58 = vadd.f32 %v6841_v38, %v2072_v8  ;;  %v2076_v44 = vadd.f32 %v6849_v2, %v6847_v47  ;;  %v6863_v20 = vpop.eup %4894  ;;  %4914 = vpow2.f32 %v1893_v0  ;;  %v1897_v24 = vmul.f32 1.442695, %v1693_v9  ;;  %v9742_v8 = vld [vmem:[#allocation78_spill] sm:$0xff]  ;;  %v9743_v47 = vld [vmem:[#allocation80_spill] sm:$0xff]  ;;  %v9744_v2 = vld [vmem:[#allocation79_spill] sm:$0xff] }
 0x3a8   : > { %9739 = vst [vmem:[#allocation69_spill] sm:$0xff] %v6863_v20  ;;  %v1899_v27 = vmul.f32 1.442695, %v1694_v4  ;;  %v1901_v41 = vmul.f32 1.442695, %v1695_v6  ;;  %v6865_v10 = vpop.eup %4896  ;;  %4916 = vpow2.f32 %v1895_v35  ;;  %v1561_v60 = vpop.xlane.xlu0 %1560  ;;  %v9746_v4 = vld [vmem:[#allocation81_spill] sm:$0xff] }
 0x3a9   : > { %9740 = vst [vmem:[#allocation70_spill] sm:$0xff] %v6865_v10  ;;  %v1903_v22 = vmul.f32 1.442695, %v1696_v26  ;;  %2074 = vadd.xlane.f32.xlu1 %v2073_v58  ;;  %v2077_v45 = vadd.f32 %v6852_v52, %v2076_v44  ;;  %v6868_v40 = vpop.eup %4898  ;;  %4918 = vpow2.f32 %v1897_v24  ;;  %v1697_v14 = vsub.f32 %v9742_v8, %v1561_v60 }
 0x3aa   : > { %9741 = vst [vmem:[#allocation72_spill] sm:$0xff] %v6868_v40  ;;  %v1698_v38 = vsub.f32 %v9743_v47, %v1561_v60  ;;  %v1699_v0 = vsub.f32 %v9744_v2, %v1561_v60  ;;  %v6873_v9 = vpop.eup %4900  ;;  %4920 = vpow2.f32 %v1899_v27  ;;  %v1700_v6 = vsub.f32 %v9746_v4, %v1561_v60 }
 0x3ab   : > { %9745 = vst [vmem:[#allocation71_spill] sm:$0xff] %v6873_v9  ;;  %v2078_v35 = vadd.f32 %v6857_v49, %v2077_v45  ;;  %v2081_v26 = vadd.f32 %v6865_v10, %v6863_v20  ;;  %v6879_v58 = vpop.eup %4902  ;;  %4922 = vpow2.f32 %v1901_v41  ;;  %v1905_v44 = vmul.f32 1.442695, %v1697_v14  ;;  %v9750_v45 = vld [vmem:[#allocation82_spill] sm:$0xff]  ;;  %v9751_v20 = vld [vmem:[#allocation84_spill] sm:$0xff]  ;;  %v9752_v49 = vld [vmem:[#allocation83_spill] sm:$0xff] }
 0x3ac   : > { %9747 = vst [vmem:[#allocation73_spill] sm:$0xff] %v6879_v58  ;;  %v1907_v24 = vmul.f32 1.442695, %v1698_v38  ;;  %v1909_v8 = vmul.f32 1.442695, %v1699_v0  ;;  %v6881_v52 = vpop.eup %4904  ;;  %4924 = vpow2.f32 %v1903_v22  ;;  %v1566_v47 = vpop.xlane.xlu0 %1565  ;;  %v9754_v38 = vld [vmem:[#allocation85_spill] sm:$0xff] }
 0x3ad   : > { %9748 = vst [vmem:[#allocation74_spill] sm:$0xff] %v6881_v52  ;;  %v1911_v2 = vmul.f32 1.442695, %v1700_v6  ;;  %2079 = vadd.xlane.f32.xlu0 %v2078_v35  ;;  %v2082_v27 = vadd.f32 %v6868_v40, %v2081_v26  ;;  %v6884_v60 = vpop.eup %4906  ;;  %4926 = vpow2.f32 %v1905_v44  ;;  %v1701_v4 = vsub.f32 %v9750_v45, %v1566_v47 }
 0x3ae   : > { %9749 = vst [vmem:[#allocation76_spill] sm:$0xff] %v6884_v60  ;;  %v1702_v10 = vsub.f32 %v9751_v20, %v1566_v47  ;;  %v1703_v41 = vsub.f32 %v9752_v49, %v1566_v47  ;;  %v6889_v14 = vpop.eup %4908  ;;  %4928 = vpow2.f32 %v1907_v24  ;;  %v1704_v0 = vsub.f32 %v9754_v38, %v1566_v47 }
 0x3af   : > { %9753 = vst [vmem:[#allocation75_spill] sm:$0xff] %v6889_v14  ;;  %v2083_v22 = vadd.f32 %v6873_v9, %v2082_v27  ;;  %v2086_v6 = vadd.f32 %v6881_v52, %v6879_v58  ;;  %v6895_v35 = vpop.eup %4910  ;;  %4930 = vpow2.f32 %v1909_v8  ;;  %v1913_v26 = vmul.f32 1.442695, %v1701_v4  ;;  %v9758_v27 = vld [vmem:[#allocation86_spill] sm:$0xff]  ;;  %v9759_v58 = vld [vmem:[#allocation88_spill] sm:$0xff]  ;;  %v9760_v52 = vld [vmem:[#allocation87_spill] sm:$0xff] }
 0x3b0   : > { %9755 = vst [vmem:[#allocation77_spill] sm:$0xff] %v6895_v35  ;;  %v1915_v44 = vmul.f32 1.442695, %v1702_v10  ;;  %v1917_v45 = vmul.f32 1.442695, %v1703_v41  ;;  %v6897_v40 = vpop.eup %4912  ;;  %4932 = vpow2.f32 %v1911_v2  ;;  %v1571_v20 = vpop.xlane.xlu0 %1570  ;;  %v9762_v10 = vld [vmem:[#allocation89_spill] sm:$0xff] }
 0x3b1   : > { %9756 = vst [vmem:[#allocation78_spill] sm:$0xff] %v6897_v40  ;;  %v1919_v49 = vmul.f32 1.442695, %v1704_v0  ;;  %2084 = vadd.xlane.f32.xlu1 %v2083_v22  ;;  %v2087_v24 = vadd.f32 %v6884_v60, %v2086_v6  ;;  %v6900_v47 = vpop.eup %4914  ;;  %4934 = vpow2.f32 %v1913_v26  ;;  %v1705_v38 = vsub.f32 %v9758_v27, %v1571_v20 }
 0x3b2   : > { %9757 = vst [vmem:[#allocation80_spill] sm:$0xff] %v6900_v47  ;;  %v1706_v9 = vsub.f32 %v9759_v58, %v1571_v20  ;;  %v1707_v8 = vsub.f32 %v9760_v52, %v1571_v20  ;;  %v6905_v4 = vpop.eup %4916  ;;  %4936 = vpow2.f32 %v1915_v44  ;;  %v1708_v41 = vsub.f32 %v9762_v10, %v1571_v20 }
 0x3b3   : > { %9761 = vst [vmem:[#allocation79_spill] sm:$0xff] %v6905_v4  ;;  %v2088_v2 = vadd.f32 %v6889_v14, %v2087_v24  ;;  %v2091_v0 = vadd.f32 %v6897_v40, %v6895_v35  ;;  %v6911_v22 = vpop.eup %4918  ;;  %4938 = vpow2.f32 %v1917_v45  ;;  %v1921_v6 = vmul.f32 1.442695, %v1705_v38  ;;  %v9766_v24 = vld [vmem:[#allocation90_spill] sm:$0xff]  ;;  %v9767_v35 = vld [vmem:[#allocation92_spill] sm:$0xff]  ;;  %v9768_v14 = vld [vmem:[#allocation91_spill] sm:$0xff] }
 0x3b4   : > { %9763 = vst [vmem:[#allocation81_spill] sm:$0xff] %v6911_v22  ;;  %v1923_v26 = vmul.f32 1.442695, %v1706_v9  ;;  %v1925_v27 = vmul.f32 1.442695, %v1707_v8  ;;  %v6913_v60 = vpop.eup %4920  ;;  %4940 = vpow2.f32 %v1919_v49  ;;  %v1576_v58 = vpop.xlane.xlu0 %1575  ;;  %v9770_v9 = vld [vmem:[#allocation93_spill] sm:$0xff] }
 0x3b5   : > { %9764 = vst [vmem:[#allocation82_spill] sm:$0xff] %v6913_v60  ;;  %v1927_v52 = vmul.f32 1.442695, %v1708_v41  ;;  %2089 = vadd.xlane.f32.xlu0 %v2088_v2  ;;  %v2092_v44 = vadd.f32 %v6900_v47, %v2091_v0  ;;  %v6916_v20 = vpop.eup %4922  ;;  %4942 = vpow2.f32 %v1921_v6  ;;  %v1709_v10 = vsub.f32 %v9766_v24, %v1576_v58 }
 0x3b6   : > { %9765 = vst [vmem:[#allocation84_spill] sm:$0xff] %v6916_v20  ;;  %v1710_v40 = vsub.f32 %v9767_v35, %v1576_v58  ;;  %v1711_v45 = vsub.f32 %v9768_v14, %v1576_v58  ;;  %v6921_v38 = vpop.eup %4924  ;;  %4944 = vpow2.f32 %v1923_v26  ;;  %v1712_v8 = vsub.f32 %v9770_v9, %v1576_v58 }
 0x3b7   : > { %9769 = vst [vmem:[#allocation83_spill] sm:$0xff] %v6921_v38  ;;  %v2093_v49 = vadd.f32 %v6905_v4, %v2092_v44  ;;  %v2096_v41 = vadd.f32 %v6913_v60, %v6911_v22  ;;  %v6927_v2 = vpop.eup %4926  ;;  %4946 = vpow2.f32 %v1925_v27  ;;  %v1929_v0 = vmul.f32 1.442695, %v1709_v10  ;;  %v9774_v44 = vld [vmem:[#allocation94_spill] sm:$0xff]  ;;  %v9775_v22 = vld [vmem:[#allocation96_spill] sm:$0xff]  ;;  %v9776_v60 = vld [vmem:[#allocation95_spill] sm:$0xff] }
 0x3b8   : > { %9771 = vst [vmem:[#allocation85_spill] sm:$0xff] %v6927_v2  ;;  %v1931_v6 = vmul.f32 1.442695, %v1710_v40  ;;  %v1933_v24 = vmul.f32 1.442695, %v1711_v45  ;;  %v6929_v47 = vpop.eup %4928  ;;  %4948 = vpow2.f32 %v1927_v52  ;;  %v1581_v35 = vpop.xlane.xlu0 %1580  ;;  %v9778_v40 = vld [vmem:[#allocation97_spill] sm:$0xff] }
 0x3b9   : > { %9772 = vst [vmem:[#allocation86_spill] sm:$0xff] %v6929_v47  ;;  %v1935_v14 = vmul.f32 1.442695, %v1712_v8  ;;  %2094 = vadd.xlane.f32.xlu1 %v2093_v49  ;;  %v2097_v26 = vadd.f32 %v6916_v20, %v2096_v41  ;;  %v6932_v58 = vpop.eup %4930  ;;  %4950 = vpow2.f32 %v1929_v0  ;;  %v1713_v9 = vsub.f32 %v9774_v44, %v1581_v35 }
 0x3ba   : > { %9773 = vst [vmem:[#allocation88_spill] sm:$0xff] %v6932_v58  ;;  %v1714_v4 = vsub.f32 %v9775_v22, %v1581_v35  ;;  %v1715_v27 = vsub.f32 %v9776_v60, %v1581_v35  ;;  %v6937_v10 = vpop.eup %4932  ;;  %4952 = vpow2.f32 %v1931_v6  ;;  %v1716_v45 = vsub.f32 %v9778_v40, %v1581_v35 }
 0x3bb   : > { %9777 = vst [vmem:[#allocation87_spill] sm:$0xff] %v6937_v10  ;;  %v2098_v52 = vadd.f32 %v6921_v38, %v2097_v26  ;;  %v2101_v8 = vadd.f32 %v6929_v47, %v6927_v2  ;;  %v6943_v49 = vpop.eup %4934  ;;  %4954 = vpow2.f32 %v1933_v24  ;;  %v1937_v41 = vmul.f32 1.442695, %v1713_v9  ;;  %v9782_v26 = vld [vmem:[#allocation98_spill] sm:$0xff]  ;;  %v9783_v2 = vld [vmem:[#allocation100_spill] sm:$0xff]  ;;  %v9784_v38 = vld [vmem:[#allocation99_spill] sm:$0xff] }
 0x3bc   : > { %9779 = vst [vmem:[#allocation89_spill] sm:$0xff] %v6943_v49  ;;  %v1939_v0 = vmul.f32 1.442695, %v1714_v4  ;;  %v1941_v44 = vmul.f32 1.442695, %v1715_v27  ;;  %v6945_v20 = vpop.eup %4936  ;;  %4956 = vpow2.f32 %v1935_v14  ;;  %v1586_v22 = vpop.xlane.xlu0 %1585  ;;  %v9786_v4 = vld [vmem:[#allocation101_spill] sm:$0xff] }
 0x3bd   : > { %9780 = vst [vmem:[#allocation90_spill] sm:$0xff] %v6945_v20  ;;  %v1943_v60 = vmul.f32 1.442695, %v1716_v45  ;;  %2099 = vadd.xlane.f32.xlu0 %v2098_v52  ;;  %v2102_v6 = vadd.f32 %v6932_v58, %v2101_v8  ;;  %v6948_v35 = vpop.eup %4938  ;;  %4958 = vpow2.f32 %v1937_v41  ;;  %v1717_v40 = vsub.f32 %v9782_v26, %v1586_v22 }
 0x3be   : > { %9781 = vst [vmem:[#allocation92_spill] sm:$0xff] %v6948_v35  ;;  %v1718_v47 = vsub.f32 %v9783_v2, %v1586_v22  ;;  %v1719_v24 = vsub.f32 %v9784_v38, %v1586_v22  ;;  %v6953_v9 = vpop.eup %4940  ;;  %4960 = vpow2.f32 %v1939_v0  ;;  %v1720_v27 = vsub.f32 %v9786_v4, %v1586_v22 }
 0x3bf   : > { %9785 = vst [vmem:[#allocation91_spill] sm:$0xff] %v6953_v9  ;;  %v2103_v14 = vadd.f32 %v6937_v10, %v2102_v6  ;;  %v2106_v45 = vadd.f32 %v6945_v20, %v6943_v49  ;;  %v6959_v52 = vpop.eup %4942  ;;  %4962 = vpow2.f32 %v1941_v44  ;;  %v1945_v8 = vmul.f32 1.442695, %v1717_v40  ;;  %v9790_v6 = vld [vmem:[#allocation102_spill] sm:$0xff]  ;;  %v9791_v49 = vld [vmem:[#allocation104_spill] sm:$0xff]  ;;  %v9792_v20 = vld [vmem:[#allocation103_spill] sm:$0xff] }
 0x3c0   : > { %9787 = vst [vmem:[#allocation93_spill] sm:$0xff] %v6959_v52  ;;  %v1947_v41 = vmul.f32 1.442695, %v1718_v47  ;;  %v1949_v26 = vmul.f32 1.442695, %v1719_v24  ;;  %v6961_v58 = vpop.eup %4944  ;;  %4964 = vpow2.f32 %v1943_v60  ;;  %v1591_v2 = vpop.xlane.xlu0 %1590  ;;  %v9794_v47 = vld [vmem:[#allocation105_spill] sm:$0xff] }
 0x3c1   : > { %9788 = vst [vmem:[#allocation94_spill] sm:$0xff] %v6961_v58  ;;  %v1951_v38 = vmul.f32 1.442695, %v1720_v27  ;;  %2104 = vadd.xlane.f32.xlu1 %v2103_v14  ;;  %v2107_v0 = vadd.f32 %v6948_v35, %v2106_v45  ;;  %v6964_v22 = vpop.eup %4946  ;;  %4966 = vpow2.f32 %v1945_v8  ;;  %v1721_v4 = vsub.f32 %v9790_v6, %v1591_v2 }
 0x3c2   : > { %9789 = vst [vmem:[#allocation96_spill] sm:$0xff] %v6964_v22  ;;  %v1722_v10 = vsub.f32 %v9791_v49, %v1591_v2  ;;  %v1723_v44 = vsub.f32 %v9792_v20, %v1591_v2  ;;  %v6969_v40 = vpop.eup %4948  ;;  %4968 = vpow2.f32 %v1947_v41  ;;  %v1724_v24 = vsub.f32 %v9794_v47, %v1591_v2 }
 0x3c3   : > { %9793 = vst [vmem:[#allocation95_spill] sm:$0xff] %v6969_v40  ;;  %v2108_v60 = vadd.f32 %v6953_v9, %v2107_v0  ;;  %v2111_v27 = vadd.f32 %v6961_v58, %v6959_v52  ;;  %v6975_v14 = vpop.eup %4950  ;;  %4970 = vpow2.f32 %v1949_v26  ;;  %v1953_v45 = vmul.f32 1.442695, %v1721_v4  ;;  %v9797_v0 = vld [vmem:[#allocation106_spill] sm:$0xff]  ;;  %v9798_v52 = vld [vmem:[#allocation108_spill] sm:$0xff]  ;;  %v9799_v9 = vld [vmem:[#allocation107_spill] sm:$0xff] }
 0x3c4   : > { %9795 = vst [vmem:[#allocation97_spill] sm:$0xff] %v6975_v14  ;;  %v1955_v8 = vmul.f32 1.442695, %v1722_v10  ;;  %v1957_v6 = vmul.f32 1.442695, %v1723_v44  ;;  %v6977_v35 = vpop.eup %4952  ;;  %4972 = vpow2.f32 %v1951_v38  ;;  %v1596_v49 = vpop.xlane.xlu0 %1595  ;;  %v9800_v10 = vld [vmem:[#allocation109_spill] sm:$0xff] }
 0x3c5   : > { %9796 = vst [vmem:[#allocation98_spill] sm:$0xff] %v6977_v35  ;;  %v1959_v20 = vmul.f32 1.442695, %v1724_v24  ;;  %2109 = vadd.xlane.f32.xlu0 %v2108_v60  ;;  %v2112_v41 = vadd.f32 %v6964_v22, %v2111_v27  ;;  %v6980_v2 = vpop.eup %4954  ;;  %4974 = vpow2.f32 %v1953_v45  ;;  %v1725_v47 = vsub.f32 %v9797_v0, %v1596_v49 }
 0x3c6   : > { %v1726_v58 = vsub.f32 %v9798_v52, %v1596_v49  ;;  %v1727_v26 = vsub.f32 %v9799_v9, %v1596_v49  ;;  %v6985_v4 = vpop.eup %4956  ;;  %4976 = vpow2.f32 %v1955_v8  ;;  %v1728_v44 = vsub.f32 %v9800_v10, %v1596_v49 }
 0x3c7   : > { %v2113_v38 = vadd.f32 %v6969_v40, %v2112_v41  ;;  %v2116_v24 = vadd.f32 %v6977_v35, %v6975_v14  ;;  %v6991_v60 = vpop.eup %4958  ;;  %4978 = vpow2.f32 %v1957_v6  ;;  %v1961_v27 = vmul.f32 1.442695, %v1725_v47  ;;  %v9802_v41 = vld [vmem:[#allocation110_spill] sm:$0xff]  ;;  %v9803_v14 = vld [vmem:[#allocation112_spill] sm:$0xff]  ;;  %v9804_v35 = vld [vmem:[#allocation111_spill] sm:$0xff] }
 0x3c8   : > { %v1963_v45 = vmul.f32 1.442695, %v1726_v58  ;;  %v1965_v0 = vmul.f32 1.442695, %v1727_v26  ;;  %v6993_v22 = vpop.eup %4960  ;;  %4980 = vpow2.f32 %v1959_v20  ;;  %v1967_v9 = vmul.f32 1.442695, %v1728_v44  ;;  %v1601_v52 = vpop.xlane.xlu1 %1600 }
 0x3c9   : > { %2114 = vadd.xlane.f32.xlu1 %v2113_v38  ;;  %v2117_v8 = vadd.f32 %v6980_v2, %v2116_v24  ;;  %v6996_v49 = vpop.eup %4962  ;;  %4982 = vpow2.f32 %v1961_v27  ;;  %v1729_v10 = vsub.f32 %v9802_v41, %v1601_v52  ;;  %v1730_v40 = vsub.f32 %v9803_v14, %v1601_v52  ;;  %v9805_v58 = vld [vmem:[#allocation113_spill] sm:$0xff] }
 0x3ca   : > { %9801 = vst [vmem:[#allocation100_spill] sm:$0xff] %v6996_v49  ;;  %v1731_v6 = vsub.f32 %v9804_v35, %v1601_v52  ;;  %v7001_v47 = vpop.eup %4964  ;;  %4984 = vpow2.f32 %v1963_v45  ;;  %v1732_v26 = vsub.f32 %v9805_v58, %v1601_v52  ;;  %v2121_v44 = vadd.f32 %v6993_v22, %v6991_v60 }
 0x3cb   : > { %v2118_v20 = vadd.f32 %v6985_v4, %v2117_v8  ;;  %v7007_v38 = vpop.eup %4966  ;;  %4986 = vpow2.f32 %v1965_v0  ;;  %v1969_v24 = vmul.f32 1.442695, %v1729_v10  ;;  %v1971_v27 = vmul.f32 1.442695, %v1730_v40 }
 0x3cc   : > { %v7009_v41 = vpop.eup %4968  ;;  %4988 = vpow2.f32 %v1967_v9  ;;  %v1973_v14 = vmul.f32 1.442695, %v1731_v6  ;;  %v2122_v35 = vadd.f32 %v6996_v49, %v2121_v44  ;;  %v1975_v58 = vmul.f32 1.442695, %v1732_v26 }
 0x3cd   : > { %2119 = vadd.xlane.f32.xlu0 %v2118_v20  ;;  %v7012_v45 = vpop.eup %4970  ;;  %4990 = vpow2.f32 %v1969_v24  ;;  %v2126_v52 = vadd.f32 %v7009_v41, %v7007_v38 }
 0x3ce   : > { %v7016_v8 = vpop.eup %4972  ;;  %4992 = vpow2.f32 %v1971_v27  ;;  %v2123_v0 = vadd.f32 %v7001_v47, %v2122_v35 }
 0x3cf   : > { %v7019_v40 = vpop.eup %4974  ;;  %v2127_v9 = vadd.f32 %v7012_v45, %v2126_v52  ;;  %4994 = vpow2.f32 %v1973_v14 }
 0x3d0   : > { %9806 = vst [vmem:[#allocation99_spill] sm:$0xff] %v7019_v40  ;;  %v7022_v10 = vpop.eup %4976  ;;  %2124 = vadd.xlane.f32.xlu1 %v2123_v0  ;;  %4996 = vpow2.f32 %v1975_v58 }
 0x3d1   : > { %9807 = vst [vmem:[#allocation101_spill] sm:$0xff] %v7022_v10  ;;  %v7024_v6 = vpop.eup %4978  ;;  %v2128_v20 = vadd.f32 %v7016_v8, %v2127_v9  ;;  %v2131_v44 = vadd.f32 %v7022_v10, %v7019_v40 }
 0x3d2   : > { %9808 = vst [vmem:[#allocation102_spill] sm:$0xff] %v7024_v6  ;;  %v7029_v24 = vpop.eup %4980 }
 0x3d3   : > { %9809 = vst [vmem:[#allocation104_spill] sm:$0xff] %v7029_v24  ;;  %v7031_v26 = vpop.eup %4982  ;;  %2129 = vadd.xlane.f32.xlu0 %v2128_v20  ;;  %v2132_v27 = vadd.f32 %v7024_v6, %v2131_v44 }
 0x3d4   : > { %9810 = vst [vmem:[#allocation103_spill] sm:$0xff] %v7031_v26  ;;  %v7034_v35 = vpop.eup %4984 }
 0x3d5   : > { %9811 = vst [vmem:[#allocation105_spill] sm:$0xff] %v7034_v35  ;;  %v7036_v52 = vpop.eup %4986  ;;  %v2133_v14 = vadd.f32 %v7029_v24, %v2132_v27  ;;  %v2136_v0 = vadd.f32 %v7034_v35, %v7031_v26 }
 0x3d6   : > { %9812 = vst [vmem:[#allocation106_spill] sm:$0xff] %v7036_v52  ;;  %v7041_v9 = vpop.eup %4988 }
 0x3d7   : > { %9813 = vst [vmem:[#allocation108_spill] sm:$0xff] %v7041_v9  ;;  %v7043_v40 = vpop.eup %4990  ;;  %2134 = vadd.xlane.f32.xlu1 %v2133_v14  ;;  %v2137_v58 = vadd.f32 %v7036_v52, %v2136_v0 }
 0x3d8   : > { %9814 = vst [vmem:[#allocation107_spill] sm:$0xff] %v7043_v40  ;;  %v7046_v10 = vpop.eup %4992 }
 0x3d9   : > { %9815 = vst [vmem:[#allocation109_spill] sm:$0xff] %v7046_v10  ;;  %v2138_v20 = vadd.f32 %v7041_v9, %v2137_v58  ;;  %v2141_v44 = vadd.f32 %v7046_v10, %v7043_v40  ;;  %v7051_v6 = vpop.eup %4994 }
 0x3da   : > { %9816 = vst [vmem:[#allocation110_spill] sm:$0xff] %v7051_v6  ;;  %v7054_v26 = vpop.eup %4996 }
 0x3db   : > { %2139 = vadd.xlane.f32.xlu0 %v2138_v20  ;;  %v2142_v27 = vadd.f32 %v7051_v6, %v2141_v44  ;;  %9817 = vst [vmem:[#allocation112_spill] sm:$0xff] %v7054_v26 }
 0x3dd   : > { %v2143_v24 = vadd.f32 %v7054_v26, %v2142_v27 }
 0x3df   : > { %2144 = vadd.xlane.f32.xlu1 %v2143_v24 }
 0x3fd   : > { %v2005_v14 = vpop.xlane.xlu0 %2004 }
 0x3fe   : > { %4998 = vrcp.f32 %v2005_v14 }
 0x401   : > { %v2010_v0 = vpop.xlane.xlu0 %2009 }
 0x402   : > { %5000 = vrcp.f32 %v2010_v0 }
 0x405   : > { %v2015_v52 = vpop.xlane.xlu0 %2014 }
 0x406   : > { %5002 = vrcp.f32 %v2015_v52 }
 0x408   : > { %v4999_v58 = vpop.eup %4998 }
 0x409   : > { %v2020_v9 = vpop.xlane.xlu0 %2019  ;;  %v2194_v10 = vmul.f32 %v4999_v58, %v6602_v43  ;;  %v2196_v20 = vmul.f32 %v4999_v58, %v6609_v11  ;;  %v2193_v44 = vmul.f32 %v4999_v58, %v6600_v3  ;;  %v2195_v6 = vmul.f32 %v4999_v58, %v6604_v34  ;;  %v9818_v58 = vld [vmem:[#allocation114_spill] sm:$0xff] }
 0x40a   : > { %5004 = vrcp.f32 %v2020_v9 }
 0x40c   : > { %v5001_v40 = vpop.eup %5000 }
 0x40d   : > { %v2025_v27 = vpop.xlane.xlu0 %2024  ;;  %v2198_v24 = vmul.f32 %v5001_v40, %v6616_v50  ;;  %v2200_v14 = vmul.f32 %v5001_v40, %v6624_v56  ;;  %v2197_v0 = vmul.f32 %v5001_v40, %v6614_v30  ;;  %v2199_v52 = vmul.f32 %v5001_v40, %v6619_v46 }
 0x40e   : > { %5006 = vrcp.f32 %v2025_v27  ;;  %v9820_v27 = vld [vmem:[#allocation115_spill] sm:$0xff] }
 0x40f   : > { %v2322_v9 = vpack.c.bf16 %v2198_v24, %v2194_v10  ;;  %v2324_v26 = vpack.c.bf16 %v2200_v14, %v2196_v20  ;;  %v2321_v35 = vpack.c.bf16 %v2197_v0, %v2193_v44  ;;  %v2323_v43 = vpack.c.bf16 %v2199_v52, %v2195_v6  ;;  %v9819_v20 = vld [vmem:[#allocation116_spill] sm:$0xff] }
 0x410   : > { %v5003_v49 = vpop.eup %5002 }
 0x411   : > { %2418 = vmatprep.subr.bf16.mxu0 %v2322_v9  ;;  %2461 = vmatprep.subr.bf16.mxu1 %v2324_v26  ;;  %v2030_v3 = vpop.xlane.xlu0 %2029  ;;  %v2202_v11 = vmul.f32 %v5003_v49, %v6632_v63  ;;  %v2204_v50 = vmul.f32 %v5003_v49, %v6640_v37  ;;  %v2201_v30 = vmul.f32 %v5003_v49, %v6630_v33 }
 0x412   : > { %5008 = vrcp.f32 %v2030_v3  ;;  %2419 = vmatpush1.bf16.xpose.msra.mxu0 %v2321_v35  ;;  %2462 = vmatpush1.bf16.xpose.msra.mxu1 %v2323_v43  ;;  %v2203_v37 = vmul.f32 %v5003_v49, %v6635_v25  ;;  %v9822_v25 = vld [vmem:[#allocation121_spill] sm:$0xff] }
 0x414   : > { %v5005_v34 = vpop.eup %5004 }
 0x415   : > { %v2035_v46 = vpop.xlane.xlu1 %2034  ;;  %v2206_v40 = vmul.f32 %v5005_v34, %v6648_v32  ;;  %v2208_v10 = vmul.f32 %v5005_v34, %v6656_v18  ;;  %v2205_v6 = vmul.f32 %v5005_v34, %v6646_v29  ;;  %v2207_v26 = vmul.f32 %v5005_v34, %v6651_v62  ;;  %v9821_v34 = vld [vmem:[#allocation119_spill] sm:$0xff] }
 0x416   : > { %5010 = vrcp.f32 %v2035_v46 }
 0x417   : > { %v1606_v56 = vpop.xlane.xlu0 %1605  ;;  %v2326_v24 = vpack.c.bf16 %v2206_v40, %v2202_v11  ;;  %v2328_v14 = vpack.c.bf16 %v2208_v10, %v2204_v50  ;;  %v2325_v0 = vpack.c.bf16 %v2205_v6, %v2201_v30  ;;  %v2327_v29 = vpack.c.bf16 %v2207_v26, %v2203_v37 }
 0x418   : > { %v1733_v35 = vsub.f32 %v9818_v58, %v1606_v56  ;;  %v1734_v44 = vsub.f32 %v9819_v20, %v1606_v56  ;;  %v1735_v63 = vsub.f32 %v9820_v27, %v1606_v56  ;;  %v1736_v33 = vsub.f32 %v9675_v19, %v1606_v56  ;;  %v5007_v32 = vpop.eup %5006  ;;  %v9823_v19 = vld [vmem:[#allocation120_spill] sm:$0xff]  ;;  %v9824_v27 = vld [vmem:[#allocation122_spill] sm:$0xff] }
 0x419   : > { %2420 = vmatprep.subr.bf16.mxu0 %v2326_v24  ;;  %2463 = vmatprep.subr.bf16.mxu1 %v2328_v14  ;;  %v2210_v30 = vmul.f32 %v5007_v32, %v6664_v1  ;;  %v2212_v46 = vmul.f32 %v5007_v32, %v6672_v39  ;;  %v9826_v1 = vld [vmem:[#allocation123_spill] sm:$0xff] }
 0x41a   : > { %v1977_v52 = vmul.f32 1.442695, %v1733_v35  ;;  %v1979_v18 = vmul.f32 1.442695, %v1734_v44  ;;  %v1981_v9 = vmul.f32 1.442695, %v1735_v63  ;;  %2421 = vmatpush1.bf16.xpose.msra.mxu0 %v2325_v0  ;;  %2464 = vmatpush1.bf16.xpose.msra.mxu1 %v2327_v29 }
 0x41b   : > { %v1983_v62 = vmul.f32 1.442695, %v1736_v33  ;;  %v2040_v43 = vpop.xlane.xlu0 %2039  ;;  %v1611_v3 = vpop.xlane.xlu1 %1610 }
 0x41c   : > { %5012 = vpow2.f32 %v1977_v52  ;;  %v1737_v58 = vsub.f32 %v9821_v34, %v1611_v3  ;;  %v1738_v49 = vsub.f32 %v9822_v25, %v1611_v3  ;;  %v1739_v11 = vsub.f32 %v9823_v19, %v1611_v3  ;;  %v5009_v56 = vpop.eup %5008 }
 0x41d   : > { %5014 = vpow2.f32 %v1979_v18  ;;  %v1740_v50 = vsub.f32 %v6558_v54, %v1611_v3  ;;  %v2214_v20 = vmul.f32 %v5009_v56, %v6680_v36  ;;  %v2216_v44 = vmul.f32 %v5009_v56, %v6688_v15  ;;  %v9825_v54 = vld [vmem:[#allocation124_spill] sm:$0xff] }
 0x41e   : > { %5016 = vpow2.f32 %v1981_v9  ;;  %v1985_v40 = vmul.f32 1.442695, %v1737_v58  ;;  %v1987_v10 = vmul.f32 1.442695, %v1738_v49  ;;  %v1989_v6 = vmul.f32 1.442695, %v1739_v11 }
 0x41f   : > { %5018 = vpow2.f32 %v1983_v62  ;;  %v1991_v26 = vmul.f32 1.442695, %v1740_v50  ;;  %v1616_v35 = vpop.xlane.xlu0 %1615  ;;  %v2330_v24 = vpack.c.bf16 %v2214_v20, %v2210_v30  ;;  %v2332_v14 = vpack.c.bf16 %v2216_v44, %v2212_v46  ;;  %v2045_v0 = vpop.xlane.xlu1 %2044 }
 0x420   : > { %5020 = vrcp.f32 %v2040_v43  ;;  %v1741_v63 = vsub.f32 %v9824_v27, %v1616_v35  ;;  %v1742_v37 = vsub.f32 %v9825_v54, %v1616_v35  ;;  %v1743_v33 = vsub.f32 %v9826_v1, %v1616_v35 }
 0x421   : > { %5022 = vpow2.f32 %v1985_v40  ;;  %v1744_v39 = vsub.f32 %v9691_v61, %v1616_v35  ;;  %v2209_v18 = vmul.f32 %v5007_v32, %v6662_v55  ;;  %v2211_v36 = vmul.f32 %v5007_v32, %v6667_v16  ;;  %2422 = vmatprep.subr.bf16.mxu0 %v2330_v24  ;;  %2465 = vmatprep.subr.bf16.mxu1 %v2332_v14  ;;  %v5011_v61 = vpop.eup %5010 }
 0x422   : > { %5024 = vpow2.f32 %v1987_v10  ;;  %v1993_v52 = vmul.f32 1.442695, %v1741_v63  ;;  %v1995_v15 = vmul.f32 1.442695, %v1742_v37  ;;  %v2213_v9 = vmul.f32 %v5009_v56, %v6678_v7 }
 0x423   : > { %5026 = vpow2.f32 %v1989_v6  ;;  %v2215_v29 = vmul.f32 %v5009_v56, %v6683_v5  ;;  %v1997_v62 = vmul.f32 1.442695, %v1743_v33  ;;  %v1999_v43 = vmul.f32 1.442695, %v1744_v39  ;;  %v2050_v16 = vpop.xlane.xlu0 %2049 }
 0x424   : > { %5028 = vpow2.f32 %v1991_v26  ;;  %v2329_v3 = vpack.c.bf16 %v2213_v9, %v2209_v18  ;;  %v2218_v49 = vmul.f32 %v5011_v61, %v6696_v53  ;;  %v2220_v11 = vmul.f32 %v5011_v61, %v6704_v21 }
 0x425   : > { %5030 = vrcp.f32 %v2045_v0  ;;  %v2331_v34 = vpack.c.bf16 %v2215_v29, %v2211_v36  ;;  %v2217_v50 = vmul.f32 %v5011_v61, %v6694_v51  ;;  %v2219_v53 = vmul.f32 %v5011_v61, %v6699_v59  ;;  %v9827_v61 = vld [vmem:[#allocation117_spill] sm:$0xff] }
 0x426   : > { %v7093_v58 = vpop.eup %5012  ;;  %5032 = vpow2.f32 %v1993_v52  ;;  %2423 = vmatpush1.bf16.xpose.msra.mxu0 %v2329_v3  ;;  %v2055_v7 = vpop.xlane.xlu1 %2054  ;;  %v9828_v3 = vld [vmem:[#allocation45_spill] sm:$0xff] }
 0x427   : > { %v7095_v55 = vpop.eup %5014  ;;  %5034 = vpow2.f32 %v1995_v15  ;;  %2466 = vmatpush1.bf16.xpose.msra.mxu1 %v2331_v34 }
 0x428   : > { %v7097_v32 = vpop.eup %5016  ;;  %5036 = vpow2.f32 %v1997_v62  ;;  %v2146_v5 = vadd.f32 %v7095_v55, %v7093_v58 }
 0x429   : > { %v7101_v25 = vpop.eup %5018  ;;  %5038 = vpow2.f32 %v1999_v43 }
 0x42a   : > { %v5021_v19 = vpop.eup %5020  ;;  %5040 = vrcp.f32 %v2050_v16  ;;  %v2147_v30 = vadd.f32 %v7097_v32, %v2146_v5  ;;  %v2060_v10 = vpop.xlane.xlu0 %2059  ;;  %v9829_v16 = vld [vmem:[#allocation118_spill] sm:$0xff] }
 0x42b   : > { %v7107_v46 = vpop.eup %5022  ;;  %5042 = vrcp.f32 %v2055_v7  ;;  %v2222_v56 = vmul.f32 %v5021_v19, %v6712_v31  ;;  %v2224_v40 = vmul.f32 %v5021_v19, %v6720_v28  ;;  %v2221_v6 = vmul.f32 %v5021_v19, %v6710_v42 }
 0x42c   : > { %v7112_v26 = vpop.eup %5024  ;;  %5044 = vrcp.f32 %v2060_v10  ;;  %v2223_v21 = vmul.f32 %v5021_v19, %v6715_v57  ;;  %v2148_v51 = vadd.f32 %v7101_v25, %v2147_v30  ;;  %v9831_v30 = vld [vmem:[#allocation52_spill] sm:$0xff]  ;;  %v9833_v10 = vld [vmem:[#allocation53_spill] sm:$0xff] }
 0x42d   : > { %v7117_v35 = vpop.eup %5026  ;;  %v2334_v20 = vpack.c.bf16 %v2222_v56, %v2218_v49  ;;  %v2336_v44 = vpack.c.bf16 %v2224_v40, %v2220_v11  ;;  %v2333_v27 = vpack.c.bf16 %v2221_v6, %v2217_v50  ;;  %v2151_v31 = vadd.f32 %v7112_v26, %v7107_v46 }
 0x42e   : > { %v7121_v28 = vpop.eup %5028  ;;  %v2335_v42 = vpack.c.bf16 %v2223_v21, %v2219_v53  ;;  %2149 = vadd.xlane.f32.xlu0 %v2148_v51  ;;  %v2065_v59 = vpop.xlane.xlu1 %2064  ;;  %v9834_v53 = vld [vmem:[#allocation50_spill] sm:$0xff] }
 0x42f   : > { %v5031_v63 = vpop.eup %5030  ;;  %2424 = vmatprep.subr.bf16.mxu0 %v2334_v20  ;;  %2467 = vmatprep.subr.bf16.mxu1 %v2336_v44  ;;  %v2152_v57 = vadd.f32 %v7117_v35, %v2151_v31  ;;  %5046 = vrcp.f32 %v2065_v59  ;;  %v9835_v44 = vld [vmem:[#allocation51_spill] sm:$0xff] }
 0x430   : > { %v7124_v54 = vpop.eup %5032  ;;  %2425 = vmatpush1.bf16.xpose.msra.mxu0 %v2333_v27  ;;  %2468 = vmatpush1.bf16.xpose.msra.mxu1 %v2335_v42  ;;  %v2226_v14 = vmul.f32 %v5031_v63, %v6728_v12  ;;  %v2228_v0 = vmul.f32 %v5031_v63, %v6739_v23  ;;  %v2225_v36 = vmul.f32 %v5031_v63, %v6726_v48 }
 0x431   : > { %v7126_v37 = vpop.eup %5034  ;;  %v2153_v1 = vadd.f32 %v7121_v28, %v2152_v57  ;;  %v2227_v15 = vmul.f32 %v5031_v63, %v6734_v13  ;;  %v9830_v13 = vld [vmem:[#allocation48_spill] sm:$0xff]  ;;  %v9836_v63 = vld [vmem:[#allocation46_spill] sm:$0xff]  ;;  %v9837_v57 = vld [vmem:[#allocation47_spill] sm:$0xff] }
 0x432   : > { %v7129_v33 = vpop.eup %5036  ;;  %v2156_v39 = vadd.f32 %v7126_v37, %v7124_v54  ;;  %v2070_v52 = vpop.xlane.xlu0 %2069 }
 0x433   : > { %v7133_v24 = vpop.eup %5038  ;;  %2154 = vadd.xlane.f32.xlu1 %v2153_v1  ;;  %5048 = vrcp.f32 %v2070_v52 }
 0x434   : > { %v5041_v18 = vpop.eup %5040  ;;  %v2157_v9 = vadd.f32 %v7129_v33, %v2156_v39 }
 0x435   : > { %v5043_v29 = vpop.eup %5042  ;;  %v2230_v62 = vmul.f32 %v5041_v18, %v6747_v17  ;;  %v2232_v43 = vmul.f32 %v5041_v18, %v9827_v61  ;;  %v2229_v34 = vmul.f32 %v5041_v18, %v9828_v3  ;;  %v2231_v12 = vmul.f32 %v5041_v18, %v9829_v16  ;;  %v9832_v17 = vld [vmem:[#allocation49_spill] sm:$0xff]  ;;  %v9838_v18 = vld [vmem:[#allocation54_spill] sm:$0xff] }
 0x436   : > { %v5045_v7 = vpop.eup %5044  ;;  %v2158_v23 = vadd.f32 %v7133_v24, %v2157_v9  ;;  %v2075_v11 = vpop.xlane.xlu1 %2074  ;;  %v2234_v50 = vmul.f32 %v5043_v29, %v9830_v13  ;;  %v2236_v40 = vmul.f32 %v5043_v29, %v9832_v17  ;;  %v2233_v59 = vmul.f32 %v5043_v29, %v9836_v63  ;;  %v9845_v13 = vld [vmem:[#allocation56_spill] sm:$0xff] }
 0x437   : > { %v2338_v5 = vpack.c.bf16 %v2230_v62, %v2226_v14  ;;  %v2340_v49 = vpack.c.bf16 %v2232_v43, %v2228_v0  ;;  %v2337_v19 = vpack.c.bf16 %v2229_v34, %v2225_v36  ;;  %v2339_v48 = vpack.c.bf16 %v2231_v12, %v2227_v15  ;;  %v9839_v15 = vld [vmem:[#allocation58_spill] sm:$0xff]  ;;  %v9840_v62 = vld [vmem:[#allocation55_spill] sm:$0xff]  ;;  %v445_v34 = vld [vmem:[%s9568_s10 + $0x8] sm:$0xff] }
 0x438   : > { %2159 = vadd.xlane.f32.xlu0 %v2158_v23  ;;  %v2238_v56 = vmul.f32 %v5045_v7, %v9831_v30  ;;  %v2240_v6 = vmul.f32 %v5045_v7, %v9833_v10  ;;  %v2237_v21 = vmul.f32 %v5045_v7, %v9834_v53  ;;  %5050 = vrcp.f32 %v2075_v11  ;;  %v9841_v43 = vld [vmem:[#allocation59_spill] sm:$0xff]  ;;  %v9843_v23 = vld [vmem:[#allocation60_spill] sm:$0xff]  ;;  %v9846_v10 = vld [vmem:[#allocation62_spill] sm:$0xff] }
 0x439   : > { %2426 = vmatprep.subr.bf16.mxu0 %v2338_v5  ;;  %2469 = vmatprep.subr.bf16.mxu1 %v2340_v49  ;;  %v2239_v27 = vmul.f32 %v5045_v7, %v9835_v44  ;;  %v5047_v42 = vpop.eup %5046  ;;  %v2235_v1 = vmul.f32 %v5043_v29, %v9837_v57  ;;  %v9842_v29 = vld [vmem:[#allocation57_spill] sm:$0xff]  ;;  %v9847_v53 = vld [vmem:[#allocation66_spill] sm:$0xff]  ;;  %v9849_v44 = vld [vmem:[#allocation67_spill] sm:$0xff] }
 0x43a   : > { %2427 = vmatpush1.bf16.xpose.msra.mxu0 %v2337_v19  ;;  %2470 = vmatpush1.bf16.xpose.msra.mxu1 %v2339_v48  ;;  %v2342_v51 = vpack.c.bf16 %v2238_v56, %v2234_v50  ;;  %v2344_v20 = vpack.c.bf16 %v2240_v6, %v2236_v40  ;;  %v2080_v31 = vpop.xlane.xlu0 %2079  ;;  %v2341_v14 = vpack.c.bf16 %v2237_v21, %v2233_v59  ;;  %v9844_v48 = vld [vmem:[#allocation125_spill] sm:$0xff] }
 0x43b   : > { %5052 = vrcp.f32 %v2080_v31  ;;  %v2343_v0 = vpack.c.bf16 %v2239_v27, %v2235_v1  ;;  %v2242_v36 = vmul.f32 %v5047_v42, %v9838_v18  ;;  %v2244_v61 = vmul.f32 %v5047_v42, %v9840_v62  ;;  %v9850_v59 = vld [vmem:[#allocation65_spill] sm:$0xff] }
 0x43c   : > { %2428 = vmatprep.subr.bf16.mxu0 %v2342_v51  ;;  %2471 = vmatprep.subr.bf16.mxu1 %v2344_v20  ;;  %v2241_v11 = vmul.f32 %v5047_v42, %v9844_v48  ;;  %v2243_v50 = vmul.f32 %v5047_v42, %v9845_v13  ;;  %v9848_v51 = vld [vmem:[#allocation63_spill] sm:$0xff]  ;;  %v9851_v42 = vld [vmem:[#allocation68_spill] sm:$0xff] }
 0x43d   : > { %v5049_v39 = vpop.eup %5048  ;;  %v9859_v13 = vld [vmem:[#allocation76_spill] sm:$0xff] }
 0x43e   : > { %v2085_v52 = vpop.xlane.xlu1 %2084  ;;  %v2246_v9 = vmul.f32 %v5049_v39, %v9839_v15  ;;  %v2248_v3 = vmul.f32 %v5049_v39, %v9841_v43  ;;  %v2245_v7 = vmul.f32 %v5049_v39, %v9842_v29  ;;  %v2247_v5 = vmul.f32 %v5049_v39, %v9843_v23  ;;  %v446_v39 = vld [vmem:[%s9568_s10 + $0x10] sm:$0xff]  ;;  %v9856_v29 = vld [vmem:[#allocation71_spill] sm:$0xff] }
 0x43f   : > { %5054 = vrcp.f32 %v2085_v52  ;;  %v9852_v52 = vld [vmem:[#allocation61_spill] sm:$0xff]  ;;  %v9857_v23 = vld [vmem:[#allocation75_spill] sm:$0xff] }
 0x440   : > { %v2346_v16 = vpack.c.bf16 %v2246_v9, %v2242_v36  ;;  %v2348_v12 = vpack.c.bf16 %v2248_v3, %v2244_v61  ;;  %v2345_v56 = vpack.c.bf16 %v2245_v7, %v2241_v11  ;;  %v2347_v17 = vpack.c.bf16 %v2247_v5, %v2243_v50  ;;  %v9853_v36 = vld [vmem:[#allocation64_spill] sm:$0xff]  ;;  %v9854_v3 = vld [vmem:[#allocation70_spill] sm:$0xff]  ;;  %v9858_v11 = vld [vmem:[#allocation73_spill] sm:$0xff] }
 0x442   : > { %2429 = vmatpush1.bf16.xpose.msra.mxu0 %v2341_v14  ;;  %2472 = vmatpush1.bf16.xpose.msra.mxu1 %v2343_v0  ;;  %v2090_v49 = vpop.xlane.xlu0 %2089  ;;  %v5051_v19 = vpop.eup %5050 }
 0x443   : > { %2430 = vmatprep.subr.bf16.mxu0 %v2346_v16  ;;  %2473 = vmatprep.subr.bf16.mxu1 %v2348_v12  ;;  %5056 = vrcp.f32 %v2090_v49  ;;  %v2250_v6 = vmul.f32 %v5051_v19, %v9846_v10  ;;  %v2252_v20 = vmul.f32 %v5051_v19, %v9848_v51  ;;  %v2249_v18 = vmul.f32 %v5051_v19, %v9852_v52  ;;  %v9855_v16 = vld [vmem:[#allocation74_spill] sm:$0xff]  ;;  %v9861_v10 = vld [vmem:[#allocation72_spill] sm:$0xff]  ;;  %v9866_v52 = vld [vmem:[#allocation81_spill] sm:$0xff] }
 0x444   : > { %456 = vperm.xlu1 %4765, %v445_v34   ;;  %v2251_v15 = vmul.f32 %v5051_v19, %v9853_v36 }
 0x445   : > { %v5053_v30 = vpop.eup %5052 }
 0x446   : > { %v2095_v40 = vpop.xlane.xlu1 %2094  ;;  %v2254_v21 = vmul.f32 %v5053_v30, %v9847_v53  ;;  %v2256_v27 = vmul.f32 %v5053_v30, %v9849_v44  ;;  %v2253_v57 = vmul.f32 %v5053_v30, %v9850_v59  ;;  %v2255_v1 = vmul.f32 %v5053_v30, %v9851_v42  ;;  %v9862_v44 = vld [vmem:[#allocation78_spill] sm:$0xff]  ;;  %v9864_v59 = vld [vmem:[#allocation79_spill] sm:$0xff] }
 0x447   : > { %5058 = vrcp.f32 %v2095_v40  ;;  %v9865_v42 = vld [vmem:[#allocation83_spill] sm:$0xff] }
 0x448   : > { %v2350_v31 = vpack.c.bf16 %v2254_v21, %v2250_v6  ;;  %v2352_v63 = vpack.c.bf16 %v2256_v27, %v2252_v20  ;;  %v2349_v62 = vpack.c.bf16 %v2253_v57, %v2249_v18  ;;  %v2351_v61 = vpack.c.bf16 %v2255_v1, %v2251_v15 }
 0x449   : > { %v5055_v0 = vpop.eup %5054 }
 0x44a   : > { %2431 = vmatpush1.bf16.xpose.msra.mxu0 %v2345_v56  ;;  %2474 = vmatpush1.bf16.xpose.msra.mxu1 %v2347_v17  ;;  %v2100_v14 = vpop.xlane.xlu0 %2099  ;;  %v2258_v34 = vmul.f32 %v5055_v0, %v9854_v3  ;;  %v2260_v7 = vmul.f32 %v5055_v0, %v9856_v29  ;;  %v9860_v17 = vld [vmem:[#allocation69_spill] sm:$0xff]  ;;  %v2259_v6 = vmul.f32 %v5055_v0, %v9861_v10  ;;  %v9875_v10 = vld [vmem:[#allocation92_spill] sm:$0xff] }
 0x44b   : > { %2432 = vmatprep.subr.bf16.mxu0 %v2350_v31  ;;  %2475 = vmatprep.subr.bf16.mxu1 %v2352_v63  ;;  %5060 = vrcp.f32 %v2100_v14  ;;  %v2257_v40 = vmul.f32 %v5055_v0, %v9860_v17  ;;  %v9863_v31 = vld [vmem:[#allocation82_spill] sm:$0xff]  ;;  %v9867_v0 = vld [vmem:[#allocation84_spill] sm:$0xff] }
 0x44d   : > { %v5057_v9 = vpop.eup %5056 }
 0x44e   : > { %461 = vperm.xlu0 %4764, %v446_v39   ;;  %v2105_v43 = vpop.xlane.xlu1 %2104  ;;  %v2262_v12 = vmul.f32 %v5057_v9, %v9855_v16  ;;  %v2264_v5 = vmul.f32 %v5057_v9, %v9857_v23  ;;  %v2261_v19 = vmul.f32 %v5057_v9, %v9858_v11  ;;  %v2263_v50 = vmul.f32 %v5057_v9, %v9859_v13 }
 0x44f   : > { %5062 = vrcp.f32 %v2105_v43  ;;  %v9869_v43 = vld [vmem:[#allocation80_spill] sm:$0xff] }
 0x450   : > { %v2354_v49 = vpack.c.bf16 %v2262_v12, %v2258_v34  ;;  %v2356_v48 = vpack.c.bf16 %v2264_v5, %v2260_v7  ;;  %v2353_v21 = vpack.c.bf16 %v2261_v19, %v2257_v40  ;;  %v2355_v51 = vpack.c.bf16 %v2263_v50, %v2259_v6  ;;  %v9870_v7 = vld [vmem:[#allocation86_spill] sm:$0xff]  ;;  %v9873_v19 = vld [vmem:[#allocation91_spill] sm:$0xff]  ;;  %v9874_v40 = vld [vmem:[#allocation89_spill] sm:$0xff] }
 0x451   : > { %v5059_v56 = vpop.eup %5058  ;;  %v9871_v5 = vld [vmem:[#allocation90_spill] sm:$0xff] }
 0x452   : > { %2433 = vmatpush1.bf16.xpose.msra.mxu0 %v2349_v62  ;;  %2476 = vmatpush1.bf16.xpose.msra.mxu1 %v2351_v61  ;;  %v2110_v30 = vpop.xlane.xlu0 %2109  ;;  %v2266_v27 = vmul.f32 %v5059_v56, %v9862_v44  ;;  %v2268_v57 = vmul.f32 %v5059_v56, %v9864_v59  ;;  %v9868_v62 = vld [vmem:[#allocation77_spill] sm:$0xff]  ;;  %v2267_v3 = vmul.f32 %v5059_v56, %v9869_v43 }
 0x453   : > { %2434 = vmatprep.subr.bf16.mxu0 %v2354_v49  ;;  %2477 = vmatprep.subr.bf16.mxu1 %v2356_v48  ;;  %5064 = vrcp.f32 %v2110_v30  ;;  %v2265_v61 = vmul.f32 %v5059_v56, %v9868_v62  ;;  %v9872_v48 = vld [vmem:[#allocation87_spill] sm:$0xff] }
 0x455   : > { %v5061_v53 = vpop.eup %5060 }
 0x456   : > { %v2115_v20 = vpop.xlane.xlu1 %2114  ;;  %v2270_v63 = vmul.f32 %v5061_v53, %v9863_v31  ;;  %v2272_v1 = vmul.f32 %v5061_v53, %v9865_v42  ;;  %v2269_v18 = vmul.f32 %v5061_v53, %v9866_v52  ;;  %v2271_v36 = vmul.f32 %v5061_v53, %v9867_v0 }
 0x457   : > { %5066 = vrcp.f32 %v2115_v20  ;;  %v9877_v20 = vld [vmem:[#allocation88_spill] sm:$0xff] }
 0x458   : > { %v2358_v39 = vpack.c.bf16 %v2270_v63, %v2266_v27  ;;  %v2360_v14 = vpack.c.bf16 %v2272_v1, %v2268_v57  ;;  %v2357_v16 = vpack.c.bf16 %v2269_v18, %v2265_v61  ;;  %v2359_v12 = vpack.c.bf16 %v2271_v36, %v2267_v3  ;;  %v9878_v57 = vld [vmem:[#allocation94_spill] sm:$0xff]  ;;  %v9882_v3 = vld [vmem:[#allocation93_spill] sm:$0xff] }
 0x459   : > { %v5063_v9 = vpop.eup %5062  ;;  %v9879_v1 = vld [vmem:[#allocation98_spill] sm:$0xff] }
 0x45a   : > { %2435 = vmatpush1.bf16.xpose.msra.mxu0 %v2353_v21  ;;  %2478 = vmatpush1.bf16.xpose.msra.mxu1 %v2355_v51  ;;  %v2120_v15 = vpop.xlane.xlu0 %2119  ;;  %v2274_v23 = vmul.f32 %v5063_v9, %v9870_v7  ;;  %v2276_v11 = vmul.f32 %v5063_v9, %v9872_v48  ;;  %v9876_v21 = vld [vmem:[#allocation85_spill] sm:$0xff]  ;;  %v2275_v44 = vmul.f32 %v5063_v9, %v9877_v20  ;;  %v9885_v7 = vld [vmem:[#allocation35_spill] sm:$0xff]  ;;  %v9890_v20 = vld [vmem:[#allocation108_spill] sm:$0xff] }
 0x45b   : > { %2436 = vmatprep.subr.bf16.mxu0 %v2358_v39  ;;  %2479 = vmatprep.subr.bf16.mxu1 %v2360_v14  ;;  %5068 = vrcp.f32 %v2120_v15  ;;  %v2273_v51 = vmul.f32 %v5063_v9, %v9876_v21  ;;  %v9880_v14 = vld [vmem:[#allocation95_spill] sm:$0xff]  ;;  %v9881_v15 = vld [vmem:[#allocation97_spill] sm:$0xff] }
 0x45d   : > { %v5065_v34 = vpop.eup %5064  ;;  %v2125_v29 = vpop.xlane.xlu1 %2124 }
 0x45e   : > { %v2278_v49 = vmul.f32 %v5065_v34, %v9871_v5  ;;  %v2280_v13 = vmul.f32 %v5065_v34, %v9873_v19  ;;  %5070 = vrcp.f32 %v2125_v29  ;;  %v2277_v56 = vmul.f32 %v5065_v34, %v9874_v40  ;;  %v9884_v29 = vld [vmem:[#allocation36_spill] sm:$0xff] }
 0x45f   : > { %v2279_v6 = vmul.f32 %v5065_v34, %v9875_v10 }
 0x460   : > { %v2362_v50 = vpack.c.bf16 %v2278_v49, %v2274_v23  ;;  %v2364_v30 = vpack.c.bf16 %v2280_v13, %v2276_v11  ;;  %v2130_v17 = vpop.xlane.xlu0 %2129  ;;  %v2361_v31 = vpack.c.bf16 %v2277_v56, %v2273_v51  ;;  %v9889_v51 = vld [vmem:[#allocation104_spill] sm:$0xff] }
 0x461   : > { %5072 = vrcp.f32 %v2130_v17  ;;  %v5067_v53 = vpop.eup %5066  ;;  %v2363_v63 = vpack.c.bf16 %v2279_v6, %v2275_v44  ;;  %v9887_v6 = vld [vmem:[#allocation101_spill] sm:$0xff] }
 0x462   : > { %2437 = vmatpush1.bf16.xpose.msra.mxu0 %v2357_v16  ;;  %2480 = vmatpush1.bf16.xpose.msra.mxu1 %v2359_v12  ;;  %v2282_v42 = vmul.f32 %v5067_v53, %v9878_v57  ;;  %v2284_v52 = vmul.f32 %v5067_v53, %v9880_v14  ;;  %v2281_v34 = vmul.f32 %v5067_v53, %v9882_v3  ;;  %v9883_v16 = vld [vmem:[#allocation96_spill] sm:$0xff]  ;;  %v9893_v57 = vld [vmem:[#allocation99_spill] sm:$0xff] }
 0x463   : > { %2438 = vmatprep.subr.bf16.mxu0 %v2362_v50  ;;  %2481 = vmatprep.subr.bf16.mxu1 %v2364_v30  ;;  %v2283_v12 = vmul.f32 %v5067_v53, %v9883_v16  ;;  %v9888_v53 = vld [vmem:[#allocation105_spill] sm:$0xff]  ;;  %v9896_v16 = vld [vmem:[#allocation112_spill] sm:$0xff] }
 0x464   : > { %v2135_v59 = vpop.xlane.xlu1 %2134 }
 0x465   : > { %v5069_v27 = vpop.eup %5068  ;;  %5074 = vrcp.f32 %v2135_v59 }
 0x466   : > { %v2286_v39 = vmul.f32 %v5069_v27, %v9879_v1  ;;  %v2288_v18 = vmul.f32 %v5069_v27, %v6985_v4  ;;  %v2285_v62 = vmul.f32 %v5069_v27, %v9881_v15  ;;  %v2287_v61 = vmul.f32 %v5069_v27, %v6980_v2  ;;  %v9894_v1 = vld [vmem:[#allocation102_spill] sm:$0xff] }
 0x468   : > { %v2366_v0 = vpack.c.bf16 %v2286_v39, %v2282_v42  ;;  %v2368_v36 = vpack.c.bf16 %v2288_v18, %v2284_v52  ;;  %v2140_v9 = vpop.xlane.xlu0 %2139  ;;  %v5071_v43 = vpop.eup %5070  ;;  %v2365_v23 = vpack.c.bf16 %v2285_v62, %v2281_v34  ;;  %v2367_v5 = vpack.c.bf16 %v2287_v61, %v2283_v12 }
 0x469   : > { %5076 = vrcp.f32 %v2140_v9  ;;  %v2290_v2 = vmul.f32 %v5071_v43, %v6993_v22  ;;  %v2292_v48 = vmul.f32 %v5071_v43, %v7001_v47  ;;  %v2289_v40 = vmul.f32 %v5071_v43, %v6991_v60  ;;  %v9886_v22 = vld [vmem:[#allocation100_spill] sm:$0xff]  ;;  %v9892_v60 = vld [vmem:[#allocation106_spill] sm:$0xff] }
 0x46a   : > { %2439 = vmatpush1.bf16.xpose.msra.mxu0 %v2361_v31  ;;  %2482 = vmatpush1.bf16.xpose.msra.mxu1 %v2363_v63  ;;  %v2291_v56 = vmul.f32 %v5071_v43, %v9886_v22  ;;  %v9891_v31 = vld [vmem:[#allocation103_spill] sm:$0xff]  ;;  %v9895_v43 = vld [vmem:[#allocation109_spill] sm:$0xff] }
 0x46b   : > { %2440 = vmatprep.subr.bf16.mxu0 %v2366_v0  ;;  %2483 = vmatprep.subr.bf16.mxu1 %v2368_v36  ;;  %v5073_v4 = vpop.eup %5072 }
 0x46c   : > { %2549 = vxpose.xlu0.b32.start.end [1/1] (short) %v9884_v29, 128  ;;  %v2294_v49 = vmul.f32 %v5073_v4, %v7009_v41  ;;  %v2296_v11 = vmul.f32 %v5073_v4, %v7016_v8  ;;  %v2293_v50 = vmul.f32 %v5073_v4, %v7007_v38  ;;  %v2295_v30 = vmul.f32 %v5073_v4, %v7012_v45  ;;  %v2145_v18 = vpop.xlane.xlu1 %2144  ;;  %v9897_v4 = vld [vmem:[#allocation107_spill] sm:$0xff] }
 0x46d   : > { %2517 = vxpose.xlu1.b32.start.end [1/1] (short) %v9885_v7, 128  ;;  %5078 = vrcp.f32 %v2145_v18 }
 0x46e   : > { %v2370_v19 = vpack.c.bf16 %v2294_v49, %v2290_v2  ;;  %v2372_v13 = vpack.c.bf16 %v2296_v11, %v2292_v48  ;;  %v2369_v10 = vpack.c.bf16 %v2293_v50, %v2289_v40  ;;  %v2371_v47 = vpack.c.bf16 %v2295_v30, %v2291_v56  ;;  %v9900_v50 = vld [vmem:[#allocation38_spill] sm:$0xff] }
 0x46f   : > { %v5075_v17 = vpop.eup %5074 }
 0x470   : > { %v2298_v8 = vmul.f32 %v5075_v17, %v9887_v6  ;;  %v2300_v38 = vmul.f32 %v5075_v17, %v9889_v51  ;;  %v2297_v42 = vmul.f32 %v5075_v17, %v9893_v57  ;;  %v2299_v39 = vmul.f32 %v5075_v17, %v9894_v1 }
 0x472   : > { %2441 = vmatpush1.bf16.xpose.msra.mxu0 %v2365_v23  ;;  %2484 = vmatpush1.bf16.xpose.msra.mxu1 %v2367_v5  ;;  %v9898_v5 = vld [vmem:[#allocation110_spill] sm:$0xff] }
 0x473   : > { %2442 = vmatprep.subr.bf16.mxu0 %v2370_v19  ;;  %2485 = vmatprep.subr.bf16.mxu1 %v2372_v13  ;;  %v5077_v41 = vpop.eup %5076  ;;  %v9899_v19 = vld [vmem:[#allocation26_spill] sm:$0xff] }
 0x474   : > { %v2302_v21 = vmul.f32 %v5077_v41, %v9888_v53  ;;  %v2304_v45 = vmul.f32 %v5077_v41, %v9890_v20  ;;  %v2301_v63 = vmul.f32 %v5077_v41, %v9891_v31  ;;  %v2303_v59 = vmul.f32 %v5077_v41, %v9892_v60  ;;  %v9909_v31 = vld [vmem:[#allocation29_spill] sm:$0xff]  ;;  %v9911_v60 = vld [vmem:[#allocation39_spill] sm:$0xff] }
 0x476   : > { %v2374_v44 = vpack.c.bf16 %v2302_v21, %v2298_v8  ;;  %v2376_v27 = vpack.c.bf16 %v2304_v45, %v2300_v38  ;;  %v2373_v14 = vpack.c.bf16 %v2301_v63, %v2297_v42  ;;  %v2375_v52 = vpack.c.bf16 %v2303_v59, %v2299_v39  ;;  %v9907_v8 = vld [vmem:[#allocation23_spill] sm:$0xff]  ;;  %v9908_v21 = vld [vmem:[#allocation28_spill] sm:$0xff] }
 0x477   : > { %v5079_v15 = vpop.eup %5078 }
 0x478   : > { %v2306_v3 = vmul.f32 %v5079_v15, %v9895_v43  ;;  %v2308_v12 = vmul.f32 %v5079_v15, %v9896_v16  ;;  %v2305_v7 = vmul.f32 %v5079_v15, %v9897_v4  ;;  %v2307_v2 = vmul.f32 %v5079_v15, %v9898_v5  ;;  %v9914_v43 = vld [vmem:[#allocation27_spill] sm:$0xff] }
 0x479   : > { %v2584_v5 = vrot.slane %v9908_v21, 2 }
 0x47a   : > { %2443 = vmatpush1.bf16.xpose.msra.mxu0 %v2369_v10  ;;  %2486 = vmatpush1.bf16.xpose.msra.mxu1 %v2371_v47  ;;  %v9905_v47 = vld [vmem:[#allocation40_spill] sm:$0xff] }
 0x47b   : > { %2444 = vmatprep.subr.bf16.mxu0 %v2374_v44  ;;  %2487 = vmatprep.subr.bf16.mxu1 %v2376_v27 }
 0x482   : > { %2445 = vmatpush1.bf16.xpose.msra.mxu0 %v2373_v14  ;;  %2488 = vmatpush1.bf16.xpose.msra.mxu1 %v2375_v52 }
 0x4bb   : > { %v2150_v0 = vpop.xlane.xlu0 %2149 }
 0x4bc   : > { %5080 = vrcp.f32 %v2150_v0 }
 0x4c0   : > { %v2155_v36 = vpop.xlane.xlu1 %2154 }
 0x4c1   : > { %5082 = vrcp.f32 %v2155_v36 }
 0x4c4   : > { %v457_v9 = vpop.permute.xlu1 %456 }
 0x4c5   : > { %v2160_v62 = vpop.xlane.xlu0 %2159  ;;  %v565_v13 = vadd.f32 %v9899_v19, %v457_v9  ;;  %v660_v30 = vadd.f32 %v9900_v50, %v457_v9 }
 0x4c6   : > { %v5081_v61 = vpop.eup %5080  ;;  %5084 = vrcp.f32 %v2160_v62 }
 0x4c7   : > { %v2310_v34 = vmul.f32 %v5081_v61, %v7095_v55  ;;  %v2312_v29 = vmul.f32 %v5081_v61, %v7101_v25  ;;  %v2309_v23 = vmul.f32 %v5081_v61, %v7093_v58  ;;  %v2311_v49 = vmul.f32 %v5081_v61, %v7097_v32  ;;  %v9901_v25 = vld [vmem:[#allocation25_spill] sm:$0xff]  ;;  %v9903_v32 = vld [vmem:[#allocation30_spill] sm:$0xff] }
 0x4c8   : > { %v563_v22 = vadd.f32 %v9901_v25, %v457_v9  ;;  %v9902_v58 = vld [vmem:[#allocation37_spill] sm:$0xff]  ;;  %v2386_v53 = vpack.c.bf16 %v565_v13, %v9907_v8  ;;  %v2388_v51 = vpack.c.bf16 %v660_v30, %v9908_v21 }
 0x4c9   : > { %v2378_v48 = vpack.c.bf16 %v2310_v34, %v2306_v3  ;;  %v2380_v11 = vpack.c.bf16 %v2312_v29, %v2308_v12  ;;  %v2377_v17 = vpack.c.bf16 %v2309_v23, %v2305_v7  ;;  %v2379_v55 = vpack.c.bf16 %v2311_v49, %v2307_v2 }
 0x4ca   : > { %v658_v56 = vadd.f32 %v9902_v58, %v457_v9  ;;  %v2405_v1 = vrot.slane %v2386_v53, 2  ;;  %v2411_v14 = vrot.slane %v2388_v51, 2  ;;  %v9915_v2 = vmov 0.0  }
 0x4cb   : > { %2446 = vmatprep.subr.bf16.mxu0 %v2378_v48  ;;  %2489 = vmatprep.subr.bf16.mxu1 %v2380_v11  ;;  %v5083_v40 = vpop.eup %5082  ;;  %v2583_v49 = vrot.slane %v9914_v43, 2 }
 0x4cc   : > { %2447 = vmatpush1.bf16.xpose.msra.mxu0 %v2377_v17  ;;  %2490 = vmatpush1.bf16.xpose.msra.mxu1 %v2379_v55  ;;  %v2314_v38 = vmul.f32 %v5083_v40, %v7112_v26  ;;  %v2316_v20 = vmul.f32 %v5083_v40, %v7121_v28  ;;  %v2313_v45 = vmul.f32 %v5083_v40, %v7107_v46 }
 0x4cd   : > { %v462_v41 = vpop.permute.xlu0 %461  ;;  %v2315_v44 = vmul.f32 %v5083_v40, %v7117_v35  ;;  %v2387_v3 = vpack.c.bf16 %v658_v56, %v9914_v43 }
 0x4ce   : > { %v7238_v10 = vadd.f32 %v9903_v32, %v462_v41  ;;  %v7241_v6 = vadd.f32 %v9905_v47, %v462_v41  ;;  %v7250_v63 = vadd.f32 %v9909_v31, %v462_v41  ;;  %v7253_v59 = vadd.f32 %v9911_v60, %v462_v41 }
 0x4cf   : > { %v2408_v29 = vrot.slane %v2387_v3, 2 }
 0x4d0   : > { %9904 = vst [vmem:[#allocation111_spill] sm:$0xff] %v7238_v10  ;;  %9906 = vst [vmem:[#allocation113_spill] sm:$0xff] %v7241_v6  ;;  %v5085_v27 = vpop.eup %5084  ;;  %v2390_v57 = vpack.c.bf16 %v7238_v10, %v7238_v10  ;;  %v2392_v42 = vpack.c.bf16 %v7241_v6, %v7241_v6 }
 0x4d1   : > { %9910 = vst [vmem:[#allocation114_spill] sm:$0xff] %v7250_v63  ;;  %9912 = vst [vmem:[#allocation116_spill] sm:$0xff] %v7253_v59  ;;  %v2318_v26 = vmul.f32 %v5085_v27, %v7126_v37  ;;  %v2320_v28 = vmul.f32 %v5085_v27, %v7133_v24  ;;  %v2317_v46 = vmul.f32 %v5085_v27, %v7124_v54  ;;  %v9913_v24 = vld [vmem:[#allocation24_spill] sm:$0xff] }
 0x4d2   : > { %v2319_v35 = vmul.f32 %v5085_v27, %v7129_v33  ;;  %v2406_v39 = vrot.slane %v2390_v57, 2  ;;  %v2412_v52 = vrot.slane %v2392_v42, 2  ;;  %v2389_v37 = vpack.c.bf16 %v7250_v63, %v7250_v63 }
 0x4d3   : > { %v2382_v18 = vpack.c.bf16 %v2318_v26, %v2314_v38  ;;  %v2384_v0 = vpack.c.bf16 %v2320_v28, %v2316_v20  ;;  %v2381_v36 = vpack.c.bf16 %v2317_v46, %v2313_v45  ;;  %v2391_v54 = vpack.c.bf16 %v7253_v59, %v7253_v59 }
 0x4d4   : > { %v2383_v15 = vpack.c.bf16 %v2319_v35, %v2315_v44  ;;  %v2407_v62 = vsel %vm2401_vm3, %v2405_v1, %v2406_v39  ;;  %v2413_v61 = vsel %vm2401_vm3, %v2411_v14, %v2412_v52  ;;  %v2582_v33 = vrot.slane %v9907_v8, 2 }
 0x4d5   : > { %2448 = vmatprep.subr.bf16.mxu0 %v2382_v18  ;;  %2450 = vmatprep.mubr.bf16.mxu0 %v2407_v62  ;;  %v2385_v9 = vpack.c.bf16 %v563_v22, %v9913_v24  ;;  %v2403_v34 = vrot.slane %v2389_v37, 2  ;;  %v2409_v16 = vrot.slane %v2391_v54, 2  ;;  %v2581_v23 = vrot.slane %v9913_v24, 2 }
 0x4d6   : > { %2491 = vmatprep.subr.bf16.mxu1 %v2384_v0  ;;  %2493 = vmatprep.mubr.bf16.mxu1 %v2413_v61  ;;  %v2504_v39 = vstv %s762_s24  ;;  %s10385_s24 = sld [smem:[#allocation131_spill]] }
 0x4d7   : > { %2449 = vmatpush1.bf16.xpose.msra.mxu0 %v2381_v36  ;;  %2492 = vmatpush1.bf16.xpose.msra.mxu1 %v2383_v15  ;;  %v2402_v12 = vrot.slane %v2385_v9, 2  ;;  %v2410_v7 = vsel %vm2401_vm3, %v2408_v29, %v2409_v16  ;;  %v5406_v9 = vld [vmem:[%s5943_s12] sm:$0xff]  ;;  %v5408_v29 = vld [vmem:[%s5943_s12 + $0x10] sm:$0xff] }
 0x4d8   : > { %4544 = vmatprep.subr.msk.mxu0 %vm930_vm1, %v2582_v33 }
 0x4d9   : > { %v2404_v4 = vsel %vm2401_vm3, %v2402_v12, %v2403_v34  ;;  %v5407_v34 = vld [vmem:[%s5943_s12 + $0x8] sm:$0xff] }
 0x4dc   : > { %s9033_s11 = scalar_lea.hbm %s10385_s24, %s4616_s29 }
 0x4de   : > { %2451 = vmatmul.mubr.bf16.vlgmr.msra.gmra.mrb[76].mxu0 %v2404_v4  ;;  %2494 = vmatmul.mubr.bf16.vlgmr.msra.gmra.mrb[76].mxu1 %v2410_v7  ;;  %v5409_v7 = vld [vmem:[%s5943_s12 + $0x18] sm:$0xff] }
 0x4df   : > { %4545 = vmatpush1.msk.msra.mxu0 %vm930_vm1, %v2581_v23  ;;  %2753 = vmatprep.mubr.f32.mxu0 %v9915_v2 }
 0x4e0   : > { %4578 = vmatprep.subr.msk.mxu0 %vm930_vm1, %v2584_v5 }
 0x4ec   : > { %v7324_v25 = vpop.trf.xlu0 }
 0x4ed   : > { %v7281_v48 = vpop.trf.xlu1 }
 0x4ee   : > { %4546 = vmatmul.mubr.msk.f32.vlgmr.msra.gmra.mrb[80].mxu0 %vm833_vm2, %v7281_v48 }
 0x4ef   : > { %4579 = vmatpush1.msk.msra.mxu0 %vm930_vm1, %v2583_v49  ;;  %2759 = vmatprep.mubr.f32.mxu0 %v9915_v2 }
 0x4f0   : > { %v7334_v58 = vpop.trf.xlu0 }
 0x4f1   : > { %v7287_v11 = vpop.trf.xlu1 }
 0x4f2   : > { %4547 = vmatmul.mubr.msk.f32.gmra.mrb[82].mxu0 %vm833_vm2, %v7287_v11 }
 0x4f3   : > { %2765 = vmatprep.mubr.f32.mxu0 %v9915_v2 }
 0x4f4   : > { %v7343_v32 = vpop.trf.xlu0 }
 0x4f5   : > { %v7292_v19 = vpop.trf.xlu1 }
 0x4f6   : > { %4548 = vmatmul.mubr.msk.f32.gmra.mrb[84].mxu0 %vm833_vm2, %v7292_v19 }
 0x4f7   : > { %2771 = vmatprep.mubr.f32.mxu0 %v9915_v2 }
 0x4f8   : > { %v7353_v8 = vpop.trf.xlu0 }
 0x4f9   : > { %v7297_v13 = vpop.trf.xlu1 }
 0x4fa   : > { %4549 = vmatmul.mubr.msk.f32.gmra.mrb[86].mxu0 %vm833_vm2, %v7297_v13 }
 0x4fb   : > { %2777 = vmatprep.mubr.f32.mxu0 %v9915_v2 }
 0x4fc   : > { %v7362_v51 = vpop.trf.xlu0 }
 0x4fd   : > { %v7302_v50 = vpop.trf.xlu1 }
 0x4fe   : > { %4550 = vmatmul.mubr.msk.f32.gmra.mrb[88].mxu0 %vm833_vm2, %v7302_v50 }
 0x4ff   : > { %2783 = vmatprep.mubr.f32.mxu0 %v9915_v2 }
 0x500   : > { %v7372_v20 = vpop.trf.xlu0 }
 0x501   : > { %v7307_v30 = vpop.trf.xlu1 }
 0x502   : > { %4551 = vmatmul.mubr.msk.f32.gmra.mrb[90].mxu0 %vm833_vm2, %v7307_v30 }
 0x503   : > { %2789 = vmatprep.mubr.f32.mxu0 %v9915_v2 }
 0x504   : > { %v7377_v45 = vpop.trf.xlu0 }
 0x505   : > { %v7312_v17 = vpop.trf.xlu1 }
 0x506   : > { %4552 = vmatmul.mubr.msk.f32.gmra.mrb[92].mxu0 %vm833_vm2, %v7312_v17 }
 0x507   : > { %2795 = vmatprep.mubr.f32.mxu0 %v9915_v2 }
 0x508   : > { %v7385_v44 = vpop.trf.xlu0 }
 0x509   : > { %v7317_v55 = vpop.trf.xlu1 }
 0x50a   : > { %4553 = vmatmul.mubr.msk.f32.gmra.mrb[94].mxu0 %vm833_vm2, %v7317_v55 }
 0x50b   : > { %2801 = vmatprep.mubr.f32.mxu0 %v9915_v2 }
 0x50c   : > { %v7390_v27 = vpop.trf.xlu0 }
 0x50d   : > { %v7322_v40 = vpop.trf.xlu1 }
 0x50e   : > { %4554 = vmatmul.mubr.msk.f32.gmra.mrb[96].mxu0 %vm833_vm2, %v7322_v40 }
 0x50f   : > { %2807 = vmatprep.mubr.f32.mxu0 %v9915_v2 }
 0x510   : > { %v7398_v31 = vpop.trf.xlu0 }
 0x511   : > { %v7329_v22 = vpop.trf.xlu1 }
 0x512   : > { %4555 = vmatmul.mubr.msk.f32.gmra.mrb[98].mxu0 %vm833_vm2, %v7329_v22 }
 0x513   : > { %2813 = vmatprep.mubr.f32.mxu0 %v9915_v2 }
 0x514   : > { %v7403_v60 = vpop.trf.xlu0 }
 0x515   : > { %v7336_v56 = vpop.trf.xlu1 }
 0x516   : > { %4556 = vmatmul.mubr.msk.f32.gmra.mrb[100].mxu0 %vm833_vm2, %v7336_v56 }
 0x517   : > { %2819 = vmatprep.mubr.f32.mxu0 %v9915_v2 }
 0x518   : > { %v7411_v57 = vpop.trf.xlu0 }
 0x519   : > { %v7341_v41 = vpop.trf.xlu1 }
 0x51a   : > { %4557 = vmatmul.mubr.msk.f32.gmra.mrb[102].mxu0 %vm833_vm2, %v7341_v41 }
 0x51b   : > { %2825 = vmatprep.mubr.f32.mxu0 %v9915_v2 }
 0x51c   : > { %v7416_v42 = vpop.trf.xlu0 }
 0x51d   : > { %v7348_v47 = vpop.trf.xlu1 }
 0x51e   : > { %4558 = vmatmul.mubr.msk.f32.gmra.mrb[104].mxu0 %vm833_vm2, %v7348_v47 }
 0x51f   : > { %2831 = vmatprep.mubr.f32.mxu0 %v9915_v2 }
 0x520   : > { %v7424_v26 = vpop.trf.xlu0 }
 0x521   : > { %v7355_v53 = vpop.trf.xlu1 }
 0x522   : > { %4559 = vmatmul.mubr.msk.f32.gmra.mrb[106].mxu0 %vm833_vm2, %v7355_v53 }
 0x523   : > { %2837 = vmatprep.mubr.f32.mxu0 %v9915_v2 }
 0x524   : > { %v7429_v28 = vpop.trf.xlu0 }
 0x525   : > { %v7360_v21 = vpop.trf.xlu1 }
 0x526   : > { %4560 = vmatmul.mubr.msk.f32.gmra.mrb[108].mxu0 %vm833_vm2, %v7360_v21 }
 0x527   : > { %2843 = vmatprep.mubr.f32.mxu0 %v9915_v2 }
 0x528   : > { %v7437_v46 = vpop.trf.xlu0 }
 0x529   : > { %v7367_v38 = vpop.trf.xlu1 }
 0x52a   : > { %4561 = vmatmul.mubr.msk.f32.gmra.mrb[110].mxu0 %vm833_vm2, %v7367_v38 }
 0x52b   : > { %2849 = vmatprep.mubr.f32.mxu0 %v9915_v2 }
 0x52e   : > { %4562 = vmatmul.mubr.msk.f32.gmra.mrb[112].mxu0 %vm833_vm2, %v7324_v25 }
 0x52f   : > { %2855 = vmatprep.mubr.f32.mxu0 %v9915_v2 }
 0x532   : > { %4563 = vmatmul.mubr.msk.f32.gmra.mrb[114].mxu0 %vm833_vm2, %v7334_v58 }
 0x533   : > { %2861 = vmatprep.mubr.f32.mxu0 %v9915_v2 }
 0x536   : > { %4564 = vmatmul.mubr.msk.f32.gmra.mrb[116].mxu0 %vm833_vm2, %v7343_v32 }
 0x537   : > { %2867 = vmatprep.mubr.f32.mxu0 %v9915_v2 }
 0x53a   : > { %4565 = vmatmul.mubr.msk.f32.gmra.mrb[118].mxu0 %vm833_vm2, %v7353_v8 }
 0x53b   : > { %2873 = vmatprep.mubr.f32.mxu0 %v9915_v2 }
 0x53e   : > { %4566 = vmatmul.mubr.msk.f32.gmra.mrb[120].mxu0 %vm833_vm2, %v7362_v51 }
 0x53f   : > { %2879 = vmatprep.mubr.f32.mxu0 %v9915_v2 }
 0x542   : > { %4567 = vmatmul.mubr.msk.f32.gmra.mrb[122].mxu0 %vm833_vm2, %v7372_v20 }
 0x543   : > { %2885 = vmatprep.mubr.f32.mxu0 %v9915_v2 }
 0x546   : > { %4568 = vmatmul.mubr.msk.f32.gmra.mrb[124].mxu0 %vm833_vm2, %v7377_v45 }
 0x547   : > { %2891 = vmatprep.mubr.f32.mxu0 %v9915_v2 }
 0x54a   : > { %4569 = vmatmul.mubr.msk.f32.gmra.mrb[126].mxu0 %vm833_vm2, %v7385_v44 }
 0x54b   : > { %2897 = vmatprep.mubr.f32.mxu0 %v9915_v2 }
 0x54e   : > { %4570 = vmatmul.mubr.msk.f32.gmra.mrb[128].mxu0 %vm833_vm2, %v7390_v27 }
 0x54f   : > { %2903 = vmatprep.mubr.f32.mxu0 %v9915_v2 }
 0x552   : > { %4571 = vmatmul.mubr.msk.f32.gmra.mrb[130].mxu0 %vm833_vm2, %v7398_v31 }
 0x553   : > { %2909 = vmatprep.mubr.f32.mxu0 %v9915_v2 }
 0x556   : > { %4572 = vmatmul.mubr.msk.f32.gmra.mrb[132].mxu0 %vm833_vm2, %v7403_v60 }
 0x557   : > { %2915 = vmatprep.mubr.f32.mxu0 %v9915_v2 }
 0x55a   : > { %4573 = vmatmul.mubr.msk.f32.gmra.mrb[134].mxu0 %vm833_vm2, %v7411_v57 }
 0x55b   : > { %2921 = vmatprep.mubr.f32.mxu0 %v9915_v2 }
 0x55e   : > { %4574 = vmatmul.mubr.msk.f32.gmra.mrb[136].mxu0 %vm833_vm2, %v7416_v42 }
 0x55f   : > { %2927 = vmatprep.mubr.f32.mxu0 %v9915_v2 }
 0x562   : > { %4575 = vmatmul.mubr.msk.f32.gmra.mrb[138].mxu0 %vm833_vm2, %v7424_v26 }
 0x563   : > { %2933 = vmatprep.mubr.f32.mxu0 %v9915_v2 }
 0x566   : > { %4576 = vmatmul.mubr.msk.f32.gmra.mrb[140].mxu0 %vm833_vm2, %v7429_v28 }
 0x567   : > { %2939 = vmatprep.mubr.f32.mxu0 %v9915_v2 }
 0x56a   : > { %4577 = vmatmul.mubr.msk.f32.gmra.mrb[142].mxu0 %vm833_vm2, %v7437_v46 }
 0x56b   : > { %3010 = vmatprep.mubr.f32.mxu0 %v9915_v2 }
 0x56e   : > { %4580 = vmatmul.mubr.msk.f32.vlgmr.msra.gmra.mrb[144].mxu0 %vm833_vm2, %v7281_v48 }
 0x56f   : > { %3016 = vmatprep.mubr.f32.mxu0 %v9915_v2 }
 0x572   : > { %4581 = vmatmul.mubr.msk.f32.gmra.mrb[146].mxu0 %vm833_vm2, %v7287_v11 }
 0x573   : > { %3022 = vmatprep.mubr.f32.mxu0 %v9915_v2 }
 0x576   : > { %4582 = vmatmul.mubr.msk.f32.gmra.mrb[148].mxu0 %vm833_vm2, %v7292_v19 }
 0x577   : > { %3028 = vmatprep.mubr.f32.mxu0 %v9915_v2 }
 0x57a   : > { %4583 = vmatmul.mubr.msk.f32.gmra.mrb[150].mxu0 %vm833_vm2, %v7297_v13 }
 0x57b   : > { %3034 = vmatprep.mubr.f32.mxu0 %v9915_v2 }
 0x57e   : > { %4584 = vmatmul.mubr.msk.f32.gmra.mrb[152].mxu0 %vm833_vm2, %v7302_v50 }
 0x57f   : > { %3040 = vmatprep.mubr.f32.mxu0 %v9915_v2 }
 0x582   : > { %4585 = vmatmul.mubr.msk.f32.gmra.mrb[154].mxu0 %vm833_vm2, %v7307_v30 }
 0x583   : > { %3046 = vmatprep.mubr.f32.mxu0 %v9915_v2 }
 0x586   : > { %4586 = vmatmul.mubr.msk.f32.gmra.mrb[156].mxu0 %vm833_vm2, %v7312_v17 }
 0x587   : > { %3052 = vmatprep.mubr.f32.mxu0 %v9915_v2 }
 0x58a   : > { %4587 = vmatmul.mubr.msk.f32.gmra.mrb[158].mxu0 %vm833_vm2, %v7317_v55 }
 0x58b   : > { %3058 = vmatprep.mubr.f32.mxu0 %v9915_v2 }
 0x58e   : > { %4588 = vmatmul.mubr.msk.f32.gmra.mrb[160].mxu0 %vm833_vm2, %v7322_v40 }
 0x58f   : > { %3064 = vmatprep.mubr.f32.mxu0 %v9915_v2 }
 0x592   : > { %4589 = vmatmul.mubr.msk.f32.gmra.mrb[162].mxu0 %vm833_vm2, %v7329_v22 }
 0x593   : > { %3070 = vmatprep.mubr.f32.mxu0 %v9915_v2 }
 0x596   : > { %4590 = vmatmul.mubr.msk.f32.gmra.mrb[164].mxu0 %vm833_vm2, %v7336_v56 }
 0x597   : > { %3076 = vmatprep.mubr.f32.mxu0 %v9915_v2 }
 0x59a   : > { %4591 = vmatmul.mubr.msk.f32.gmra.mrb[166].mxu0 %vm833_vm2, %v7341_v41 }
 0x59b   : > { %3082 = vmatprep.mubr.f32.mxu0 %v9915_v2 }
 0x59e   : > { %4592 = vmatmul.mubr.msk.f32.gmra.mrb[168].mxu0 %vm833_vm2, %v7348_v47 }
 0x59f   : > { %3088 = vmatprep.mubr.f32.mxu0 %v9915_v2 }
 0x5a2   : > { %4593 = vmatmul.mubr.msk.f32.gmra.mrb[170].mxu0 %vm833_vm2, %v7355_v53 }
 0x5a3   : > { %3094 = vmatprep.mubr.f32.mxu0 %v9915_v2 }
 0x5a6   : > { %4594 = vmatmul.mubr.msk.f32.gmra.mrb[172].mxu0 %vm833_vm2, %v7360_v21 }
 0x5a7   : > { %3100 = vmatprep.mubr.f32.mxu0 %v9915_v2 }
 0x5aa   : > { %4595 = vmatmul.mubr.msk.f32.gmra.mrb[174].mxu0 %vm833_vm2, %v7367_v38 }
 0x5ab   : > { %3106 = vmatprep.mubr.f32.mxu0 %v9915_v2 }
 0x5ae   : > { %4596 = vmatmul.mubr.msk.f32.gmra.mrb[176].mxu0 %vm833_vm2, %v7324_v25 }
 0x5af   : > { %3112 = vmatprep.mubr.f32.mxu0 %v9915_v2 }
 0x5b1   : > { %v2452_v35 = vpop.f32.mrb[76].mxu0  ;;  %v2495_v1 = vpop.f32.mrb[76].mxu1 }
 0x5b2   : > { %v2496_v14 = vadd.f32 %v2495_v1, %v2452_v35  ;;  %v2454_v52 = vpop.f32.mrb[77].mxu0  ;;  %v2497_v18 = vpop.f32.mrb[77].mxu1  ;;  %4597 = vmatmul.mubr.msk.f32.gmra.mrb[178].mxu0 %vm833_vm2, %v7334_v58 }
 0x5b3   : > { %v2498_v0 = vadd.f32 %v2497_v18, %v2454_v52  ;;  %v2456_v36 = vpop.f32.mrb[78].mxu0  ;;  %v2499_v15 = vpop.f32.mrb[78].mxu1  ;;  %3118 = vmatprep.mubr.f32.mxu0 %v9915_v2 }
 0x5b4   : > { %v2505_v62 = vmul.f32 %v2504_v39, %v2496_v14  ;;  %v2500_v61 = vadd.f32 %v2499_v15, %v2456_v36  ;;  %v2458_v37 = vpop.f32.mrb[79].mxu0  ;;  %v2501_v54 = vpop.f32.mrb[79].mxu1 }
 0x5b5   : > { %v2506_v33 = vmul.f32 %v2504_v39, %v2498_v0  ;;  %v2502_v24 = vadd.f32 %v2501_v54, %v2458_v37 }
 0x5b6   : > { %v2509_v43 = vadd.f32 %v5406_v9, %v2505_v62  ;;  %v2507_v3 = vmul.f32 %v2504_v39, %v2500_v61  ;;  %4598 = vmatmul.mubr.msk.f32.gmra.mrb[180].mxu0 %vm833_vm2, %v7343_v32 }
 0x5b7   : > { %v2510_v16 = vadd.f32 %v5407_v34, %v2506_v33  ;;  %v2508_v12 = vmul.f32 %v2504_v39, %v2502_v24  ;;  %3124 = vmatprep.mubr.f32.mxu0 %v9915_v2 }
 0x5b8   : > { %2513 = vst [vmem:[%s7502_s22] sm:$0xff] %v2509_v43  ;;  %v2511_v4 = vadd.f32 %v5408_v29, %v2507_v3 }
 0x5b9   : > { %2514 = vst [vmem:[%s7502_s22 + $0x8] sm:$0xff] %v2510_v16  ;;  %v2512_v23 = vadd.f32 %v5409_v7, %v2508_v12 }
 0x5ba   : > { %2515 = vst [vmem:[%s7502_s22 + $0x10] sm:$0xff] %v2511_v4  ;;  %4599 = vmatmul.mubr.msk.f32.gmra.mrb[182].mxu0 %vm833_vm2, %v7353_v8 }
 0x5bb   : > { %2516 = vst [vmem:[%s7502_s22 + $0x18] sm:$0xff] %v2512_v23  ;;  %3130 = vmatprep.mubr.f32.mxu0 %v9915_v2  ;;  %s5474_s22 = scalar_lea.vmem %s9021_s3, 512 }
 0x5bc   : > { %p5475_p2 = scmp.ne.s32.totalorder %s9021_s3, %s5474_s22  ;;  %p5482_p5 = scmp.lt.s32.totalorder %s5480_s5, %s5474_s22 }
 0x5be   : > { %4600 = vmatmul.mubr.msk.f32.gmra.mrb[184].mxu0 %vm833_vm2, %v7362_v51  ;;  %p5476_p10 = pnand %p5475_p2, %p10386_p1  ;;  %p5483_p8 = por %p5482_p5, %p5481_p13 }
 0x5bf   : > { %3136 = vmatprep.mubr.f32.mxu0 %v9915_v2 }
 0x5c0   : > { %p5477_p7 = pneg %p5476_p10 }
 0x5c1   : > { %v7516_v5 = vpop.f32.mrb[80].mxu0 }
 0x5c2   : > { %v7518_v49 = vpop.f32.mrb[81].mxu0  ;;  %4601 = vmatmul.mubr.msk.f32.gmra.mrb[186].mxu0 %vm833_vm2, %v7372_v20  ;;  %p5484_p12 = pnand %p5483_p8, %p5477_p7 }
 0x5c3   : > { %9916 = vst [vmem:[#allocation115_spill] sm:$0xff] %v7518_v49  ;;  %3142 = vmatprep.mubr.f32.mxu0 %v9915_v2  ;;  %v9952_v34 = vmax.f32 %v7516_v5, %v7518_v49 }
 0x5c5   : > { %v7525_v11 = vpop.f32.mrb[82].mxu0 }
 0x5c6   : > { %v7527_v19 = vpop.f32.mrb[83].mxu0  ;;  %4602 = vmatmul.mubr.msk.f32.gmra.mrb[188].mxu0 %vm833_vm2, %v7377_v45 }
 0x5c7   : > { %3148 = vmatprep.mubr.f32.mxu0 %v9915_v2  ;;  %v9955_v29 = vmax.f32 %v7525_v11, %v7527_v19 }
 0x5c9   : > { %v7534_v50 = vpop.f32.mrb[84].mxu0 }
 0x5ca   : > { %v7536_v30 = vpop.f32.mrb[85].mxu0  ;;  %4603 = vmatmul.mubr.msk.f32.gmra.mrb[190].mxu0 %vm833_vm2, %v7385_v44 }
 0x5cb   : > { %3154 = vmatprep.mubr.f32.mxu0 %v9915_v2 }
 0x5cd   : > { %v7543_v55 = vpop.f32.mrb[86].mxu0 }
 0x5ce   : > { %v7545_v40 = vpop.f32.mrb[87].mxu0  ;;  %4604 = vmatmul.mubr.msk.f32.gmra.mrb[192].mxu0 %vm833_vm2, %v7390_v27 }
 0x5cf   : > { %3160 = vmatprep.mubr.f32.mxu0 %v9915_v2 }
 0x5d1   : > { %v7552_v22 = vpop.f32.mrb[88].mxu0 }
 0x5d2   : > { %v7554_v58 = vpop.f32.mrb[89].mxu0  ;;  %4605 = vmatmul.mubr.msk.f32.gmra.mrb[194].mxu0 %vm833_vm2, %v7398_v31 }
 0x5d3   : > { %3166 = vmatprep.mubr.f32.mxu0 %v9915_v2 }
 0x5d5   : > { %v7561_v41 = vpop.f32.mrb[90].mxu0 }
 0x5d6   : > { %v7563_v32 = vpop.f32.mrb[91].mxu0  ;;  %4606 = vmatmul.mubr.msk.f32.gmra.mrb[196].mxu0 %vm833_vm2, %v7403_v60 }
 0x5d7   : > { %3172 = vmatprep.mubr.f32.mxu0 %v9915_v2 }
 0x5d9   : > { %v7570_v8 = vpop.f32.mrb[92].mxu0 }
 0x5da   : > { %v7572_v53 = vpop.f32.mrb[93].mxu0  ;;  %4607 = vmatmul.mubr.msk.f32.gmra.mrb[198].mxu0 %vm833_vm2, %v7411_v57 }
 0x5db   : > { %3178 = vmatprep.mubr.f32.mxu0 %v9915_v2 }
 0x5dd   : > { %v7579_v51 = vpop.f32.mrb[94].mxu0 }
 0x5de   : > { %v7581_v38 = vpop.f32.mrb[95].mxu0  ;;  %4608 = vmatmul.mubr.msk.f32.gmra.mrb[200].mxu0 %vm833_vm2, %v7416_v42 }
 0x5df   : > { %3184 = vmatprep.mubr.f32.mxu0 %v9915_v2 }
 0x5e1   : > { %v7588_v45 = vpop.f32.mrb[96].mxu0 }
 0x5e2   : > { %v7590_v44 = vpop.f32.mrb[97].mxu0  ;;  %4609 = vmatmul.mubr.msk.f32.gmra.mrb[202].mxu0 %vm833_vm2, %v7424_v26 }
 0x5e3   : > { %3190 = vmatprep.mubr.f32.mxu0 %v9915_v2 }
 0x5e5   : > { %v7597_v31 = vpop.f32.mrb[98].mxu0 }
 0x5e6   : > { %v7599_v60 = vpop.f32.mrb[99].mxu0  ;;  %4610 = vmatmul.mubr.msk.f32.gmra.mrb[204].mxu0 %vm833_vm2, %v7429_v28 }
 0x5e7   : > { %3196 = vmatprep.mubr.f32.mxu0 %v9915_v2 }
 0x5e9   : > { %v7606_v42 = vpop.f32.mrb[100].mxu0 }
 0x5ea   : > { %v7608_v26 = vpop.f32.mrb[101].mxu0  ;;  %4611 = vmatmul.mubr.msk.f32.gmra.mrb[206].mxu0 %vm833_vm2, %v7437_v46 }
 0x5ed   : > { %v7614_v1 = vpop.f32.mrb[102].mxu0 }
 0x5ee   : > { %v7616_v39 = vpop.f32.mrb[103].mxu0 }
 0x5f1   : > { %v7620_v14 = vpop.f32.mrb[104].mxu0 }
 0x5f2   : > { %v7622_v2 = vpop.f32.mrb[105].mxu0 }
 0x5f5   : > { %v7626_v18 = vpop.f32.mrb[106].mxu0 }
 0x5f6   : > { %v7628_v46 = vpop.f32.mrb[107].mxu0 }
 0x5f9   : > { %v7632_v36 = vpop.f32.mrb[108].mxu0 }
 0x5fa   : > { %v7634_v15 = vpop.f32.mrb[109].mxu0 }
 0x5fd   : > { %v7638_v61 = vpop.f32.mrb[110].mxu0 }
 0x5fe   : > { %9917 = vst [vmem:[#allocation119_spill] sm:$0xff] %v7638_v61  ;;  %v7640_v37 = vpop.f32.mrb[111].mxu0 }
 0x5ff   : > { %9918 = vst [vmem:[#allocation121_spill] sm:$0xff] %v7640_v37 }
 0x601   : > { %v7644_v33 = vpop.f32.mrb[112].mxu0 }
 0x602   : > { %9919 = vst [vmem:[#allocation120_spill] sm:$0xff] %v7644_v33  ;;  %v7646_v24 = vpop.f32.mrb[113].mxu0 }
 0x603   : > { %9920 = vst [vmem:[#allocation122_spill] sm:$0xff] %v7646_v24 }
 0x605   : > { %v7650_v43 = vpop.f32.mrb[114].mxu0 }
 0x606   : > { %9921 = vst [vmem:[#allocation124_spill] sm:$0xff] %v7650_v43  ;;  %v7652_v3 = vpop.f32.mrb[115].mxu0 }
 0x607   : > { %9922 = vst [vmem:[#allocation123_spill] sm:$0xff] %v7652_v3 }
 0x609   : > { %v7656_v16 = vpop.f32.mrb[116].mxu0 }
 0x60a   : > { %9923 = vst [vmem:[#allocation117_spill] sm:$0xff] %v7656_v16  ;;  %v7658_v12 = vpop.f32.mrb[117].mxu0 }
 0x60b   : > { %9924 = vst [vmem:[#allocation45_spill] sm:$0xff] %v7658_v12 }
 0x60d   : > { %v7662_v4 = vpop.f32.mrb[118].mxu0 }
 0x60e   : > { %9925 = vst [vmem:[#allocation118_spill] sm:$0xff] %v7662_v4  ;;  %v7664_v7 = vpop.f32.mrb[119].mxu0 }
 0x60f   : > { %9926 = vst [vmem:[#allocation48_spill] sm:$0xff] %v7664_v7 }
 0x611   : > { %v7668_v9 = vpop.f32.mrb[120].mxu0 }
 0x612   : > { %9927 = vst [vmem:[#allocation52_spill] sm:$0xff] %v7668_v9  ;;  %v7670_v54 = vpop.f32.mrb[121].mxu0 }
 0x613   : > { %9928 = vst [vmem:[#allocation49_spill] sm:$0xff] %v7670_v54 }
 0x615   : > { %v7674_v62 = vpop.f32.mrb[122].mxu0 }
 0x616   : > { %9929 = vst [vmem:[#allocation53_spill] sm:$0xff] %v7674_v62  ;;  %v7676_v0 = vpop.f32.mrb[123].mxu0 }
 0x617   : > { %9930 = vst [vmem:[#allocation50_spill] sm:$0xff] %v7676_v0 }
 0x619   : > { %v7680_v52 = vpop.f32.mrb[124].mxu0 }
 0x61a   : > { %9931 = vst [vmem:[#allocation51_spill] sm:$0xff] %v7680_v52  ;;  %v7682_v28 = vpop.f32.mrb[125].mxu0 }
 0x61b   : > { %9932 = vst [vmem:[#allocation46_spill] sm:$0xff] %v7682_v28 }
 0x61d   : > { %v7686_v35 = vpop.f32.mrb[126].mxu0 }
 0x61e   : > { %9933 = vst [vmem:[#allocation47_spill] sm:$0xff] %v7686_v35  ;;  %v7688_v57 = vpop.f32.mrb[127].mxu0 }
 0x61f   : > { %9934 = vst [vmem:[#allocation54_spill] sm:$0xff] %v7688_v57 }
 0x621   : > { %v7692_v27 = vpop.f32.mrb[128].mxu0 }
 0x622   : > { %9935 = vst [vmem:[#allocation58_spill] sm:$0xff] %v7692_v27  ;;  %v7694_v20 = vpop.f32.mrb[129].mxu0 }
 0x623   : > { %9936 = vst [vmem:[#allocation55_spill] sm:$0xff] %v7694_v20 }
 0x625   : > { %v7698_v21 = vpop.f32.mrb[130].mxu0 }
 0x626   : > { %9937 = vst [vmem:[#allocation59_spill] sm:$0xff] %v7698_v21  ;;  %v7700_v47 = vpop.f32.mrb[131].mxu0 }
 0x627   : > { %9938 = vst [vmem:[#allocation57_spill] sm:$0xff] %v7700_v47 }
 0x629   : > { %v7704_v56 = vpop.f32.mrb[132].mxu0 }
 0x62a   : > { %9939 = vst [vmem:[#allocation60_spill] sm:$0xff] %v7704_v56  ;;  %v7706_v25 = vpop.f32.mrb[133].mxu0 }
 0x62b   : > { %9940 = vst [vmem:[#allocation125_spill] sm:$0xff] %v7706_v25 }
 0x62d   : > { %v7710_v17 = vpop.f32.mrb[134].mxu0 }
 0x62e   : > { %9941 = vst [vmem:[#allocation56_spill] sm:$0xff] %v7710_v17  ;;  %v7712_v13 = vpop.f32.mrb[135].mxu0 }
 0x62f   : > { %9942 = vst [vmem:[#allocation62_spill] sm:$0xff] %v7712_v13 }
 0x631   : > { %v7716_v48 = vpop.f32.mrb[136].mxu0 }
 0x632   : > { %9943 = vst [vmem:[#allocation66_spill] sm:$0xff] %v7716_v48  ;;  %v7718_v6 = vpop.f32.mrb[137].mxu0 }
 0x633   : > { %9944 = vst [vmem:[#allocation63_spill] sm:$0xff] %v7718_v6 }
 0x635   : > { %v7722_v59 = vpop.f32.mrb[138].mxu0 }
 0x636   : > { %9945 = vst [vmem:[#allocation67_spill] sm:$0xff] %v7722_v59  ;;  %v7724_v10 = vpop.f32.mrb[139].mxu0 }
 0x637   : > { %9946 = vst [vmem:[#allocation65_spill] sm:$0xff] %v7724_v10 }
 0x639   : > { %v7728_v63 = vpop.f32.mrb[140].mxu0 }
 0x63a   : > { %9947 = vst [vmem:[#allocation68_spill] sm:$0xff] %v7728_v63  ;;  %v7730_v25 = vpop.f32.mrb[141].mxu0 }
 0x63b   : > { %9948 = vst [vmem:[#allocation61_spill] sm:$0xff] %v7730_v25 }
 0x63d   : > { %v7734_v13 = vpop.f32.mrb[142].mxu0 }
 0x63e   : > { %9949 = vst [vmem:[#allocation64_spill] sm:$0xff] %v7734_v13  ;;  %v7736_v17 = vpop.f32.mrb[143].mxu0 }
 0x63f   : > { %9950 = vst [vmem:[#allocation70_spill] sm:$0xff] %v7736_v17 }
 0x641   : > { %v7740_v6 = vpop.f32.mrb[144].mxu0 }
 0x642   : > { %9951 = vst [vmem:[#allocation74_spill] sm:$0xff] %v7740_v6  ;;  %v3204_v10 = vmax.f32 %v9952_v34, %v7740_v6  ;;  %v7746_v59 = vpop.f32.mrb[145].mxu0  ;;  %v9958_v34 = vmax.f32 %v7534_v50, %v7536_v30 }
 0x643   : > { %9953 = vst [vmem:[#allocation71_spill] sm:$0xff] %v7746_v59 }
 0x644   : > { %v3205_v48 = vmax.f32 %v3204_v10, %v7746_v59 }
 0x645   : > { %v7749_v56 = vpop.f32.mrb[146].mxu0 }
 0x646   : > { %9954 = vst [vmem:[#allocation75_spill] sm:$0xff] %v7749_v56  ;;  %v3209_v25 = vmax.f32 %v9955_v29, %v7749_v56  ;;  %3206 = vmax.xlane.f32.xlu0 %v3205_v48  ;;  %v7755_v23 = vpop.f32.mrb[147].mxu0  ;;  %v9961_v48 = vmax.f32 %v7543_v55, %v7545_v40 }
 0x647   : > { %9956 = vst [vmem:[#allocation73_spill] sm:$0xff] %v7755_v23 }
 0x648   : > { %v3210_v17 = vmax.f32 %v3209_v25, %v7755_v23 }
 0x649   : > { %v7758_v13 = vpop.f32.mrb[148].mxu0 }
 0x64a   : > { %9957 = vst [vmem:[#allocation76_spill] sm:$0xff] %v7758_v13  ;;  %v3214_v6 = vmax.f32 %v9958_v34, %v7758_v13  ;;  %3211 = vmax.xlane.f32.xlu1 %v3210_v17  ;;  %v7764_v10 = vpop.f32.mrb[149].mxu0  ;;  %v9964_v17 = vmax.f32 %v7552_v22, %v7554_v58 }
 0x64b   : > { %9959 = vst [vmem:[#allocation69_spill] sm:$0xff] %v7764_v10 }
 0x64c   : > { %v3215_v59 = vmax.f32 %v3214_v6, %v7764_v10 }
 0x64d   : > { %v7767_v49 = vpop.f32.mrb[150].mxu0 }
 0x64e   : > { %9960 = vst [vmem:[#allocation72_spill] sm:$0xff] %v7767_v49  ;;  %v3219_v29 = vmax.f32 %v9961_v48, %v7767_v49  ;;  %3216 = vmax.xlane.f32.xlu1 %v3215_v59  ;;  %v7773_v25 = vpop.f32.mrb[151].mxu0  ;;  %v9967_v59 = vmax.f32 %v7561_v41, %v7563_v32 }
 0x64f   : > { %9962 = vst [vmem:[#allocation78_spill] sm:$0xff] %v7773_v25 }
 0x650   : > { %v3220_v23 = vmax.f32 %v3219_v29, %v7773_v25 }
 0x651   : > { %v7776_v56 = vpop.f32.mrb[152].mxu0 }
 0x652   : > { %9963 = vst [vmem:[#allocation82_spill] sm:$0xff] %v7776_v56  ;;  %v3224_v34 = vmax.f32 %v9964_v17, %v7776_v56  ;;  %3221 = vmax.xlane.f32.xlu0 %v3220_v23  ;;  %v7782_v6 = vpop.f32.mrb[153].mxu0  ;;  %v9970_v23 = vmax.f32 %v7570_v8, %v7572_v53 }
 0x653   : > { %9965 = vst [vmem:[#allocation79_spill] sm:$0xff] %v7782_v6 }
 0x654   : > { %v3225_v10 = vmax.f32 %v3224_v34, %v7782_v6 }
 0x655   : > { %v7785_v13 = vpop.f32.mrb[154].mxu0 }
 0x656   : > { %9966 = vst [vmem:[#allocation83_spill] sm:$0xff] %v7785_v13  ;;  %v3229_v48 = vmax.f32 %v9967_v59, %v7785_v13  ;;  %3226 = vmax.xlane.f32.xlu1 %v3225_v10  ;;  %v7791_v29 = vpop.f32.mrb[155].mxu0  ;;  %v9973_v10 = vmax.f32 %v7579_v51, %v7581_v38 }
 0x657   : > { %9968 = vst [vmem:[#allocation81_spill] sm:$0xff] %v7791_v29 }
 0x658   : > { %v3230_v25 = vmax.f32 %v3229_v48, %v7791_v29 }
 0x659   : > { %v7794_v49 = vpop.f32.mrb[156].mxu0 }
 0x65a   : > { %9969 = vst [vmem:[#allocation84_spill] sm:$0xff] %v7794_v49  ;;  %v3234_v17 = vmax.f32 %v9970_v23, %v7794_v49  ;;  %3231 = vmax.xlane.f32.xlu0 %v3230_v25  ;;  %v7800_v34 = vpop.f32.mrb[157].mxu0  ;;  %v9976_v25 = vmax.f32 %v7588_v45, %v7590_v44 }
 0x65b   : > { %9971 = vst [vmem:[#allocation77_spill] sm:$0xff] %v7800_v34 }
 0x65c   : > { %v3235_v6 = vmax.f32 %v3234_v17, %v7800_v34 }
 0x65d   : > { %v7803_v56 = vpop.f32.mrb[158].mxu0 }
 0x65e   : > { %9972 = vst [vmem:[#allocation80_spill] sm:$0xff] %v7803_v56  ;;  %v3239_v59 = vmax.f32 %v9973_v10, %v7803_v56  ;;  %3236 = vmax.xlane.f32.xlu1 %v3235_v6  ;;  %v7809_v48 = vpop.f32.mrb[159].mxu0  ;;  %v9979_v6 = vmax.f32 %v7597_v31, %v7599_v60 }
 0x65f   : > { %9974 = vst [vmem:[#allocation86_spill] sm:$0xff] %v7809_v48 }
 0x660   : > { %v3240_v29 = vmax.f32 %v3239_v59, %v7809_v48 }
 0x661   : > { %v7812_v13 = vpop.f32.mrb[160].mxu0 }
 0x662   : > { %9975 = vst [vmem:[#allocation90_spill] sm:$0xff] %v7812_v13  ;;  %v3244_v23 = vmax.f32 %v9976_v25, %v7812_v13  ;;  %3241 = vmax.xlane.f32.xlu0 %v3240_v29  ;;  %v7818_v17 = vpop.f32.mrb[161].mxu0  ;;  %v9982_v29 = vmax.f32 %v7606_v42, %v7608_v26 }
 0x663   : > { %9977 = vst [vmem:[#allocation87_spill] sm:$0xff] %v7818_v17 }
 0x664   : > { %v3245_v34 = vmax.f32 %v3244_v23, %v7818_v17 }
 0x665   : > { %v7821_v49 = vpop.f32.mrb[162].mxu0 }
 0x666   : > { %9978 = vst [vmem:[#allocation91_spill] sm:$0xff] %v7821_v49  ;;  %v3249_v10 = vmax.f32 %v9979_v6, %v7821_v49  ;;  %3246 = vmax.xlane.f32.xlu1 %v3245_v34  ;;  %v7827_v59 = vpop.f32.mrb[163].mxu0  ;;  %v9985_v34 = vmax.f32 %v7614_v1, %v7616_v39 }
 0x667   : > { %9980 = vst [vmem:[#allocation89_spill] sm:$0xff] %v7827_v59 }
 0x668   : > { %v3250_v48 = vmax.f32 %v3249_v10, %v7827_v59 }
 0x669   : > { %v7830_v56 = vpop.f32.mrb[164].mxu0 }
 0x66a   : > { %9981 = vst [vmem:[#allocation92_spill] sm:$0xff] %v7830_v56  ;;  %v3254_v25 = vmax.f32 %v9982_v29, %v7830_v56  ;;  %3251 = vmax.xlane.f32.xlu0 %v3250_v48  ;;  %v7836_v23 = vpop.f32.mrb[165].mxu0  ;;  %v9988_v48 = vmax.f32 %v7620_v14, %v7622_v2 }
 0x66b   : > { %9983 = vst [vmem:[#allocation85_spill] sm:$0xff] %v7836_v23 }
 0x66c   : > { %v3255_v17 = vmax.f32 %v3254_v25, %v7836_v23 }
 0x66d   : > { %v7839_v13 = vpop.f32.mrb[166].mxu0 }
 0x66e   : > { %9984 = vst [vmem:[#allocation88_spill] sm:$0xff] %v7839_v13  ;;  %v3259_v6 = vmax.f32 %v9985_v34, %v7839_v13  ;;  %3256 = vmax.xlane.f32.xlu1 %v3255_v17  ;;  %v7845_v10 = vpop.f32.mrb[167].mxu0  ;;  %v9991_v17 = vmax.f32 %v7626_v18, %v7628_v46 }
 0x66f   : > { %9986 = vst [vmem:[#allocation94_spill] sm:$0xff] %v7845_v10 }
 0x670   : > { %v3260_v59 = vmax.f32 %v3259_v6, %v7845_v10 }
 0x671   : > { %v7848_v49 = vpop.f32.mrb[168].mxu0 }
 0x672   : > { %9987 = vst [vmem:[#allocation98_spill] sm:$0xff] %v7848_v49  ;;  %v3264_v29 = vmax.f32 %v9988_v48, %v7848_v49  ;;  %3261 = vmax.xlane.f32.xlu0 %v3260_v59  ;;  %v7854_v25 = vpop.f32.mrb[169].mxu0  ;;  %v9994_v59 = vmax.f32 %v7632_v36, %v7634_v15 }
 0x673   : > { %9989 = vst [vmem:[#allocation95_spill] sm:$0xff] %v7854_v25 }
 0x674   : > { %v3265_v23 = vmax.f32 %v3264_v29, %v7854_v25 }
 0x675   : > { %v7857_v56 = vpop.f32.mrb[170].mxu0 }
 0x676   : > { %9990 = vst [vmem:[#allocation97_spill] sm:$0xff] %v7857_v56  ;;  %v3269_v34 = vmax.f32 %v9991_v17, %v7857_v56  ;;  %3266 = vmax.xlane.f32.xlu1 %v3265_v23  ;;  %v7863_v6 = vpop.f32.mrb[171].mxu0  ;;  %v9997_v23 = vmax.f32 %v7638_v61, %v7640_v37 }
 0x677   : > { %9992 = vst [vmem:[#allocation93_spill] sm:$0xff] %v7863_v6 }
 0x678   : > { %v3270_v10 = vmax.f32 %v3269_v34, %v7863_v6 }
 0x679   : > { %v7866_v13 = vpop.f32.mrb[172].mxu0 }
 0x67a   : > { %9993 = vst [vmem:[#allocation96_spill] sm:$0xff] %v7866_v13  ;;  %v3274_v48 = vmax.f32 %v9994_v59, %v7866_v13  ;;  %3271 = vmax.xlane.f32.xlu0 %v3270_v10  ;;  %v7872_v29 = vpop.f32.mrb[173].mxu0  ;;  %v10000_v10 = vmax.f32 %v7644_v33, %v7646_v24 }
 0x67b   : > { %9995 = vst [vmem:[#allocation36_spill] sm:$0xff] %v7872_v29 }
 0x67c   : > { %v3275_v25 = vmax.f32 %v3274_v48, %v7872_v29 }
 0x67d   : > { %v7875_v49 = vpop.f32.mrb[174].mxu0 }
 0x67e   : > { %9996 = vst [vmem:[#allocation35_spill] sm:$0xff] %v7875_v49  ;;  %v3279_v17 = vmax.f32 %v9997_v23, %v7875_v49  ;;  %3276 = vmax.xlane.f32.xlu1 %v3275_v25  ;;  %v7881_v34 = vpop.f32.mrb[175].mxu0  ;;  %v10003_v25 = vmax.f32 %v7650_v43, %v7652_v3 }
 0x67f   : > { %9998 = vst [vmem:[#allocation100_spill] sm:$0xff] %v7881_v34 }
 0x680   : > { %v3280_v6 = vmax.f32 %v3279_v17, %v7881_v34 }
 0x681   : > { %v7884_v56 = vpop.f32.mrb[176].mxu0 }
 0x682   : > { %9999 = vst [vmem:[#allocation101_spill] sm:$0xff] %v7884_v56  ;;  %v3284_v59 = vmax.f32 %v10000_v10, %v7884_v56  ;;  %3281 = vmax.xlane.f32.xlu0 %v3280_v6  ;;  %v7890_v48 = vpop.f32.mrb[177].mxu0  ;;  %v10006_v6 = vmax.f32 %v7656_v16, %v7658_v12  ;;  %v10052_v12 = vld [vmem:[#allocation71_spill] sm:$0xff] }
 0x683   : > { %10001 = vst [vmem:[#allocation105_spill] sm:$0xff] %v7890_v48 }
 0x684   : > { %v3285_v29 = vmax.f32 %v3284_v59, %v7890_v48 }
 0x685   : > { %v7893_v13 = vpop.f32.mrb[178].mxu0 }
 0x686   : > { %10002 = vst [vmem:[#allocation104_spill] sm:$0xff] %v7893_v13  ;;  %v3289_v23 = vmax.f32 %v10003_v25, %v7893_v13  ;;  %3286 = vmax.xlane.f32.xlu1 %v3285_v29  ;;  %v7899_v17 = vpop.f32.mrb[179].mxu0  ;;  %v10009_v29 = vmax.f32 %v7662_v4, %v7664_v7  ;;  %v10051_v4 = vld [vmem:[#allocation74_spill] sm:$0xff] }
 0x687   : > { %10004 = vst [vmem:[#allocation108_spill] sm:$0xff] %v7899_v17 }
 0x688   : > { %v3290_v34 = vmax.f32 %v3289_v23, %v7899_v17 }
 0x689   : > { %v7902_v49 = vpop.f32.mrb[180].mxu0 }
 0x68a   : > { %10005 = vst [vmem:[#allocation103_spill] sm:$0xff] %v7902_v49  ;;  %v3294_v10 = vmax.f32 %v10006_v6, %v7902_v49  ;;  %3291 = vmax.xlane.f32.xlu0 %v3290_v34  ;;  %v7908_v59 = vpop.f32.mrb[181].mxu0  ;;  %v10012_v34 = vmax.f32 %v7668_v9, %v7670_v54 }
 0x68b   : > { %10007 = vst [vmem:[#allocation106_spill] sm:$0xff] %v7908_v59 }
 0x68c   : > { %v3295_v48 = vmax.f32 %v3294_v10, %v7908_v59 }
 0x68d   : > { %v7911_v56 = vpop.f32.mrb[182].mxu0 }
 0x68e   : > { %10008 = vst [vmem:[#allocation99_spill] sm:$0xff] %v7911_v56  ;;  %v3299_v25 = vmax.f32 %v10009_v29, %v7911_v56  ;;  %3296 = vmax.xlane.f32.xlu1 %v3295_v48  ;;  %v7917_v23 = vpop.f32.mrb[183].mxu0  ;;  %v10015_v48 = vmax.f32 %v7674_v62, %v7676_v0 }
 0x68f   : > { %10010 = vst [vmem:[#allocation102_spill] sm:$0xff] %v7917_v23 }
 0x690   : > { %v3300_v17 = vmax.f32 %v3299_v25, %v7917_v23 }
 0x691   : > { %v7920_v13 = vpop.f32.mrb[184].mxu0 }
 0x692   : > { %10011 = vst [vmem:[#allocation109_spill] sm:$0xff] %v7920_v13  ;;  %v3304_v6 = vmax.f32 %v10012_v34, %v7920_v13  ;;  %3301 = vmax.xlane.f32.xlu0 %v3300_v17  ;;  %v7926_v10 = vpop.f32.mrb[185].mxu0  ;;  %v10018_v17 = vmax.f32 %v7680_v52, %v7682_v28 }
 0x693   : > { %10013 = vst [vmem:[#allocation112_spill] sm:$0xff] %v7926_v10 }
 0x694   : > { %v3305_v59 = vmax.f32 %v3304_v6, %v7926_v10 }
 0x695   : > { %v7929_v49 = vpop.f32.mrb[186].mxu0 }
 0x696   : > { %10014 = vst [vmem:[#allocation107_spill] sm:$0xff] %v7929_v49  ;;  %v3309_v29 = vmax.f32 %v10015_v48, %v7929_v49  ;;  %3306 = vmax.xlane.f32.xlu1 %v3305_v59  ;;  %v7935_v25 = vpop.f32.mrb[187].mxu0  ;;  %v10021_v59 = vmax.f32 %v7686_v35, %v7688_v57 }
 0x697   : > { %10016 = vst [vmem:[#allocation110_spill] sm:$0xff] %v7935_v25 }
 0x698   : > { %v3310_v23 = vmax.f32 %v3309_v29, %v7935_v25 }
 0x699   : > { %v7938_v56 = vpop.f32.mrb[188].mxu0 }
 0x69a   : > { %10017 = vst [vmem:[#allocation26_spill] sm:$0xff] %v7938_v56  ;;  %v3314_v34 = vmax.f32 %v10018_v17, %v7938_v56  ;;  %3311 = vmax.xlane.f32.xlu0 %v3310_v23  ;;  %v7944_v6 = vpop.f32.mrb[189].mxu0  ;;  %v10024_v23 = vmax.f32 %v7692_v27, %v7694_v20  ;;  %v10029_v20 = vld [vmem:[#allocation125_spill] sm:$0xff] }
 0x69b   : > { %10019 = vst [vmem:[#allocation38_spill] sm:$0xff] %v7944_v6 }
 0x69c   : > { %v3315_v10 = vmax.f32 %v3314_v34, %v7944_v6 }
 0x69d   : > { %v7947_v13 = vpop.f32.mrb[190].mxu0 }
 0x69e   : > { %10020 = vst [vmem:[#allocation25_spill] sm:$0xff] %v7947_v13  ;;  %v3319_v48 = vmax.f32 %v10021_v59, %v7947_v13  ;;  %3316 = vmax.xlane.f32.xlu1 %v3315_v10  ;;  %v7953_v29 = vpop.f32.mrb[191].mxu0  ;;  %v10026_v10 = vmax.f32 %v7698_v21, %v7700_v47  ;;  %v10033_v21 = vld [vmem:[#allocation62_spill] sm:$0xff] }
 0x69f   : > { %10022 = vst [vmem:[#allocation37_spill] sm:$0xff] %v7953_v29 }
 0x6a0   : > { %v3320_v25 = vmax.f32 %v3319_v48, %v7953_v29 }
 0x6a1   : > { %v7956_v49 = vpop.f32.mrb[192].mxu0 }
 0x6a2   : > { %10023 = vst [vmem:[#allocation30_spill] sm:$0xff] %v7956_v49  ;;  %v7962_v17 = vmax.f32 %v10024_v23, %v7956_v49  ;;  %3321 = vmax.xlane.f32.xlu0 %v3320_v25  ;;  %v7964_v34 = vpop.f32.mrb[193].mxu0  ;;  %v10028_v25 = vld [vmem:[#allocation60_spill] sm:$0xff] }
 0x6a3   : > { %v10030_v27 = vmax.f32 %v10028_v25, %v10029_v20  ;;  %v10037_v25 = vld [vmem:[#allocation63_spill] sm:$0xff] }
 0x6a5   : > { %v7968_v59 = vpop.f32.mrb[194].mxu0 }
 0x6a6   : > { %10025 = vst [vmem:[#allocation40_spill] sm:$0xff] %v7968_v59  ;;  %v7974_v48 = vmax.f32 %v10026_v10, %v7968_v59  ;;  %v7976_v29 = vpop.f32.mrb[195].mxu0  ;;  %v10032_v59 = vld [vmem:[#allocation56_spill] sm:$0xff] }
 0x6a7   : > { %v10034_v35 = vmax.f32 %v10032_v59, %v10033_v21  ;;  %v10041_v59 = vld [vmem:[#allocation65_spill] sm:$0xff] }
 0x6a9   : > { %v7980_v49 = vpop.f32.mrb[196].mxu0 }
 0x6aa   : > { %10027 = vst [vmem:[#allocation23_spill] sm:$0xff] %v7980_v49  ;;  %v7986_v57 = vmax.f32 %v10030_v27, %v7980_v49  ;;  %v7988_v13 = vpop.f32.mrb[197].mxu0  ;;  %v10036_v49 = vld [vmem:[#allocation66_spill] sm:$0xff] }
 0x6ab   : > { %v10038_v56 = vmax.f32 %v10036_v49, %v10037_v25 }
 0x6ad   : > { %v7992_v10 = vpop.f32.mrb[198].mxu0 }
 0x6ae   : > { %10031 = vst [vmem:[#allocation28_spill] sm:$0xff] %v7992_v10  ;;  %v7998_v23 = vmax.f32 %v10034_v35, %v7992_v10  ;;  %v8000_v6 = vpop.f32.mrb[199].mxu0  ;;  %v10040_v10 = vld [vmem:[#allocation67_spill] sm:$0xff] }
 0x6af   : > { %v10042_v52 = vmax.f32 %v10040_v10, %v10041_v59  ;;  %v10048_v10 = vld [vmem:[#allocation70_spill] sm:$0xff] }
 0x6b1   : > { %v8004_v27 = vpop.f32.mrb[200].mxu0 }
 0x6b2   : > { %10035 = vst [vmem:[#allocation29_spill] sm:$0xff] %v8004_v27  ;;  %v8010_v47 = vmax.f32 %v10038_v56, %v8004_v27  ;;  %v8012_v28 = vpop.f32.mrb[201].mxu0  ;;  %v10044_v27 = vld [vmem:[#allocation61_spill] sm:$0xff] }
 0x6b3   : > { %v10045_v49 = vmax.f32 %v7728_v63, %v10044_v27  ;;  %v10050_v63 = vld [vmem:[#allocation115_spill] sm:$0xff] }
 0x6b4   : > { %v10053_v27 = vld [vmem:[#allocation75_spill] sm:$0xff] }
 0x6b5   : > { %v8016_v35 = vpop.f32.mrb[202].mxu0 }
 0x6b6   : > { %10039 = vst [vmem:[#allocation39_spill] sm:$0xff] %v8016_v35  ;;  %v8022_v20 = vmax.f32 %v10042_v52, %v8016_v35  ;;  %v8024_v0 = vpop.f32.mrb[203].mxu0  ;;  %v10047_v35 = vld [vmem:[#allocation64_spill] sm:$0xff] }
 0x6b7   : > { %v10049_v54 = vmax.f32 %v10047_v35, %v10048_v10 }
 0x6b9   : > { %v8028_v56 = vpop.f32.mrb[204].mxu0 }
 0x6ba   : > { %10043 = vst [vmem:[#allocation24_spill] sm:$0xff] %v8028_v56  ;;  %v8034_v21 = vmax.f32 %v10045_v49, %v8028_v56  ;;  %v8036_v62 = vpop.f32.mrb[205].mxu0 }
 0x6bd   : > { %v8040_v52 = vpop.f32.mrb[206].mxu0 }
 0x6be   : > { %10046 = vst [vmem:[#allocation27_spill] sm:$0xff] %v8040_v52  ;;  %v8046_v25 = vmax.f32 %v10049_v54, %v8040_v52  ;;  %v8048_v9 = vpop.f32.mrb[207].mxu0 }
 0x6d3   : > { %v3207_v49 = vpop.xlane.xlu0 %3206 }
 0x6d4   : > { %v3363_v56 = vsub.f32 %v7516_v5, %v3207_v49  ;;  %v3364_v7 = vsub.f32 %v10050_v63, %v3207_v49  ;;  %v3365_v59 = vsub.f32 %v10051_v4, %v3207_v49  ;;  %v3366_v16 = vsub.f32 %v10052_v12, %v3207_v49  ;;  %v10054_v5 = vld [vmem:[#allocation73_spill] sm:$0xff] }
 0x6d6   : > { %v3491_v3 = vmul.f32 1.442695, %v3363_v56  ;;  %v3493_v43 = vmul.f32 1.442695, %v3364_v7  ;;  %v3495_v24 = vmul.f32 1.442695, %v3365_v59 }
 0x6d7   : > { %v3497_v10 = vmul.f32 1.442695, %v3366_v16  ;;  %v3212_v54 = vpop.xlane.xlu1 %3211 }
 0x6d8   : > { %5086 = vpow2.f32 %v3491_v3  ;;  %v3367_v52 = vsub.f32 %v7525_v11, %v3212_v54  ;;  %v3368_v35 = vsub.f32 %v7527_v19, %v3212_v54  ;;  %v3369_v33 = vsub.f32 %v10053_v27, %v3212_v54  ;;  %v10055_v11 = vld [vmem:[#allocation76_spill] sm:$0xff]  ;;  %v10056_v19 = vld [vmem:[#allocation69_spill] sm:$0xff] }
 0x6d9   : > { %5088 = vpow2.f32 %v3493_v43  ;;  %v3370_v37 = vsub.f32 %v10054_v5, %v3212_v54 }
 0x6da   : > { %5090 = vpow2.f32 %v3495_v24  ;;  %v3499_v63 = vmul.f32 1.442695, %v3367_v52  ;;  %v3501_v4 = vmul.f32 1.442695, %v3368_v35  ;;  %v3503_v61 = vmul.f32 1.442695, %v3369_v33 }
 0x6db   : > { %5092 = vpow2.f32 %v3497_v10  ;;  %v3505_v12 = vmul.f32 1.442695, %v3370_v37  ;;  %v3217_v7 = vpop.xlane.xlu1 %3216 }
 0x6dc   : > { %5094 = vpow2.f32 %v3499_v63  ;;  %v3371_v16 = vsub.f32 %v7534_v50, %v3217_v7  ;;  %v3372_v3 = vsub.f32 %v7536_v30, %v3217_v7  ;;  %v3373_v59 = vsub.f32 %v10055_v11, %v3217_v7  ;;  %v10057_v50 = vld [vmem:[#allocation72_spill] sm:$0xff]  ;;  %v10058_v30 = vld [vmem:[#allocation78_spill] sm:$0xff] }
 0x6dd   : > { %5096 = vpow2.f32 %v3501_v4  ;;  %v3374_v27 = vsub.f32 %v10056_v19, %v3217_v7  ;;  %v10060_v19 = vld [vmem:[#allocation79_spill] sm:$0xff] }
 0x6de   : > { %5098 = vpow2.f32 %v3503_v61  ;;  %v3507_v43 = vmul.f32 1.442695, %v3371_v16  ;;  %v3509_v56 = vmul.f32 1.442695, %v3372_v3  ;;  %v3511_v24 = vmul.f32 1.442695, %v3373_v59 }
 0x6df   : > { %5100 = vpow2.f32 %v3505_v12  ;;  %v3513_v35 = vmul.f32 1.442695, %v3374_v27  ;;  %v3222_v33 = vpop.xlane.xlu0 %3221  ;;  %v10059_v3 = vld [vmem:[#allocation82_spill] sm:$0xff] }
 0x6e0   : > { %5102 = vpow2.f32 %v3507_v43  ;;  %v3375_v37 = vsub.f32 %v7543_v55, %v3222_v33  ;;  %v3376_v10 = vsub.f32 %v7545_v40, %v3222_v33  ;;  %v3377_v52 = vsub.f32 %v10057_v50, %v3222_v33 }
 0x6e1   : > { %5104 = vpow2.f32 %v3509_v56  ;;  %v3378_v49 = vsub.f32 %v10058_v30, %v3222_v33 }
 0x6e2   : > { %v8068_v54 = vpop.eup %5086  ;;  %5106 = vpow2.f32 %v3511_v24  ;;  %v3515_v61 = vmul.f32 1.442695, %v3375_v37  ;;  %v3517_v5 = vmul.f32 1.442695, %v3376_v10  ;;  %v3519_v63 = vmul.f32 1.442695, %v3377_v52 }
 0x6e3   : > { %v8070_v4 = vpop.eup %5088  ;;  %5108 = vpow2.f32 %v3513_v35  ;;  %v3521_v12 = vmul.f32 1.442695, %v3378_v49  ;;  %v3227_v7 = vpop.xlane.xlu1 %3226  ;;  %v10061_v49 = vld [vmem:[#allocation83_spill] sm:$0xff] }
 0x6e4   : > { %v8072_v16 = vpop.eup %5090  ;;  %5110 = vpow2.f32 %v3515_v61  ;;  %v3379_v55 = vsub.f32 %v7552_v22, %v3227_v7  ;;  %v3380_v40 = vsub.f32 %v7554_v58, %v3227_v7  ;;  %v3381_v11 = vsub.f32 %v10059_v3, %v3227_v7 }
 0x6e5   : > { %v8077_v59 = vpop.eup %5092  ;;  %5112 = vpow2.f32 %v3517_v5  ;;  %v3382_v27 = vsub.f32 %v10060_v19, %v3227_v7  ;;  %v3747_v43 = vadd.f32 %v8070_v4, %v8068_v54 }
 0x6e6   : > { %v8082_v56 = vpop.eup %5094  ;;  %5114 = vpow2.f32 %v3519_v63  ;;  %v3523_v24 = vmul.f32 1.442695, %v3379_v55  ;;  %v3525_v35 = vmul.f32 1.442695, %v3380_v40  ;;  %v3527_v33 = vmul.f32 1.442695, %v3381_v11 }
 0x6e7   : > { %v8084_v37 = vpop.eup %5096  ;;  %5116 = vpow2.f32 %v3521_v12  ;;  %v3529_v22 = vmul.f32 1.442695, %v3382_v27  ;;  %v3232_v58 = vpop.xlane.xlu0 %3231  ;;  %v3748_v10 = vadd.f32 %v8072_v16, %v3747_v43  ;;  %v10062_v63 = vld [vmem:[#allocation81_spill] sm:$0xff] }
 0x6e8   : > { %v8087_v50 = vpop.eup %5098  ;;  %5118 = vpow2.f32 %v3523_v24  ;;  %v3383_v52 = vsub.f32 %v7561_v41, %v3232_v58  ;;  %v3384_v30 = vsub.f32 %v7563_v32, %v3232_v58  ;;  %v3385_v61 = vsub.f32 %v10061_v49, %v3232_v58 }
 0x6e9   : > { %v8092_v5 = vpop.eup %5100  ;;  %5120 = vpow2.f32 %v3525_v35  ;;  %v3386_v7 = vsub.f32 %v10062_v63, %v3232_v58  ;;  %v3749_v12 = vadd.f32 %v8077_v59, %v3748_v10  ;;  %v3752_v55 = vadd.f32 %v8084_v37, %v8082_v56  ;;  %v10063_v10 = vld [vmem:[#allocation84_spill] sm:$0xff] }
 0x6ea   : > { %v8098_v40 = vpop.eup %5102  ;;  %5122 = vpow2.f32 %v3527_v33  ;;  %v3531_v3 = vmul.f32 1.442695, %v3383_v52  ;;  %v3533_v11 = vmul.f32 1.442695, %v3384_v30  ;;  %v3535_v41 = vmul.f32 1.442695, %v3385_v61 }
 0x6eb   : > { %v8100_v19 = vpop.eup %5104  ;;  %5124 = vpow2.f32 %v3529_v22  ;;  %v3537_v32 = vmul.f32 1.442695, %v3386_v7  ;;  %3750 = vadd.xlane.f32.xlu1 %v3749_v12  ;;  %v3237_v27 = vpop.xlane.xlu1 %3236  ;;  %v3753_v43 = vadd.f32 %v8087_v50, %v3752_v55  ;;  %v10064_v30 = vld [vmem:[#allocation77_spill] sm:$0xff] }
 0x6ec   : > { %v8103_v24 = vpop.eup %5106  ;;  %5126 = vpow2.f32 %v3531_v3  ;;  %v3387_v35 = vsub.f32 %v7570_v8, %v3237_v27  ;;  %v3388_v58 = vsub.f32 %v7572_v53, %v3237_v27  ;;  %v3389_v33 = vsub.f32 %v10063_v10, %v3237_v27 }
 0x6ed   : > { %v8108_v52 = vpop.eup %5108  ;;  %5128 = vpow2.f32 %v3533_v11  ;;  %v3390_v49 = vsub.f32 %v10064_v30, %v3237_v27  ;;  %v3754_v22 = vadd.f32 %v8092_v5, %v3753_v43  ;;  %v3757_v61 = vadd.f32 %v8100_v19, %v8098_v40 }
 0x6ee   : > { %v8114_v63 = vpop.eup %5110  ;;  %5130 = vpow2.f32 %v3535_v41  ;;  %v3539_v7 = vmul.f32 1.442695, %v3387_v35  ;;  %v3541_v12 = vmul.f32 1.442695, %v3388_v58  ;;  %v3543_v8 = vmul.f32 1.442695, %v3389_v33 }
 0x6ef   : > { %v8116_v55 = vpop.eup %5112  ;;  %5132 = vpow2.f32 %v3537_v32  ;;  %v3545_v53 = vmul.f32 1.442695, %v3390_v49  ;;  %3755 = vadd.xlane.f32.xlu0 %v3754_v22  ;;  %v10065_v3 = vmax.f32 %v7962_v17, %v7964_v34  ;;  %v3242_v11 = vpop.xlane.xlu0 %3241  ;;  %v3758_v27 = vadd.f32 %v8103_v24, %v3757_v61  ;;  %v10067_v58 = vld [vmem:[#allocation80_spill] sm:$0xff]  ;;  %v10068_v32 = vld [vmem:[#allocation86_spill] sm:$0xff] }
 0x6f0   : > { %v8122_v43 = vpop.eup %5114  ;;  %5134 = vpow2.f32 %v3539_v7  ;;  %v3391_v41 = vsub.f32 %v7579_v51, %v3242_v11  ;;  %v3392_v35 = vsub.f32 %v7581_v38, %v3242_v11  ;;  %v3393_v10 = vsub.f32 %v10067_v58, %v3242_v11 }
 0x6f1   : > { %3326 = vmax.xlane.f32.xlu1 %v10065_v3  ;;  %10066 = vst [vmem:[#allocation115_spill] sm:$0xff] %v8122_v43  ;;  %v8127_v33 = vpop.eup %5116  ;;  %5136 = vpow2.f32 %v3541_v12  ;;  %v3394_v30 = vsub.f32 %v10068_v32, %v3242_v11  ;;  %v3759_v17 = vadd.f32 %v8108_v52, %v3758_v27  ;;  %v3762_v49 = vadd.f32 %v8116_v55, %v8114_v63 }
 0x6f2   : > { %v8133_v22 = vpop.eup %5118  ;;  %5138 = vpow2.f32 %v3543_v8  ;;  %v3547_v61 = vmul.f32 1.442695, %v3391_v41  ;;  %v3549_v7 = vmul.f32 1.442695, %v3392_v35  ;;  %v3551_v51 = vmul.f32 1.442695, %v3393_v10 }
 0x6f3   : > { %v8135_v3 = vpop.eup %5120  ;;  %5140 = vpow2.f32 %v3545_v53  ;;  %v3553_v38 = vmul.f32 1.442695, %v3394_v30  ;;  %v10069_v12 = vmax.f32 %v7974_v48, %v7976_v29  ;;  %v3247_v11 = vpop.xlane.xlu1 %3246  ;;  %v3763_v27 = vadd.f32 %v8122_v43, %v3762_v49  ;;  %v10071_v35 = vld [vmem:[#allocation90_spill] sm:$0xff]  ;;  %v10072_v53 = vld [vmem:[#allocation87_spill] sm:$0xff] }
 0x6f4   : > { %v8141_v58 = vpop.eup %5122  ;;  %5142 = vpow2.f32 %v3547_v61  ;;  %v3395_v8 = vsub.f32 %v7588_v45, %v3247_v11  ;;  %v3396_v41 = vsub.f32 %v7590_v44, %v3247_v11  ;;  %v3397_v10 = vsub.f32 %v10071_v35, %v3247_v11 }
 0x6f5   : > { %3760 = vadd.xlane.f32.xlu1 %v3759_v17  ;;  %3331 = vmax.xlane.f32.xlu0 %v10069_v12  ;;  %10070 = vst [vmem:[#allocation74_spill] sm:$0xff] %v8141_v58  ;;  %v8146_v32 = vpop.eup %5124  ;;  %5144 = vpow2.f32 %v3549_v7  ;;  %v3398_v30 = vsub.f32 %v10072_v53, %v3247_v11  ;;  %v3764_v48 = vadd.f32 %v8127_v33, %v3763_v27 }
 0x6f6   : > { %v3767_v17 = vadd.f32 %v8135_v3, %v8133_v22  ;;  %v8152_v49 = vpop.eup %5126  ;;  %5146 = vpow2.f32 %v3551_v51  ;;  %v3555_v61 = vmul.f32 1.442695, %v3395_v8  ;;  %v3557_v12 = vmul.f32 1.442695, %v3396_v41  ;;  %v10075_v41 = vld [vmem:[#allocation91_spill] sm:$0xff] }
 0x6f7   : > { %v3559_v45 = vmul.f32 1.442695, %v3397_v10  ;;  %v8154_v43 = vpop.eup %5128  ;;  %5148 = vpow2.f32 %v3553_v38  ;;  %v3561_v44 = vmul.f32 1.442695, %v3398_v30  ;;  %v10073_v7 = vmax.f32 %v7986_v57, %v7988_v13  ;;  %v3252_v11 = vpop.xlane.xlu0 %3251  ;;  %v10076_v38 = vld [vmem:[#allocation89_spill] sm:$0xff] }
 0x6f8   : > { %v3768_v27 = vadd.f32 %v8141_v58, %v3767_v17  ;;  %v8160_v35 = vpop.eup %5130  ;;  %5150 = vpow2.f32 %v3555_v61  ;;  %v3399_v51 = vsub.f32 %v7597_v31, %v3252_v11  ;;  %v3400_v8 = vsub.f32 %v7599_v60, %v3252_v11 }
 0x6f9   : > { %3765 = vadd.xlane.f32.xlu0 %v3764_v48  ;;  %3336 = vmax.xlane.f32.xlu1 %v10073_v7  ;;  %10074 = vst [vmem:[#allocation71_spill] sm:$0xff] %v8160_v35  ;;  %v3401_v10 = vsub.f32 %v10075_v41, %v3252_v11  ;;  %v8165_v53 = vpop.eup %5132  ;;  %5152 = vpow2.f32 %v3557_v12  ;;  %v3402_v30 = vsub.f32 %v10076_v38, %v3252_v11 }
 0x6fa   : > { %v3769_v57 = vadd.f32 %v8146_v32, %v3768_v27  ;;  %v3772_v48 = vadd.f32 %v8154_v43, %v8152_v49  ;;  %v8171_v17 = vpop.eup %5134  ;;  %5154 = vpow2.f32 %v3559_v45  ;;  %v3563_v61 = vmul.f32 1.442695, %v3399_v51 }
 0x6fb   : > { %v3565_v7 = vmul.f32 1.442695, %v3400_v8  ;;  %v3567_v31 = vmul.f32 1.442695, %v3401_v10  ;;  %v8173_v58 = vpop.eup %5136  ;;  %5156 = vpow2.f32 %v3561_v44  ;;  %v3569_v60 = vmul.f32 1.442695, %v3402_v30  ;;  %v3257_v11 = vpop.xlane.xlu1 %3256 }
 0x6fc   : > { %v10077_v12 = vmax.f32 %v7998_v23, %v8000_v6  ;;  %v3773_v27 = vadd.f32 %v8160_v35, %v3772_v48  ;;  %v8179_v41 = vpop.eup %5138  ;;  %5158 = vpow2.f32 %v3563_v61  ;;  %v3403_v45 = vsub.f32 %v7606_v42, %v3257_v11  ;;  %v10079_v8 = vld [vmem:[#allocation92_spill] sm:$0xff]  ;;  %v10080_v44 = vld [vmem:[#allocation85_spill] sm:$0xff] }
 0x6fd   : > { %3770 = vadd.xlane.f32.xlu1 %v3769_v57  ;;  %10078 = vst [vmem:[#allocation75_spill] sm:$0xff] %v8179_v41  ;;  %v3404_v51 = vsub.f32 %v7608_v26, %v3257_v11  ;;  %v3405_v10 = vsub.f32 %v10079_v8, %v3257_v11  ;;  %v8184_v38 = vpop.eup %5140  ;;  %5160 = vpow2.f32 %v3565_v7  ;;  %v3406_v30 = vsub.f32 %v10080_v44, %v3257_v11 }
 0x6fe   : > { %3341 = vmax.xlane.f32.xlu0 %v10077_v12  ;;  %v3774_v23 = vadd.f32 %v8165_v53, %v3773_v27  ;;  %v3777_v57 = vadd.f32 %v8173_v58, %v8171_v17  ;;  %v8190_v48 = vpop.eup %5142  ;;  %5162 = vpow2.f32 %v3567_v31  ;;  %v3571_v61 = vmul.f32 1.442695, %v3403_v45 }
 0x6ff   : > { %v3573_v12 = vmul.f32 1.442695, %v3404_v51  ;;  %v3575_v42 = vmul.f32 1.442695, %v3405_v10  ;;  %v8192_v35 = vpop.eup %5144  ;;  %5164 = vpow2.f32 %v3569_v60  ;;  %v3577_v26 = vmul.f32 1.442695, %v3406_v30  ;;  %v3262_v11 = vpop.xlane.xlu0 %3261 }
 0x700   : > { %v10081_v7 = vmax.f32 %v8010_v47, %v8012_v28  ;;  %v3778_v27 = vadd.f32 %v8179_v41, %v3777_v57  ;;  %v8198_v8 = vpop.eup %5146  ;;  %5166 = vpow2.f32 %v3571_v61  ;;  %v3407_v31 = vsub.f32 %v7614_v1, %v3262_v11  ;;  %v10083_v51 = vld [vmem:[#allocation88_spill] sm:$0xff]  ;;  %v10084_v60 = vld [vmem:[#allocation94_spill] sm:$0xff] }
 0x701   : > { %10082 = vst [vmem:[#allocation73_spill] sm:$0xff] %v8198_v8  ;;  %v3408_v45 = vsub.f32 %v7616_v39, %v3262_v11  ;;  %v3409_v10 = vsub.f32 %v10083_v51, %v3262_v11  ;;  %v8203_v44 = vpop.eup %5148  ;;  %5168 = vpow2.f32 %v3573_v12  ;;  %v3410_v30 = vsub.f32 %v10084_v60, %v3262_v11 }
 0x702   : > { %3775 = vadd.xlane.f32.xlu0 %v3774_v23  ;;  %3346 = vmax.xlane.f32.xlu1 %v10081_v7  ;;  %v3779_v47 = vadd.f32 %v8184_v38, %v3778_v27  ;;  %v3782_v23 = vadd.f32 %v8192_v35, %v8190_v48  ;;  %v8209_v57 = vpop.eup %5150  ;;  %5170 = vpow2.f32 %v3575_v42  ;;  %v3579_v61 = vmul.f32 1.442695, %v3407_v31 }
 0x703   : > { %v3581_v7 = vmul.f32 1.442695, %v3408_v45  ;;  %v3583_v1 = vmul.f32 1.442695, %v3409_v10  ;;  %v8211_v41 = vpop.eup %5152  ;;  %5172 = vpow2.f32 %v3577_v26  ;;  %v3585_v39 = vmul.f32 1.442695, %v3410_v30  ;;  %v3267_v11 = vpop.xlane.xlu1 %3266 }
 0x704   : > { %v10085_v12 = vmax.f32 %v8022_v20, %v8024_v0  ;;  %v3783_v27 = vadd.f32 %v8198_v8, %v3782_v23  ;;  %v8217_v51 = vpop.eup %5154  ;;  %5174 = vpow2.f32 %v3579_v61  ;;  %v3411_v42 = vsub.f32 %v7620_v14, %v3267_v11  ;;  %v10087_v45 = vld [vmem:[#allocation98_spill] sm:$0xff]  ;;  %v10089_v26 = vld [vmem:[#allocation95_spill] sm:$0xff] }
 0x705   : > { %10086 = vst [vmem:[#allocation76_spill] sm:$0xff] %v8217_v51  ;;  %v3412_v31 = vsub.f32 %v7622_v2, %v3267_v11  ;;  %v3413_v10 = vsub.f32 %v10087_v45, %v3267_v11  ;;  %v8222_v60 = vpop.eup %5156  ;;  %5176 = vpow2.f32 %v3581_v7  ;;  %v3414_v30 = vsub.f32 %v10089_v26, %v3267_v11 }
 0x706   : > { %3780 = vadd.xlane.f32.xlu1 %v3779_v47  ;;  %3351 = vmax.xlane.f32.xlu0 %v10085_v12  ;;  %10088 = vst [vmem:[#allocation69_spill] sm:$0xff] %v8222_v60  ;;  %v3784_v20 = vadd.f32 %v8203_v44, %v3783_v27  ;;  %v3787_v47 = vadd.f32 %v8211_v41, %v8209_v57  ;;  %v8228_v23 = vpop.eup %5158  ;;  %5178 = vpow2.f32 %v3583_v1  ;;  %v3587_v61 = vmul.f32 1.442695, %v3411_v42 }
 0x707   : > { %v3589_v12 = vmul.f32 1.442695, %v3412_v31  ;;  %v3591_v14 = vmul.f32 1.442695, %v3413_v10  ;;  %v8230_v8 = vpop.eup %5160  ;;  %5180 = vpow2.f32 %v3585_v39  ;;  %v3593_v2 = vmul.f32 1.442695, %v3414_v30  ;;  %v3272_v11 = vpop.xlane.xlu0 %3271 }
 0x708   : > { %v10090_v7 = vmax.f32 %v8034_v21, %v8036_v62  ;;  %v3788_v27 = vadd.f32 %v8217_v51, %v3787_v47  ;;  %v8236_v45 = vpop.eup %5162  ;;  %5182 = vpow2.f32 %v3587_v61  ;;  %v3415_v1 = vsub.f32 %v7626_v18, %v3272_v11  ;;  %v10092_v31 = vld [vmem:[#allocation97_spill] sm:$0xff] }
 0x709   : > { %10091 = vst [vmem:[#allocation72_spill] sm:$0xff] %v8236_v45  ;;  %v3416_v42 = vsub.f32 %v7628_v46, %v3272_v11  ;;  %v3417_v10 = vsub.f32 %v10092_v31, %v3272_v11  ;;  %v8241_v26 = vpop.eup %5164  ;;  %5184 = vpow2.f32 %v3589_v12  ;;  %v10093_v39 = vld [vmem:[#allocation93_spill] sm:$0xff]  ;;  %v10096_v12 = vmax.f32 %v8046_v25, %v8048_v9 }
 0x70a   : > { %3785 = vadd.xlane.f32.xlu0 %v3784_v20  ;;  %3356 = vmax.xlane.f32.xlu1 %v10090_v7  ;;  %v3418_v30 = vsub.f32 %v10093_v39, %v3272_v11  ;;  %v3789_v21 = vadd.f32 %v8222_v60, %v3788_v27  ;;  %v3792_v20 = vadd.f32 %v8230_v8, %v8228_v23  ;;  %v8247_v47 = vpop.eup %5166  ;;  %5186 = vpow2.f32 %v3591_v14 }
 0x70b   : > { %10094 = vst [vmem:[#allocation78_spill] sm:$0xff] %v8247_v47  ;;  %v3595_v61 = vmul.f32 1.442695, %v3415_v1  ;;  %v3597_v7 = vmul.f32 1.442695, %v3416_v42  ;;  %v8249_v51 = vpop.eup %5168  ;;  %5188 = vpow2.f32 %v3593_v2  ;;  %v3277_v11 = vpop.xlane.xlu1 %3276  ;;  %v10098_v42 = vld [vmem:[#allocation96_spill] sm:$0xff] }
 0x70c   : > { %v3599_v18 = vmul.f32 1.442695, %v3417_v10  ;;  %10095 = vst [vmem:[#allocation82_spill] sm:$0xff] %v8249_v51  ;;  %v3601_v46 = vmul.f32 1.442695, %v3418_v30  ;;  %v3793_v27 = vadd.f32 %v8236_v45, %v3792_v20  ;;  %v8255_v31 = vpop.eup %5170  ;;  %v3419_v14 = vsub.f32 %v7632_v36, %v3277_v11  ;;  %v10100_v2 = vld [vmem:[#allocation36_spill] sm:$0xff] }
 0x70d   : > { %10097 = vst [vmem:[#allocation79_spill] sm:$0xff] %v8255_v31  ;;  %5190 = vpow2.f32 %v3595_v61  ;;  %v3420_v1 = vsub.f32 %v7634_v15, %v3277_v11  ;;  %v3421_v10 = vsub.f32 %v10098_v42, %v3277_v11  ;;  %v8260_v39 = vpop.eup %5172  ;;  %v3422_v30 = vsub.f32 %v10100_v2, %v3277_v11  ;;  %v10106_v45 = vld [vmem:[#allocation35_spill] sm:$0xff] }
 0x70e   : > { %3790 = vadd.xlane.f32.xlu1 %v3789_v21  ;;  %3361 = vmax.xlane.f32.xlu0 %v10096_v12  ;;  %10099 = vst [vmem:[#allocation83_spill] sm:$0xff] %v8260_v39  ;;  %5192 = vpow2.f32 %v3597_v7  ;;  %v3794_v25 = vadd.f32 %v8241_v26, %v3793_v27  ;;  %v3797_v21 = vadd.f32 %v8249_v51, %v8247_v47  ;;  %v8266_v20 = vpop.eup %5174  ;;  %v3603_v61 = vmul.f32 1.442695, %v3419_v14  ;;  %v10104_v27 = vld [vmem:[#allocation119_spill] sm:$0xff]  ;;  %v10105_v47 = vld [vmem:[#allocation121_spill] sm:$0xff] }
 0x70f   : > { %10101 = vst [vmem:[#allocation81_spill] sm:$0xff] %v8266_v20  ;;  %5194 = vpow2.f32 %v3599_v18  ;;  %v3605_v12 = vmul.f32 1.442695, %v3420_v1  ;;  %v3607_v36 = vmul.f32 1.442695, %v3421_v10  ;;  %v8268_v60 = vpop.eup %5176  ;;  %v3282_v42 = vpop.xlane.xlu0 %3281  ;;  %v10108_v1 = vld [vmem:[#allocation100_spill] sm:$0xff] }
 0x710   : > { %10102 = vst [vmem:[#allocation84_spill] sm:$0xff] %v8268_v60  ;;  %5196 = vpow2.f32 %v3601_v46  ;;  %v3609_v15 = vmul.f32 1.442695, %v3422_v30  ;;  %v3798_v7 = vadd.f32 %v8255_v31, %v3797_v21  ;;  %v8271_v11 = vpop.eup %5178  ;;  %v3423_v2 = vsub.f32 %v10104_v27, %v3282_v42 }
 0x711   : > { %10103 = vst [vmem:[#allocation77_spill] sm:$0xff] %v8271_v11  ;;  %5198 = vpow2.f32 %v3603_v61  ;;  %v3424_v51 = vsub.f32 %v10105_v47, %v3282_v42  ;;  %v3425_v18 = vsub.f32 %v10106_v45, %v3282_v42  ;;  %v8276_v14 = vpop.eup %5180  ;;  %v3426_v10 = vsub.f32 %v10108_v1, %v3282_v42 }
 0x712   : > { %3795 = vadd.xlane.f32.xlu0 %v3794_v25  ;;  %10107 = vst [vmem:[#allocation80_spill] sm:$0xff] %v8276_v14  ;;  %5200 = vpow2.f32 %v3605_v12  ;;  %v3799_v46 = vadd.f32 %v8260_v39, %v3798_v7  ;;  %v3802_v30 = vadd.f32 %v8268_v60, %v8266_v20  ;;  %v8282_v25 = vpop.eup %5182  ;;  %v3611_v21 = vmul.f32 1.442695, %v3423_v2  ;;  %v10112_v7 = vld [vmem:[#allocation120_spill] sm:$0xff]  ;;  %v10113_v20 = vld [vmem:[#allocation122_spill] sm:$0xff]  ;;  %v10114_v60 = vld [vmem:[#allocation101_spill] sm:$0xff] }
 0x713   : > { %10109 = vst [vmem:[#allocation86_spill] sm:$0xff] %v8282_v25  ;;  %5202 = vpow2.f32 %v3607_v36  ;;  %v3613_v61 = vmul.f32 1.442695, %v3424_v51  ;;  %v3615_v27 = vmul.f32 1.442695, %v3425_v18  ;;  %v8284_v31 = vpop.eup %5184  ;;  %v3287_v47 = vpop.xlane.xlu1 %3286  ;;  %v10116_v51 = vld [vmem:[#allocation105_spill] sm:$0xff] }
 0x714   : > { %10110 = vst [vmem:[#allocation90_spill] sm:$0xff] %v8284_v31  ;;  %5204 = vpow2.f32 %v3609_v15  ;;  %v3617_v45 = vmul.f32 1.442695, %v3426_v10  ;;  %3800 = vadd.xlane.f32.xlu1 %v3799_v46  ;;  %v3803_v12 = vadd.f32 %v8271_v11, %v3802_v30  ;;  %v8287_v42 = vpop.eup %5186  ;;  %v3427_v1 = vsub.f32 %v10112_v7, %v3287_v47 }
 0x715   : > { %10111 = vst [vmem:[#allocation87_spill] sm:$0xff] %v8287_v42  ;;  %5206 = vpow2.f32 %v3611_v21  ;;  %v3428_v39 = vsub.f32 %v10113_v20, %v3287_v47  ;;  %v3429_v36 = vsub.f32 %v10114_v60, %v3287_v47  ;;  %v8292_v2 = vpop.eup %5188  ;;  %v3430_v18 = vsub.f32 %v10116_v51, %v3287_v47 }
 0x716   : > { %10115 = vst [vmem:[#allocation91_spill] sm:$0xff] %v8292_v2  ;;  %5208 = vpow2.f32 %v3613_v61  ;;  %v3804_v15 = vadd.f32 %v8276_v14, %v3803_v12  ;;  %v3807_v10 = vadd.f32 %v8284_v31, %v8282_v25  ;;  %v3619_v30 = vmul.f32 1.442695, %v3427_v1  ;;  %v10120_v12 = vld [vmem:[#allocation124_spill] sm:$0xff]  ;;  %v10121_v25 = vld [vmem:[#allocation123_spill] sm:$0xff] }
 0x717   : > { %v8298_v46 = vpop.eup %5190  ;;  %5210 = vpow2.f32 %v3615_v27  ;;  %v3621_v21 = vmul.f32 1.442695, %v3428_v39  ;;  %v3623_v7 = vmul.f32 1.442695, %v3429_v36  ;;  %v3625_v60 = vmul.f32 1.442695, %v3430_v18  ;;  %v3292_v20 = vpop.xlane.xlu0 %3291 }
 0x718   : > { %10117 = vst [vmem:[#allocation89_spill] sm:$0xff] %v8298_v46  ;;  %v8300_v11 = vpop.eup %5192  ;;  %5212 = vpow2.f32 %v3617_v45  ;;  %3805 = vadd.xlane.f32.xlu0 %v3804_v15  ;;  %v3808_v61 = vadd.f32 %v8287_v42, %v3807_v10  ;;  %v3431_v51 = vsub.f32 %v10120_v12, %v3292_v20  ;;  %v3432_v31 = vsub.f32 %v10121_v25, %v3292_v20  ;;  %v10122_v14 = vld [vmem:[#allocation104_spill] sm:$0xff] }
 0x719   : > { %10118 = vst [vmem:[#allocation92_spill] sm:$0xff] %v8300_v11  ;;  %v8303_v47 = vpop.eup %5194  ;;  %5214 = vpow2.f32 %v3619_v30  ;;  %v3433_v27 = vsub.f32 %v10122_v14, %v3292_v20  ;;  %v10124_v39 = vld [vmem:[#allocation108_spill] sm:$0xff]  ;;  %v3812_v18 = vadd.f32 %v8300_v11, %v8298_v46  ;;  %v10129_v46 = vld [vmem:[#allocation45_spill] sm:$0xff]  ;;  %v10130_v11 = vld [vmem:[#allocation103_spill] sm:$0xff] }
 0x71a   : > { %10119 = vst [vmem:[#allocation85_spill] sm:$0xff] %v8303_v47  ;;  %v8308_v1 = vpop.eup %5196  ;;  %5216 = vpow2.f32 %v3621_v21  ;;  %v3434_v36 = vsub.f32 %v10124_v39, %v3292_v20  ;;  %v3809_v45 = vadd.f32 %v8292_v2, %v3808_v61  ;;  %v3627_v10 = vmul.f32 1.442695, %v3431_v51  ;;  %v10128_v61 = vld [vmem:[#allocation117_spill] sm:$0xff] }
 0x71b   : > { %10123 = vst [vmem:[#allocation88_spill] sm:$0xff] %v8308_v1  ;;  %v8314_v15 = vpop.eup %5198  ;;  %5218 = vpow2.f32 %v3623_v7  ;;  %v3629_v30 = vmul.f32 1.442695, %v3432_v31  ;;  %v3631_v12 = vmul.f32 1.442695, %v3433_v27  ;;  %v3297_v25 = vpop.xlane.xlu1 %3296  ;;  %v3813_v21 = vadd.f32 %v8303_v47, %v3812_v18  ;;  %v10132_v31 = vld [vmem:[#allocation106_spill] sm:$0xff] }
 0x71c   : > { %10125 = vst [vmem:[#allocation94_spill] sm:$0xff] %v8314_v15  ;;  %v8316_v42 = vpop.eup %5200  ;;  %5220 = vpow2.f32 %v3625_v60  ;;  %v3633_v14 = vmul.f32 1.442695, %v3434_v36  ;;  %3810 = vadd.xlane.f32.xlu1 %v3809_v45  ;;  %v3435_v39 = vsub.f32 %v10128_v61, %v3297_v25  ;;  %v3436_v2 = vsub.f32 %v10129_v46, %v3297_v25 }
 0x71d   : > { %10126 = vst [vmem:[#allocation98_spill] sm:$0xff] %v8316_v42  ;;  %v8319_v20 = vpop.eup %5202  ;;  %5222 = vpow2.f32 %v3627_v10  ;;  %v3437_v7 = vsub.f32 %v10130_v11, %v3297_v25  ;;  %v3438_v27 = vsub.f32 %v10132_v31, %v3297_v25  ;;  %v3814_v60 = vadd.f32 %v8308_v1, %v3813_v21  ;;  %v10136_v21 = vld [vmem:[#allocation118_spill] sm:$0xff]  ;;  %v10138_v1 = vld [vmem:[#allocation99_spill] sm:$0xff] }
 0x71e   : > { %10127 = vst [vmem:[#allocation95_spill] sm:$0xff] %v8319_v20  ;;  %v8324_v51 = vpop.eup %5204  ;;  %5224 = vpow2.f32 %v3629_v30  ;;  %v3817_v36 = vadd.f32 %v8316_v42, %v8314_v15  ;;  %v3635_v18 = vmul.f32 1.442695, %v3435_v39  ;;  %v3637_v10 = vmul.f32 1.442695, %v3436_v2  ;;  %v10137_v15 = vld [vmem:[#allocation48_spill] sm:$0xff] }
 0x71f   : > { %10131 = vst [vmem:[#allocation97_spill] sm:$0xff] %v8324_v51  ;;  %v8330_v45 = vpop.eup %5206  ;;  %5226 = vpow2.f32 %v3631_v12  ;;  %v3639_v61 = vmul.f32 1.442695, %v3437_v7  ;;  %v3641_v11 = vmul.f32 1.442695, %v3438_v27  ;;  %3815 = vadd.xlane.f32.xlu0 %v3814_v60  ;;  %v3302_v46 = vpop.xlane.xlu0 %3301  ;;  %v10140_v2 = vld [vmem:[#allocation102_spill] sm:$0xff] }
 0x720   : > { %10133 = vst [vmem:[#allocation93_spill] sm:$0xff] %v8330_v45  ;;  %v8332_v47 = vpop.eup %5208  ;;  %5228 = vpow2.f32 %v3633_v14  ;;  %v3818_v30 = vadd.f32 %v8319_v20, %v3817_v36  ;;  %v3439_v31 = vsub.f32 %v10136_v21, %v3302_v46  ;;  %v3440_v42 = vsub.f32 %v10137_v15, %v3302_v46 }
 0x721   : > { %10134 = vst [vmem:[#allocation96_spill] sm:$0xff] %v8332_v47  ;;  %v8335_v25 = vpop.eup %5210  ;;  %5230 = vpow2.f32 %v3635_v18  ;;  %v3441_v12 = vsub.f32 %v10138_v1, %v3302_v46  ;;  %v3442_v7 = vsub.f32 %v10140_v2, %v3302_v46  ;;  %v3822_v27 = vadd.f32 %v8332_v47, %v8330_v45  ;;  %v10145_v45 = vld [vmem:[#allocation49_spill] sm:$0xff] }
 0x722   : > { %10135 = vst [vmem:[#allocation36_spill] sm:$0xff] %v8335_v25  ;;  %v8340_v39 = vpop.eup %5212  ;;  %5232 = vpow2.f32 %v3637_v10  ;;  %v3819_v14 = vadd.f32 %v8324_v51, %v3818_v30  ;;  %v3643_v36 = vmul.f32 1.442695, %v3439_v31  ;;  %v3645_v18 = vmul.f32 1.442695, %v3440_v42  ;;  %v10144_v30 = vld [vmem:[#allocation52_spill] sm:$0xff] }
 0x723   : > { %10139 = vst [vmem:[#allocation119_spill] sm:$0xff] %v8340_v39  ;;  %v8346_v60 = vpop.eup %5214  ;;  %5234 = vpow2.f32 %v3639_v61  ;;  %v3647_v21 = vmul.f32 1.442695, %v3441_v12  ;;  %v3649_v1 = vmul.f32 1.442695, %v3442_v7  ;;  %v3307_v15 = vpop.xlane.xlu1 %3306  ;;  %v3823_v10 = vadd.f32 %v8335_v25, %v3822_v27  ;;  %v10146_v51 = vld [vmem:[#allocation109_spill] sm:$0xff] }
 0x724   : > { %10141 = vst [vmem:[#allocation121_spill] sm:$0xff] %v8346_v60  ;;  %v8348_v20 = vpop.eup %5216  ;;  %5236 = vpow2.f32 %v3641_v11  ;;  %3820 = vadd.xlane.f32.xlu1 %v3819_v14  ;;  %v3443_v2 = vsub.f32 %v10144_v30, %v3307_v15  ;;  %v3444_v47 = vsub.f32 %v10145_v45, %v3307_v15  ;;  %v3445_v61 = vsub.f32 %v10146_v51, %v3307_v15  ;;  %v10148_v42 = vld [vmem:[#allocation112_spill] sm:$0xff] }
 0x725   : > { %10142 = vst [vmem:[#allocation35_spill] sm:$0xff] %v8348_v20  ;;  %v8351_v46 = vpop.eup %5218  ;;  %5238 = vpow2.f32 %v3643_v36  ;;  %v3446_v12 = vsub.f32 %v10148_v42, %v3307_v15  ;;  %v3824_v11 = vadd.f32 %v8340_v39, %v3823_v10  ;;  %v3827_v7 = vadd.f32 %v8348_v20, %v8346_v60  ;;  %v10152_v10 = vld [vmem:[#allocation53_spill] sm:$0xff]  ;;  %v10153_v60 = vld [vmem:[#allocation50_spill] sm:$0xff]  ;;  %v10154_v39 = vld [vmem:[#allocation107_spill] sm:$0xff] }
 0x726   : > { %10143 = vst [vmem:[#allocation100_spill] sm:$0xff] %v8351_v46  ;;  %v8356_v31 = vpop.eup %5220  ;;  %5240 = vpow2.f32 %v3645_v18  ;;  %v3651_v27 = vmul.f32 1.442695, %v3443_v2  ;;  %v3653_v36 = vmul.f32 1.442695, %v3444_v47  ;;  %v10156_v47 = vld [vmem:[#allocation110_spill] sm:$0xff] }
 0x727   : > { %10147 = vst [vmem:[#allocation120_spill] sm:$0xff] %v8356_v31  ;;  %v8362_v14 = vpop.eup %5222  ;;  %5242 = vpow2.f32 %v3647_v21  ;;  %v3655_v30 = vmul.f32 1.442695, %v3445_v61  ;;  %v3657_v51 = vmul.f32 1.442695, %v3446_v12  ;;  %3825 = vadd.xlane.f32.xlu0 %v3824_v11  ;;  %v3312_v45 = vpop.xlane.xlu0 %3311  ;;  %v3828_v18 = vadd.f32 %v8351_v46, %v3827_v7 }
 0x728   : > { %10149 = vst [vmem:[#allocation122_spill] sm:$0xff] %v8362_v14  ;;  %v8364_v25 = vpop.eup %5224  ;;  %5244 = vpow2.f32 %v3649_v1  ;;  %v3447_v42 = vsub.f32 %v10152_v10, %v3312_v45  ;;  %v3448_v20 = vsub.f32 %v10153_v60, %v3312_v45  ;;  %v3449_v21 = vsub.f32 %v10154_v39, %v3312_v45 }
 0x729   : > { %10150 = vst [vmem:[#allocation101_spill] sm:$0xff] %v8364_v25  ;;  %v8367_v15 = vpop.eup %5226  ;;  %5246 = vpow2.f32 %v3651_v27  ;;  %v3450_v61 = vsub.f32 %v10156_v47, %v3312_v45  ;;  %v3829_v1 = vadd.f32 %v8356_v31, %v3828_v18  ;;  %v3832_v12 = vadd.f32 %v8364_v25, %v8362_v14  ;;  %v10160_v18 = vld [vmem:[#allocation51_spill] sm:$0xff]  ;;  %v10161_v14 = vld [vmem:[#allocation46_spill] sm:$0xff] }
 0x72a   : > { %10151 = vst [vmem:[#allocation105_spill] sm:$0xff] %v8367_v15  ;;  %v8372_v2 = vpop.eup %5228  ;;  %5248 = vpow2.f32 %v3653_v36  ;;  %v3659_v7 = vmul.f32 1.442695, %v3447_v42  ;;  %v3661_v27 = vmul.f32 1.442695, %v3448_v20  ;;  %v10162_v31 = vld [vmem:[#allocation26_spill] sm:$0xff] }
 0x72b   : > { %10155 = vst [vmem:[#allocation124_spill] sm:$0xff] %v8372_v2  ;;  %v8378_v11 = vpop.eup %5230  ;;  %5250 = vpow2.f32 %v3655_v30  ;;  %v3663_v10 = vmul.f32 1.442695, %v3449_v21  ;;  %v3665_v39 = vmul.f32 1.442695, %v3450_v61  ;;  %3830 = vadd.xlane.f32.xlu1 %v3829_v1  ;;  %v3317_v60 = vpop.xlane.xlu1 %3316  ;;  %v3833_v36 = vadd.f32 %v8367_v15, %v3832_v12  ;;  %v10163_v20 = vld [vmem:[#allocation38_spill] sm:$0xff] }
 0x72c   : > { %10157 = vst [vmem:[#allocation123_spill] sm:$0xff] %v8378_v11  ;;  %v8380_v46 = vpop.eup %5232  ;;  %5252 = vpow2.f32 %v3657_v51  ;;  %v3451_v47 = vsub.f32 %v10160_v18, %v3317_v60  ;;  %v3452_v25 = vsub.f32 %v10161_v14, %v3317_v60  ;;  %v3453_v30 = vsub.f32 %v10162_v31, %v3317_v60 }
 0x72d   : > { %10158 = vst [vmem:[#allocation104_spill] sm:$0xff] %v8380_v46  ;;  %v8383_v45 = vpop.eup %5234  ;;  %5254 = vpow2.f32 %v3659_v7  ;;  %v3454_v21 = vsub.f32 %v10163_v20, %v3317_v60  ;;  %v3834_v51 = vadd.f32 %v8372_v2, %v3833_v36  ;;  %v3837_v61 = vadd.f32 %v8380_v46, %v8378_v11  ;;  %v10166_v36 = vld [vmem:[#allocation47_spill] sm:$0xff]  ;;  %v10167_v11 = vld [vmem:[#allocation54_spill] sm:$0xff]  ;;  %v10168_v2 = vld [vmem:[#allocation25_spill] sm:$0xff] }
 0x72e   : > { %10159 = vst [vmem:[#allocation108_spill] sm:$0xff] %v8383_v45  ;;  %v8388_v42 = vpop.eup %5236  ;;  %5256 = vpow2.f32 %v3661_v27  ;;  %v3667_v12 = vmul.f32 1.442695, %v3451_v47  ;;  %v3669_v7 = vmul.f32 1.442695, %v3452_v25  ;;  %v10169_v25 = vld [vmem:[#allocation37_spill] sm:$0xff] }
 0x72f   : > { %v8394_v1 = vpop.eup %5238  ;;  %5258 = vpow2.f32 %v3663_v10  ;;  %v3671_v18 = vmul.f32 1.442695, %v3453_v30  ;;  %v3673_v31 = vmul.f32 1.442695, %v3454_v21  ;;  %3835 = vadd.xlane.f32.xlu0 %v3834_v51  ;;  %v3322_v14 = vpop.xlane.xlu0 %3321  ;;  %v3838_v27 = vadd.f32 %v8383_v45, %v3837_v61  ;;  %v10194_v45 = vld [vmem:[#allocation23_spill] sm:$0xff] }
 0x730   : > { %10164 = vst [vmem:[#allocation117_spill] sm:$0xff] %v8394_v1  ;;  %v8396_v15 = vpop.eup %5240  ;;  %5260 = vpow2.f32 %v3665_v39  ;;  %v3455_v20 = vsub.f32 %v10166_v36, %v3322_v14  ;;  %v3456_v46 = vsub.f32 %v10167_v11, %v3322_v14  ;;  %v3457_v10 = vsub.f32 %v10168_v2, %v3322_v14 }
 0x731   : > { %v8399_v60 = vpop.eup %5242  ;;  %5262 = vpow2.f32 %v3667_v12  ;;  %v3458_v30 = vsub.f32 %v10169_v25, %v3322_v14  ;;  %v3839_v39 = vadd.f32 %v8388_v42, %v3838_v27  ;;  %v3842_v21 = vadd.f32 %v8396_v15, %v8394_v1 }
 0x732   : > { %10165 = vst [vmem:[#allocation45_spill] sm:$0xff] %v8399_v60  ;;  %v8404_v47 = vpop.eup %5244  ;;  %5264 = vpow2.f32 %v3669_v7  ;;  %v3675_v61 = vmul.f32 1.442695, %v3455_v20  ;;  %v3677_v12 = vmul.f32 1.442695, %v3456_v46 }
 0x733   : > { %v8410_v51 = vpop.eup %5246  ;;  %5266 = vpow2.f32 %v3671_v18  ;;  %v3679_v11 = vmul.f32 1.442695, %v3457_v10  ;;  %3840 = vadd.xlane.f32.xlu1 %v3839_v39  ;;  %v3843_v2 = vadd.f32 %v8399_v60, %v3842_v21  ;;  %v3681_v25 = vmul.f32 1.442695, %v3458_v30 }
 0x734   : > { %10170 = vst [vmem:[#allocation103_spill] sm:$0xff] %v8410_v51  ;;  %v8412_v36 = vpop.eup %5248  ;;  %5268 = vpow2.f32 %v3673_v31 }
 0x735   : > { %10171 = vst [vmem:[#allocation106_spill] sm:$0xff] %v8412_v36  ;;  %v8415_v7 = vpop.eup %5250  ;;  %5270 = vpow2.f32 %v3675_v61  ;;  %v3847_v14 = vadd.f32 %v8412_v36, %v8410_v51  ;;  %v3844_v18 = vadd.f32 %v8404_v47, %v3843_v2 }
 0x736   : > { %10172 = vst [vmem:[#allocation118_spill] sm:$0xff] %v8415_v7  ;;  %v8419_v27 = vpop.eup %5252  ;;  %5272 = vpow2.f32 %v3677_v12 }
 0x737   : > { %10173 = vst [vmem:[#allocation48_spill] sm:$0xff] %v8419_v27  ;;  %v8422_v46 = vpop.eup %5254  ;;  %v3848_v31 = vadd.f32 %v8415_v7, %v3847_v14  ;;  %5274 = vpow2.f32 %v3679_v11  ;;  %3845 = vadd.xlane.f32.xlu0 %v3844_v18 }
 0x738   : > { %10174 = vst [vmem:[#allocation99_spill] sm:$0xff] %v8422_v46  ;;  %v8425_v20 = vpop.eup %5256  ;;  %5276 = vpow2.f32 %v3681_v25 }
 0x739   : > { %10175 = vst [vmem:[#allocation102_spill] sm:$0xff] %v8425_v20  ;;  %v8427_v10 = vpop.eup %5258  ;;  %v3849_v39 = vadd.f32 %v8419_v27, %v3848_v31  ;;  %v3852_v21 = vadd.f32 %v8425_v20, %v8422_v46  ;;  %v10186_v20 = vld [vmem:[#allocation58_spill] sm:$0xff] }
 0x73a   : > { %10176 = vst [vmem:[#allocation52_spill] sm:$0xff] %v8427_v10  ;;  %v8432_v61 = vpop.eup %5260 }
 0x73b   : > { %10177 = vst [vmem:[#allocation49_spill] sm:$0xff] %v8432_v61  ;;  %v8434_v30 = vpop.eup %5262  ;;  %3850 = vadd.xlane.f32.xlu1 %v3849_v39  ;;  %v3853_v12 = vadd.f32 %v8427_v10, %v3852_v21 }
 0x73c   : > { %10178 = vst [vmem:[#allocation109_spill] sm:$0xff] %v8434_v30  ;;  %v8437_v2 = vpop.eup %5264 }
 0x73d   : > { %10179 = vst [vmem:[#allocation112_spill] sm:$0xff] %v8437_v2  ;;  %v8439_v14 = vpop.eup %5266  ;;  %v3854_v11 = vadd.f32 %v8432_v61, %v3853_v12  ;;  %v3857_v18 = vadd.f32 %v8437_v2, %v8434_v30 }
 0x73e   : > { %10180 = vst [vmem:[#allocation53_spill] sm:$0xff] %v8439_v14  ;;  %v8444_v31 = vpop.eup %5268 }
 0x73f   : > { %10181 = vst [vmem:[#allocation50_spill] sm:$0xff] %v8444_v31  ;;  %v8446_v51 = vpop.eup %5270  ;;  %3855 = vadd.xlane.f32.xlu0 %v3854_v11  ;;  %v3858_v25 = vadd.f32 %v8439_v14, %v3857_v18 }
 0x740   : > { %10182 = vst [vmem:[#allocation107_spill] sm:$0xff] %v8446_v51  ;;  %v8449_v46 = vpop.eup %5272 }
 0x741   : > { %10183 = vst [vmem:[#allocation110_spill] sm:$0xff] %v8449_v46  ;;  %v3859_v39 = vadd.f32 %v8444_v31, %v3858_v25  ;;  %v3862_v21 = vadd.f32 %v8449_v46, %v8446_v51  ;;  %v8454_v36 = vpop.eup %5274  ;;  %v10187_v31 = vld [vmem:[#allocation55_spill] sm:$0xff]  ;;  %v10188_v51 = vld [vmem:[#allocation30_spill] sm:$0xff] }
 0x742   : > { %10184 = vst [vmem:[#allocation51_spill] sm:$0xff] %v8454_v36  ;;  %v8457_v30 = vpop.eup %5276 }
 0x743   : > { %3860 = vadd.xlane.f32.xlu1 %v3859_v39  ;;  %v3863_v12 = vadd.f32 %v8454_v36, %v3862_v21  ;;  %10185 = vst [vmem:[#allocation46_spill] sm:$0xff] %v8457_v30 }
 0x745   : > { %v3864_v2 = vadd.f32 %v8457_v30, %v3863_v12  ;;  %v10190_v30 = vld [vmem:[#allocation57_spill] sm:$0xff] }
 0x747   : > { %3865 = vadd.xlane.f32.xlu0 %v3864_v2  ;;  %v10189_v2 = vld [vmem:[#allocation59_spill] sm:$0xff] }
 0x778   : > { %v3751_v11 = vpop.xlane.xlu1 %3750 }
 0x779   : > { %5278 = vrcp.f32 %v3751_v11 }
 0x77c   : > { %v3756_v18 = vpop.xlane.xlu0 %3755 }
 0x77d   : > { %5280 = vrcp.f32 %v3756_v18  ;;  %v10191_v18 = vld [vmem:[#allocation40_spill] sm:$0xff] }
 0x77e   : > { %v3327_v14 = vpop.xlane.xlu1 %3326 }
 0x77f   : > { %v3459_v25 = vsub.f32 %v10186_v20, %v3327_v14  ;;  %v3460_v1 = vsub.f32 %v10187_v31, %v3327_v14  ;;  %v3461_v46 = vsub.f32 %v10188_v51, %v3327_v14  ;;  %v3462_v39 = vsub.f32 %v7964_v34, %v3327_v14 }
 0x781   : > { %v3683_v10 = vmul.f32 1.442695, %v3459_v25  ;;  %v3685_v21 = vmul.f32 1.442695, %v3460_v1  ;;  %v3687_v36 = vmul.f32 1.442695, %v3461_v46 }
 0x782   : > { %v3689_v7 = vmul.f32 1.442695, %v3462_v39  ;;  %v3761_v61 = vpop.xlane.xlu1 %3760  ;;  %v3332_v12 = vpop.xlane.xlu0 %3331 }
 0x783   : > { %5282 = vpow2.f32 %v3683_v10  ;;  %v3463_v11 = vsub.f32 %v10189_v2, %v3332_v12  ;;  %v3464_v27 = vsub.f32 %v10190_v30, %v3332_v12  ;;  %v3465_v60 = vsub.f32 %v10191_v18, %v3332_v12  ;;  %v5279_v31 = vpop.eup %5278  ;;  %v10192_v30 = vld [vmem:[#allocation60_spill] sm:$0xff]  ;;  %v10193_v18 = vld [vmem:[#allocation125_spill] sm:$0xff] }
 0x784   : > { %5284 = vpow2.f32 %v3685_v21  ;;  %v3466_v20 = vsub.f32 %v7976_v29, %v3332_v12  ;;  %v3940_v10 = vmul.f32 %v5279_v31, %v8070_v4  ;;  %v3939_v39 = vmul.f32 %v5279_v31, %v8068_v54 }
 0x785   : > { %5286 = vpow2.f32 %v3687_v36  ;;  %v3691_v51 = vmul.f32 1.442695, %v3463_v11  ;;  %v3693_v34 = vmul.f32 1.442695, %v3464_v27  ;;  %v3695_v14 = vmul.f32 1.442695, %v3465_v60 }
 0x786   : > { %5288 = vpow2.f32 %v3689_v7  ;;  %v3697_v1 = vmul.f32 1.442695, %v3466_v20  ;;  %v3766_v46 = vpop.xlane.xlu0 %3765  ;;  %v3337_v25 = vpop.xlane.xlu1 %3336  ;;  %v8475_v60 = vmul.f32 %v5279_v31, %v8077_v59  ;;  %v8478_v7 = vmul.f32 %v5279_v31, %v8072_v16  ;;  %v10199_v16 = vld [vmem:[#allocation28_spill] sm:$0xff] }
 0x787   : > { %5290 = vrcp.f32 %v3761_v61  ;;  %v3467_v2 = vsub.f32 %v10192_v30, %v3337_v25  ;;  %v3468_v21 = vsub.f32 %v10193_v18, %v3337_v25  ;;  %v3469_v29 = vsub.f32 %v10194_v45, %v3337_v25  ;;  %v5281_v27 = vpop.eup %5280 }
 0x788   : > { %5292 = vpow2.f32 %v3691_v51  ;;  %v3470_v36 = vsub.f32 %v7988_v13, %v3337_v25  ;;  %10195 = vst [vmem:[#allocation26_spill] sm:$0xff] %v8475_v60  ;;  %10196 = vst [vmem:[#allocation38_spill] sm:$0xff] %v8478_v7  ;;  %v3944_v45 = vmul.f32 %v5281_v27, %v8084_v37  ;;  %v3943_v51 = vmul.f32 %v5281_v27, %v8082_v56  ;;  %v10197_v13 = vld [vmem:[#allocation56_spill] sm:$0xff]  ;;  %v10198_v25 = vld [vmem:[#allocation62_spill] sm:$0xff] }
 0x789   : > { %5294 = vpow2.f32 %v3693_v34  ;;  %v3699_v4 = vmul.f32 1.442695, %v3467_v2  ;;  %v3701_v54 = vmul.f32 1.442695, %v3468_v21  ;;  %v3703_v61 = vmul.f32 1.442695, %v3469_v29 }
 0x78a   : > { %5296 = vpow2.f32 %v3695_v14  ;;  %v3705_v12 = vmul.f32 1.442695, %v3470_v36  ;;  %v3771_v11 = vpop.xlane.xlu1 %3770  ;;  %v4068_v2 = vpack.c.bf16 %v3944_v45, %v3940_v10  ;;  %v4067_v18 = vpack.c.bf16 %v3943_v51, %v3939_v39  ;;  %v10203_v10 = vld [vmem:[#allocation66_spill] sm:$0xff]  ;;  %v10205_v45 = vld [vmem:[#allocation29_spill] sm:$0xff] }
 0x78b   : > { %v3342_v20 = vpop.xlane.xlu0 %3341  ;;  %5298 = vpow2.f32 %v3697_v1 }
 0x78c   : > { %v3471_v59 = vsub.f32 %v10197_v13, %v3342_v20  ;;  %v3472_v30 = vsub.f32 %v10198_v25, %v3342_v20  ;;  %v3473_v31 = vsub.f32 %v10199_v16, %v3342_v20  ;;  %5300 = vrcp.f32 %v3766_v46  ;;  %4163 = vmatprep.subr.bf16.mxu1 %v4068_v2 }
 0x78d   : > { %v3474_v34 = vsub.f32 %v8000_v6, %v3342_v20  ;;  %v8486_v14 = vpop.eup %5282  ;;  %5302 = vpow2.f32 %v3699_v4  ;;  %v8491_v25 = vmul.f32 %v5281_v27, %v8092_v5  ;;  %v8494_v6 = vmul.f32 %v5281_v27, %v8087_v50  ;;  %v10204_v4 = vld [vmem:[#allocation63_spill] sm:$0xff]  ;;  %4164 = vmatpush1.bf16.xpose.msra.mxu1 %v4067_v18 }
 0x78e   : > { %v3707_v21 = vmul.f32 1.442695, %v3471_v59  ;;  %v3709_v29 = vmul.f32 1.442695, %v3472_v30  ;;  %v3711_v37 = vmul.f32 1.442695, %v3473_v31  ;;  %v8488_v36 = vpop.eup %5284  ;;  %5304 = vpow2.f32 %v3701_v54 }
 0x78f   : > { %v3713_v56 = vmul.f32 1.442695, %v3474_v34  ;;  %v3776_v1 = vpop.xlane.xlu0 %3775  ;;  %v3347_v13 = vpop.xlane.xlu1 %3346  ;;  %10200 = vst [vmem:[#allocation47_spill] sm:$0xff] %v8491_v25  ;;  %10201 = vst [vmem:[#allocation54_spill] sm:$0xff] %v8494_v6  ;;  %5306 = vpow2.f32 %v3703_v61  ;;  %v3867_v5 = vadd.f32 %v8488_v36, %v8486_v14 }
 0x790   : > { %v8496_v46 = vpop.eup %5286  ;;  %v3475_v39 = vsub.f32 %v10203_v10, %v3347_v13  ;;  %v3476_v20 = vsub.f32 %v10204_v4, %v3347_v13  ;;  %v3477_v51 = vsub.f32 %v10205_v45, %v3347_v13  ;;  %5308 = vpow2.f32 %v3705_v12  ;;  %v10209_v10 = vld [vmem:[#allocation67_spill] sm:$0xff] }
 0x791   : > { %10202 = vst [vmem:[#allocation25_spill] sm:$0xff] %v8496_v46  ;;  %v8501_v54 = vpop.eup %5288  ;;  %v3478_v59 = vsub.f32 %v8012_v28, %v3347_v13  ;;  %5310 = vrcp.f32 %v3771_v11  ;;  %v3868_v28 = vadd.f32 %v8496_v46, %v3867_v5  ;;  %v10210_v11 = vld [vmem:[#allocation65_spill] sm:$0xff] }
 0x792   : > { %10206 = vst [vmem:[#allocation37_spill] sm:$0xff] %v8501_v54  ;;  %v8508_v27 = vpop.eup %5290  ;;  %v3715_v61 = vmul.f32 1.442695, %v3475_v39  ;;  %v3717_v30 = vmul.f32 1.442695, %v3476_v20  ;;  %5312 = vpow2.f32 %v3707_v21  ;;  %v10211_v20 = vld [vmem:[#allocation39_spill] sm:$0xff] }
 0x793   : > { %v3719_v16 = vmul.f32 1.442695, %v3477_v51  ;;  %v8510_v31 = vpop.eup %5292  ;;  %v3721_v34 = vmul.f32 1.442695, %v3478_v59  ;;  %v3781_v2 = vpop.xlane.xlu1 %3780  ;;  %v3948_v18 = vmul.f32 %v8508_v27, %v8100_v19  ;;  %5314 = vpow2.f32 %v3709_v29 }
 0x794   : > { %10207 = vst [vmem:[#allocation58_spill] sm:$0xff] %v8510_v31  ;;  %v3352_v12 = vpop.xlane.xlu0 %3351  ;;  %v8515_v13 = vpop.eup %5294  ;;  %5316 = vpow2.f32 %v3711_v37  ;;  %v3869_v59 = vadd.f32 %v8501_v54, %v3868_v28  ;;  %v3947_v5 = vmul.f32 %v8508_v27, %v8098_v40  ;;  %v10212_v28 = vld [vmem:[#allocation68_spill] sm:$0xff] }
 0x795   : > { %10208 = vst [vmem:[#allocation55_spill] sm:$0xff] %v8515_v13  ;;  %v3479_v4 = vsub.f32 %v10209_v10, %v3352_v12  ;;  %v3480_v39 = vsub.f32 %v10210_v11, %v3352_v12  ;;  %v3481_v45 = vsub.f32 %v10211_v20, %v3352_v12  ;;  %v8520_v51 = vpop.eup %5296  ;;  %v3482_v21 = vsub.f32 %v8024_v0, %v3352_v12 }
 0x796   : > { %v8526_v19 = vpop.eup %5298  ;;  %5318 = vpow2.f32 %v3713_v56  ;;  %3870 = vadd.xlane.f32.xlu1 %v3869_v59  ;;  %v3872_v0 = vadd.f32 %v8515_v13, %v8510_v31 }
 0x797   : > { %v3723_v29 = vmul.f32 1.442695, %v3479_v4  ;;  %v3725_v50 = vmul.f32 1.442695, %v3480_v39  ;;  %v3727_v10 = vmul.f32 1.442695, %v3481_v45  ;;  %v8528_v60 = vpop.eup %5300  ;;  %5320 = vrcp.f32 %v3776_v1  ;;  %v3357_v37 = vpop.xlane.xlu1 %3356 }
 0x798   : > { %v3729_v11 = vmul.f32 1.442695, %v3482_v21  ;;  %v3786_v20 = vpop.xlane.xlu0 %3785  ;;  %v8534_v40 = vpop.eup %5302  ;;  %5322 = vpow2.f32 %v3715_v61  ;;  %v3952_v56 = vmul.f32 %v8528_v60, %v8116_v55  ;;  %v3483_v4 = vsub.f32 %v10212_v28, %v3357_v37  ;;  %v10213_v39 = vld [vmem:[#allocation61_spill] sm:$0xff]  ;;  %v10214_v21 = vld [vmem:[#allocation24_spill] sm:$0xff] }
 0x799   : > { %v3484_v1 = vsub.f32 %v10213_v39, %v3357_v37  ;;  %v8540_v45 = vpop.eup %5304  ;;  %5324 = vpow2.f32 %v3717_v30  ;;  %v3485_v59 = vsub.f32 %v10214_v21, %v3357_v37  ;;  %v3486_v25 = vsub.f32 %v8036_v62, %v3357_v37  ;;  %v10215_v37 = vld [vmem:[#allocation64_spill] sm:$0xff]  ;;  %v10216_v21 = vld [vmem:[#allocation70_spill] sm:$0xff] }
 0x79a   : > { %v3951_v12 = vmul.f32 %v8528_v60, %v8114_v63  ;;  %v8546_v7 = vpop.eup %5306  ;;  %5326 = vpow2.f32 %v3719_v16  ;;  %v4072_v61 = vpack.c.bf16 %v3952_v56, %v3948_v18  ;;  %v3731_v6 = vmul.f32 1.442695, %v3483_v4  ;;  %v10217_v18 = vld [vmem:[#allocation27_spill] sm:$0xff] }
 0x79b   : > { %v3733_v55 = vmul.f32 1.442695, %v3484_v1  ;;  %v8548_v46 = vpop.eup %5308  ;;  %5328 = vpow2.f32 %v3721_v34  ;;  %v3735_v28 = vmul.f32 1.442695, %v3485_v59  ;;  %v3737_v39 = vmul.f32 1.442695, %v3486_v25 }
 0x79c   : > { %v4071_v54 = vpack.c.bf16 %v3951_v12, %v3947_v5  ;;  %v3362_v30 = vpop.xlane.xlu0 %3361  ;;  %v5311_v31 = vpop.eup %5310  ;;  %5330 = vrcp.f32 %v3781_v2  ;;  %4165 = vmatprep.subr.bf16.mxu1 %v4072_v61  ;;  %v3873_v62 = vadd.f32 %v8520_v51, %v3872_v0  ;;  %v3877_v25 = vadd.f32 %v8540_v45, %v8534_v40 }
 0x79d   : > { %v3487_v63 = vsub.f32 %v10215_v37, %v3362_v30  ;;  %v3488_v13 = vsub.f32 %v10216_v21, %v3362_v30  ;;  %v8553_v16 = vpop.eup %5312  ;;  %5332 = vpow2.f32 %v3723_v29  ;;  %v3489_v56 = vsub.f32 %v10217_v18, %v3362_v30  ;;  %v10218_v21 = vld [vmem:[#allocation115_spill] sm:$0xff] }
 0x79e   : > { %4166 = vmatpush1.bf16.xpose.msra.mxu1 %v4071_v54  ;;  %v3490_v34 = vsub.f32 %v8048_v9, %v3362_v30  ;;  %v8559_v5 = vpop.eup %5314  ;;  %5334 = vpow2.f32 %v3725_v50  ;;  %v3874_v2 = vadd.f32 %v8526_v19, %v3873_v62  ;;  %v3878_v54 = vadd.f32 %v8546_v7, %v3877_v25 }
 0x79f   : > { %v3739_v0 = vmul.f32 1.442695, %v3487_v63  ;;  %v3741_v12 = vmul.f32 1.442695, %v3488_v13  ;;  %v8562_v4 = vpop.eup %5316  ;;  %5336 = vpow2.f32 %v3727_v10  ;;  %v3743_v1 = vmul.f32 1.442695, %v3489_v56  ;;  %v3791_v63 = vpop.xlane.xlu1 %3790 }
 0x7a0   : > { %v3745_v29 = vmul.f32 1.442695, %v3490_v34  ;;  %v8565_v59 = vpop.eup %5318  ;;  %5338 = vpow2.f32 %v3729_v11  ;;  %3875 = vadd.xlane.f32.xlu0 %v3874_v2  ;;  %v3956_v9 = vmul.f32 %v5311_v31, %v8135_v3  ;;  %v3955_v61 = vmul.f32 %v5311_v31, %v8133_v22  ;;  %v10219_v2 = vld [vmem:[#allocation74_spill] sm:$0xff] }
 0x7a1   : > { %v3882_v50 = vadd.f32 %v8559_v5, %v8553_v16  ;;  %v5321_v30 = vpop.eup %5320  ;;  %5340 = vrcp.f32 %v3786_v20  ;;  %v3879_v13 = vadd.f32 %v8548_v46, %v3878_v54  ;;  %v8574_v10 = vmul.f32 %v8508_v27, %v8108_v52 }
 0x7a2   : > { %v8578_v62 = vmul.f32 %v8528_v60, %v8127_v33  ;;  %v8580_v11 = vpop.eup %5322  ;;  %5342 = vpow2.f32 %v3731_v6  ;;  %v3960_v22 = vmul.f32 %v5321_v30, %v8154_v43  ;;  %v3959_v3 = vmul.f32 %v5321_v30, %v8152_v49 }
 0x7a3   : > { %v3883_v37 = vadd.f32 %v8562_v4, %v3882_v50  ;;  %v8585_v20 = vpop.eup %5324  ;;  %5344 = vpow2.f32 %v3733_v55  ;;  %3880 = vadd.xlane.f32.xlu1 %v3879_v13  ;;  %v8591_v33 = vmul.f32 %v8508_v27, %v8103_v24  ;;  %v8595_v6 = vmul.f32 %v8528_v60, %v10218_v21  ;;  %v3801_v13 = vpop.xlane.xlu1 %3800 }
 0x7a4   : > { %v8597_v43 = vpop.eup %5326  ;;  %5346 = vpow2.f32 %v3735_v28  ;;  %v4076_v49 = vpack.c.bf16 %v3960_v22, %v3956_v9  ;;  %v4075_v18 = vpack.c.bf16 %v3959_v3, %v3955_v61  ;;  %v3887_v34 = vadd.f32 %v8585_v20, %v8580_v11  ;;  %v3796_v28 = vpop.xlane.xlu0 %3795 }
 0x7a5   : > { %v3884_v55 = vadd.f32 %v8565_v59, %v3883_v37  ;;  %v8600_v56 = vpop.eup %5328  ;;  %5348 = vpow2.f32 %v3737_v39  ;;  %v8607_v27 = vmul.f32 %v5311_v31, %v8146_v32  ;;  %v8610_v25 = vmul.f32 %v5321_v30, %v8165_v53  ;;  %v10221_v39 = vld [vmem:[#allocation71_spill] sm:$0xff] }
 0x7a6   : > { %v5331_v60 = vpop.eup %5330  ;;  %5350 = vrcp.f32 %v3791_v63  ;;  %4167 = vmatprep.subr.bf16.mxu1 %v4076_v49  ;;  %v8613_v54 = vmul.f32 %v5311_v31, %v10219_v2  ;;  %v8616_v9 = vmul.f32 %v5321_v30, %v10221_v39  ;;  %v3888_v32 = vadd.f32 %v8597_v43, %v3887_v34  ;;  %v10224_v2 = vld [vmem:[#allocation75_spill] sm:$0xff]  ;;  %v10228_v31 = vld [vmem:[#allocation72_spill] sm:$0xff] }
 0x7a7   : > { %3885 = vadd.xlane.f32.xlu0 %v3884_v55  ;;  %v8618_v61 = vpop.eup %5332  ;;  %5352 = vpow2.f32 %v3739_v0  ;;  %4168 = vmatpush1.bf16.xpose.msra.mxu1 %v4075_v18  ;;  %v3963_v21 = vmul.f32 %v5331_v60, %v8171_v17  ;;  %v8651_v39 = vmul.f32 %v5331_v60, %v10224_v2 }
 0x7a8   : > { %10220 = vst [vmem:[#allocation30_spill] sm:$0xff] %v8613_v54  ;;  %v8621_v50 = vpop.eup %5334  ;;  %5354 = vpow2.f32 %v3741_v12  ;;  %v3889_v30 = vadd.f32 %v8600_v56, %v3888_v32  ;;  %v3964_v12 = vmul.f32 %v5331_v60, %v8173_v58  ;;  %v3806_v37 = vpop.xlane.xlu0 %3805 }
 0x7a9   : > { %v8627_v22 = vpop.eup %5336  ;;  %5356 = vpow2.f32 %v3743_v1  ;;  %v3892_v0 = vadd.f32 %v8621_v50, %v8618_v61  ;;  %v8638_v1 = vmul.f32 %v5331_v60, %v8184_v38  ;;  %v3811_v34 = vpop.xlane.xlu1 %3810  ;;  %10225 = vst [vmem:[#allocation40_spill] sm:$0xff] %v8651_v39  ;;  %v10226_v38 = vld [vmem:[#allocation73_spill] sm:$0xff] }
 0x7aa   : > { %v8632_v3 = vpop.eup %5338  ;;  %5358 = vpow2.f32 %v3745_v29  ;;  %3890 = vadd.xlane.f32.xlu1 %v3889_v30  ;;  %v10231_v39 = vld [vmem:[#allocation69_spill] sm:$0xff] }
 0x7ab   : > { %v5341_v63 = vpop.eup %5340  ;;  %5360 = vrcp.f32 %v3796_v28  ;;  %v3893_v49 = vadd.f32 %v8627_v22, %v3892_v0  ;;  %10222 = vst [vmem:[#allocation59_spill] sm:$0xff] %v8638_v1  ;;  %v10234_v1 = vld [vmem:[#allocation84_spill] sm:$0xff] }
 0x7ac   : > { %v8640_v18 = vpop.eup %5342  ;;  %5362 = vrcp.f32 %v3801_v13  ;;  %v3968_v55 = vmul.f32 %v5341_v63, %v8192_v35  ;;  %v3967_v29 = vmul.f32 %v5341_v63, %v8190_v48  ;;  %v8645_v58 = vmul.f32 %v5341_v63, %v8203_v44  ;;  %v3816_v0 = vpop.xlane.xlu0 %3815 }
 0x7ad   : > { %v8647_v28 = vpop.eup %5344  ;;  %5364 = vrcp.f32 %v3806_v37  ;;  %v3894_v17 = vadd.f32 %v8632_v3, %v3893_v49  ;;  %v8654_v32 = vmul.f32 %v5341_v63, %v10226_v38 }
 0x7ae   : > { %10223 = vst [vmem:[#allocation57_spill] sm:$0xff] %v8645_v58  ;;  %v8656_v13 = vpop.eup %5346  ;;  %v4080_v35 = vpack.c.bf16 %v3968_v55, %v3964_v12  ;;  %v4079_v30 = vpack.c.bf16 %v3967_v29, %v3963_v21  ;;  %v3897_v48 = vadd.f32 %v8647_v28, %v8640_v18  ;;  %5366 = vrcp.f32 %v3811_v34 }
 0x7af   : > { %10227 = vst [vmem:[#allocation60_spill] sm:$0xff] %v8654_v32  ;;  %v8660_v44 = vpop.eup %5348  ;;  %3895 = vadd.xlane.f32.xlu0 %v3894_v17  ;;  %5368 = vrcp.f32 %v3816_v0 }
 0x7b0   : > { %v5351_v63 = vpop.eup %5350  ;;  %4169 = vmatprep.subr.bf16.mxu1 %v4080_v35  ;;  %v3898_v49 = vadd.f32 %v8656_v13, %v3897_v48 }
 0x7b1   : > { %v8667_v12 = vpop.eup %5352  ;;  %4170 = vmatpush1.bf16.xpose.msra.mxu1 %v4079_v30  ;;  %v3821_v17 = vpop.xlane.xlu1 %3820  ;;  %v3972_v35 = vmul.f32 %v5351_v63, %v8211_v41  ;;  %v3971_v48 = vmul.f32 %v5351_v63, %v8209_v57  ;;  %v10230_v41 = vld [vmem:[#allocation82_spill] sm:$0xff] }
 0x7b2   : > { %v8669_v21 = vpop.eup %5354  ;;  %v3899_v55 = vadd.f32 %v8660_v44, %v3898_v49  ;;  %5370 = vrcp.f32 %v3821_v17  ;;  %v10232_v17 = vld [vmem:[#allocation76_spill] sm:$0xff] }
 0x7b3   : > { %v8672_v29 = vpop.eup %5356  ;;  %v3902_v34 = vadd.f32 %v8669_v21, %v8667_v12  ;;  %v8695_v32 = vmul.f32 %v5351_v63, %v10232_v17 }
 0x7b4   : > { %v8676_v2 = vpop.eup %5358  ;;  %3900 = vadd.xlane.f32.xlu1 %v3899_v55  ;;  %v3826_v57 = vpop.xlane.xlu0 %3825 }
 0x7b5   : > { %v5361_v38 = vpop.eup %5360  ;;  %v3903_v30 = vadd.f32 %v8672_v29, %v3902_v34  ;;  %v8692_v34 = vmul.f32 %v5351_v63, %v10231_v39  ;;  %10233 = vst [vmem:[#allocation23_spill] sm:$0xff] %v8695_v32  ;;  %5372 = vrcp.f32 %v3826_v57  ;;  %v10237_v63 = vld [vmem:[#allocation80_spill] sm:$0xff]  ;;  %v10242_v57 = vld [vmem:[#allocation77_spill] sm:$0xff]  ;;  %v10250_v32 = vld [vmem:[#allocation90_spill] sm:$0xff] }
 0x7b6   : > { %v5363_v0 = vpop.eup %5362  ;;  %v3976_v49 = vmul.f32 %v5361_v38, %v8230_v8  ;;  %v3975_v60 = vmul.f32 %v5361_v38, %v8228_v23  ;;  %v8684_v37 = vmul.f32 %v5361_v38, %v8241_v26  ;;  %v8687_v53 = vmul.f32 %v5361_v38, %v10228_v31 }
 0x7b7   : > { %v5365_v55 = vpop.eup %5364  ;;  %v3904_v24 = vadd.f32 %v8676_v2, %v3903_v30  ;;  %v3980_v52 = vmul.f32 %v5363_v0, %v10230_v41  ;;  %v10235_v41 = vld [vmem:[#allocation83_spill] sm:$0xff] }
 0x7b8   : > { %10229 = vst [vmem:[#allocation125_spill] sm:$0xff] %v8687_v53  ;;  %v4084_v8 = vpack.c.bf16 %v3976_v49, %v3972_v35  ;;  %v4083_v23 = vpack.c.bf16 %v3975_v60, %v3971_v48  ;;  %v3984_v26 = vmul.f32 %v5365_v55, %v10234_v1  ;;  %v5367_v58 = vpop.eup %5366  ;;  %v8703_v54 = vmul.f32 %v5363_v0, %v10235_v41  ;;  %v10239_v1 = vld [vmem:[#allocation81_spill] sm:$0xff]  ;;  %v3831_v48 = vpop.xlane.xlu1 %3830  ;;  %v10245_v41 = vld [vmem:[#allocation91_spill] sm:$0xff] }
 0x7b9   : > { %3905 = vadd.xlane.f32.xlu0 %v3904_v24  ;;  %v5369_v38 = vpop.eup %5368  ;;  %v8706_v35 = vmul.f32 %v5365_v55, %v10237_v63  ;;  %v3983_v60 = vmul.f32 %v5365_v55, %v10239_v1  ;;  %v10240_v24 = vld [vmem:[#allocation79_spill] sm:$0xff]  ;;  %v8713_v17 = vmul.f32 %v5365_v55, %v10242_v57  ;;  %v8719_v39 = vmul.f32 %v5367_v58, %v10245_v41  ;;  %v10247_v63 = vld [vmem:[#allocation88_spill] sm:$0xff]  ;;  %v10249_v1 = vld [vmem:[#allocation78_spill] sm:$0xff] }
 0x7ba   : > { %4171 = vmatprep.subr.bf16.mxu1 %v4084_v8  ;;  %v4088_v30 = vpack.c.bf16 %v3984_v26, %v3980_v52  ;;  %10236 = vst [vmem:[#allocation56_spill] sm:$0xff] %v8703_v54  ;;  %v8710_v49 = vmul.f32 %v5363_v0, %v10240_v24  ;;  %v10244_v52 = vld [vmem:[#allocation92_spill] sm:$0xff]  ;;  %v3979_v31 = vmul.f32 %v5363_v0, %v10249_v1  ;;  %5374 = vrcp.f32 %v3831_v48  ;;  %v10251_v57 = vld [vmem:[#allocation87_spill] sm:$0xff]  ;;  %v10253_v26 = vld [vmem:[#allocation85_spill] sm:$0xff] }
 0x7bb   : > { %10238 = vst [vmem:[#allocation62_spill] sm:$0xff] %v8706_v35  ;;  %4172 = vmatpush1.bf16.xpose.msra.mxu1 %v4083_v23  ;;  %10243 = vst [vmem:[#allocation66_spill] sm:$0xff] %v8713_v17  ;;  %v3992_v8 = vmul.f32 %v5369_v38, %v10244_v52  ;;  %v8722_v23 = vmul.f32 %v5369_v38, %v10247_v63  ;;  %v3988_v24 = vmul.f32 %v5367_v58, %v10250_v32  ;;  %v447_v48 = vld [vmem:[%s9568_s10 + $0x18] sm:$0xff]  ;;  %v10255_v1 = vld [vmem:[#allocation89_spill] sm:$0xff] }
 0x7bc   : > { %10241 = vst [vmem:[#allocation28_spill] sm:$0xff] %v8710_v49  ;;  %4173 = vmatprep.subr.bf16.mxu1 %v4088_v30  ;;  %10246 = vst [vmem:[#allocation63_spill] sm:$0xff] %v8719_v39  ;;  %v8731_v52 = vmul.f32 %v5367_v58, %v10251_v57  ;;  %v8734_v41 = vmul.f32 %v5369_v38, %v10253_v26  ;;  %v5371_v54 = vpop.eup %5370  ;;  %v4087_v63 = vpack.c.bf16 %v3983_v60, %v3979_v31  ;;  %v3836_v35 = vpop.xlane.xlu0 %3835  ;;  %v10256_v55 = vld [vmem:[#allocation97_spill] sm:$0xff]  ;;  %v10258_v39 = vld [vmem:[#allocation119_spill] sm:$0xff] }
 0x7bd   : > { %10248 = vst [vmem:[#allocation29_spill] sm:$0xff] %v8722_v23  ;;  %v4092_v53 = vpack.c.bf16 %v3992_v8, %v3988_v24  ;;  %5376 = vrcp.f32 %v3836_v35  ;;  %v3991_v30 = vmul.f32 %v5369_v38, %v10255_v1  ;;  %v8743_v26 = vmul.f32 %v5371_v54, %v10256_v55  ;;  %v10260_v60 = vld [vmem:[#allocation95_spill] sm:$0xff]  ;;  %v10262_v8 = vld [vmem:[#allocation36_spill] sm:$0xff] }
 0x7be   : > { %10252 = vst [vmem:[#allocation67_spill] sm:$0xff] %v8731_v52  ;;  %10254 = vst [vmem:[#allocation65_spill] sm:$0xff] %v8734_v41  ;;  %v8749_v35 = vmul.f32 %v5371_v54, %v10260_v60  ;;  %v10264_v32 = vld [vmem:[#allocation96_spill] sm:$0xff]  ;;  %v10265_v41 = vld [vmem:[#allocation86_spill] sm:$0xff] }
 0x7bf   : > { %v5373_v0 = vpop.eup %5372  ;;  %10257 = vst [vmem:[#allocation39_spill] sm:$0xff] %v8743_v26  ;;  %v3987_v38 = vmul.f32 %v5367_v58, %v10265_v41  ;;  %v10268_v58 = vld [vmem:[#allocation120_spill] sm:$0xff] }
 0x7c0   : > { %v3841_v57 = vpop.xlane.xlu1 %3840  ;;  %v8746_v31 = vmul.f32 %v5373_v0, %v10258_v39  ;;  %10261 = vst [vmem:[#allocation61_spill] sm:$0xff] %v8749_v35  ;;  %v8752_v24 = vmul.f32 %v5373_v0, %v10262_v8  ;;  %v4000_v52 = vmul.f32 %v5373_v0, %v10264_v32  ;;  %v10266_v39 = vld [vmem:[#allocation98_spill] sm:$0xff]  ;;  %v10267_v32 = vld [vmem:[#allocation93_spill] sm:$0xff] }
 0x7c1   : > { %5378 = vrcp.f32 %v3841_v57  ;;  %v3996_v1 = vmul.f32 %v5371_v54, %v10266_v39  ;;  %v4091_v60 = vpack.c.bf16 %v3991_v30, %v3987_v38  ;;  %v448_v57 = vld [vmem:[%s9568_s10 + $0x20] sm:$0xf]  ;;  %v10270_v30 = vld [vmem:[#allocation101_spill] sm:$0xff] }
 0x7c2   : > { %10259 = vst [vmem:[#allocation68_spill] sm:$0xff] %v8746_v31  ;;  %10263 = vst [vmem:[#allocation24_spill] sm:$0xff] %v8752_v24  ;;  %v10273_v39 = vld [vmem:[#allocation105_spill] sm:$0xff]  ;;  %v10277_v31 = vld [vmem:[#allocation122_spill] sm:$0xff] }
 0x7c3   : > { %4174 = vmatpush1.bf16.xpose.msra.mxu1 %v4087_v63  ;;  %v4096_v8 = vpack.c.bf16 %v4000_v52, %v3996_v1  ;;  %v10269_v63 = vld [vmem:[#allocation124_spill] sm:$0xff] }
 0x7c4   : > { %4175 = vmatprep.subr.bf16.mxu1 %v4092_v53  ;;  %v3846_v23 = vpop.xlane.xlu0 %3845  ;;  %v5375_v49 = vpop.eup %5374  ;;  %v10271_v52 = vld [vmem:[#allocation100_spill] sm:$0xff] }
 0x7c5   : > { %466 = vperm.xlu1 %4765, %v447_v48   ;;  %5380 = vrcp.f32 %v3846_v23  ;;  %v3999_v48 = vmul.f32 %v5373_v0, %v10267_v32  ;;  %v8763_v41 = vmul.f32 %v5375_v49, %v10268_v58  ;;  %v8773_v23 = vmul.f32 %v5375_v49, %v10271_v52  ;;  %v10275_v0 = vld [vmem:[#allocation94_spill] sm:$0xff]  ;;  %v10276_v32 = vld [vmem:[#allocation35_spill] sm:$0xff] }
 0x7c6   : > { %v4004_v58 = vmul.f32 %v5375_v49, %v10276_v32 }
 0x7c7   : > { %v5377_v53 = vpop.eup %5376  ;;  %10272 = vst [vmem:[#allocation64_spill] sm:$0xff] %v8773_v23  ;;  %v10288_v23 = vld [vmem:[#allocation49_spill] sm:$0xff] }
 0x7c8   : > { %v3851_v17 = vpop.xlane.xlu1 %3850  ;;  %v8766_v26 = vmul.f32 %v5377_v53, %v10269_v63  ;;  %v4008_v38 = vmul.f32 %v5377_v53, %v10270_v30  ;;  %v8776_v1 = vmul.f32 %v5377_v53, %v10273_v39  ;;  %v10286_v63 = vld [vmem:[#allocation48_spill] sm:$0xff] }
 0x7c9   : > { %5382 = vrcp.f32 %v3851_v17 }
 0x7ca   : > { %10274 = vst [vmem:[#allocation70_spill] sm:$0xff] %v8776_v1  ;;  %v4100_v35 = vpack.c.bf16 %v4008_v38, %v4004_v58  ;;  %v10284_v38 = vld [vmem:[#allocation121_spill] sm:$0xff] }
 0x7cb   : > { %4176 = vmatpush1.bf16.xpose.msra.mxu1 %v4091_v60  ;;  %v3995_v60 = vmul.f32 %v5371_v54, %v10275_v0  ;;  %v5379_v52 = vpop.eup %5378  ;;  %v4007_v54 = vmul.f32 %v5377_v53, %v10277_v31  ;;  %v10291_v31 = vld [vmem:[#allocation52_spill] sm:$0xff] }
 0x7cc   : > { %4177 = vmatprep.subr.bf16.mxu1 %v4096_v8  ;;  %v3856_v55 = vpop.xlane.xlu0 %3855  ;;  %v8786_v17 = vmul.f32 %v5379_v52, %v8388_v42  ;;  %v10280_v8 = vld [vmem:[#allocation108_spill] sm:$0xff] }
 0x7cd   : > { %v4095_v30 = vpack.c.bf16 %v3999_v48, %v3995_v60  ;;  %5384 = vrcp.f32 %v3856_v55  ;;  %v10282_v55 = vld [vmem:[#allocation45_spill] sm:$0xff]  ;;  %v4003_v60 = vmul.f32 %v5375_v49, %v10284_v38  ;;  %v10285_v42 = vld [vmem:[#allocation104_spill] sm:$0xff] }
 0x7ce   : > { %10278 = vst [vmem:[#allocation27_spill] sm:$0xff] %v8786_v17  ;;  %v4012_v53 = vmul.f32 %v5379_v52, %v10285_v42  ;;  %v10292_v17 = vld [vmem:[#allocation117_spill] sm:$0xff] }
 0x7cf   : > { %471 = vperm.xlu0 %4764, %v448_v57   ;;  %v5381_v24 = vpop.eup %5380  ;;  %v8793_v57 = vmul.f32 %v5379_v52, %v10280_v8 }
 0x7d0   : > { %v3861_v39 = vpop.xlane.xlu1 %3860  ;;  %v8789_v0 = vmul.f32 %v5381_v24, %v8404_v47  ;;  %v4016_v32 = vmul.f32 %v5381_v24, %v8396_v15  ;;  %v8796_v48 = vmul.f32 %v5381_v24, %v10282_v55  ;;  %v4099_v15 = vpack.c.bf16 %v4007_v54, %v4003_v60  ;;  %v10293_v54 = vld [vmem:[#allocation102_spill] sm:$0xff] }
 0x7d1   : > { %10281 = vst [vmem:[#allocation74_spill] sm:$0xff] %v8793_v57  ;;  %5386 = vrcp.f32 %v3861_v39  ;;  %v10289_v39 = vld [vmem:[#allocation118_spill] sm:$0xff]  ;;  %v4015_v47 = vmul.f32 %v5381_v24, %v10292_v17 }
 0x7d2   : > { %10279 = vst [vmem:[#allocation115_spill] sm:$0xff] %v8789_v0  ;;  %10283 = vst [vmem:[#allocation71_spill] sm:$0xff] %v8796_v48  ;;  %v4104_v8 = vpack.c.bf16 %v4016_v32, %v4012_v53  ;;  %v10298_v24 = vld [vmem:[#allocation46_spill] sm:$0xff]  ;;  %v10300_v32 = vld [vmem:[#allocation51_spill] sm:$0xff] }
 0x7d3   : > { %4178 = vmatpush1.bf16.xpose.msra.mxu1 %v4095_v30 }
 0x7d4   : > { %4179 = vmatprep.subr.bf16.mxu1 %v4100_v35  ;;  %v3866_v58 = vpop.xlane.xlu0 %3865  ;;  %v5383_v35 = vpop.eup %5382 }
 0x7d5   : > { %5388 = vrcp.f32 %v3866_v58  ;;  %v8805_v55 = vmul.f32 %v5383_v35, %v10286_v63  ;;  %v8811_v38 = vmul.f32 %v5383_v35, %v10289_v39  ;;  %v10295_v58 = vld [vmem:[#allocation106_spill] sm:$0xff] }
 0x7d6   : > { %v4020_v39 = vmul.f32 %v5383_v35, %v10295_v58  ;;  %v10302_v58 = vld [vmem:[#allocation110_spill] sm:$0xff] }
 0x7d7   : > { %v5385_v30 = vpop.eup %5384  ;;  %10287 = vst [vmem:[#allocation75_spill] sm:$0xff] %v8805_v55  ;;  %10290 = vst [vmem:[#allocation73_spill] sm:$0xff] %v8811_v38 }
 0x7d8   : > { %v8808_v49 = vmul.f32 %v5385_v30, %v10288_v23  ;;  %v8814_v42 = vmul.f32 %v5385_v30, %v10291_v31  ;;  %v4024_v60 = vmul.f32 %v5385_v30, %v10293_v54  ;;  %v10294_v23 = vld [vmem:[#allocation123_spill] sm:$0xff] }
 0x7d9   : > { %v4011_v53 = vmul.f32 %v5379_v52, %v10294_v23  ;;  %v10301_v52 = vld [vmem:[#allocation99_spill] sm:$0xff] }
 0x7da   : > { %v4108_v31 = vpack.c.bf16 %v4024_v60, %v4020_v39  ;;  %v4023_v23 = vmul.f32 %v5385_v30, %v10301_v52  ;;  %v10303_v39 = vld [vmem:[#allocation103_spill] sm:$0xff]  ;;  %v10306_v30 = vld [vmem:[#allocation109_spill] sm:$0xff] }
 0x7db   : > { %4180 = vmatpush1.bf16.xpose.msra.mxu1 %v4099_v15  ;;  %v5387_v57 = vpop.eup %5386  ;;  %v4103_v48 = vpack.c.bf16 %v4015_v47, %v4011_v53  ;;  %v10296_v15 = vld [vmem:[#allocation50_spill] sm:$0xff] }
 0x7dc   : > { %4181 = vmatprep.subr.bf16.mxu1 %v4104_v8  ;;  %v8825_v1 = vmul.f32 %v5387_v57, %v10296_v15  ;;  %v10299_v8 = vld [vmem:[#allocation53_spill] sm:$0xff]  ;;  %v4019_v15 = vmul.f32 %v5383_v35, %v10303_v39 }
 0x7dd   : > { %v8831_v54 = vmul.f32 %v5387_v57, %v10299_v8 }
 0x7de   : > { %10297 = vst [vmem:[#allocation72_spill] sm:$0xff] %v8825_v1  ;;  %v4107_v63 = vpack.c.bf16 %v4023_v23, %v4019_v15 }
 0x7df   : > { %v5389_v0 = vpop.eup %5388 }
 0x7e0   : > { %v8828_v17 = vmul.f32 %v5389_v0, %v10298_v24  ;;  %v8834_v55 = vmul.f32 %v5389_v0, %v10300_v32  ;;  %v4032_v47 = vmul.f32 %v5389_v0, %v10302_v58  ;;  %v10304_v24 = vld [vmem:[#allocation112_spill] sm:$0xff]  ;;  %v10305_v32 = vld [vmem:[#allocation107_spill] sm:$0xff] }
 0x7e1   : > { %v4028_v8 = vmul.f32 %v5387_v57, %v10304_v24  ;;  %v10309_v24 = vld [vmem:[#allocation37_spill] sm:$0xff] }
 0x7e3   : > { %4182 = vmatpush1.bf16.xpose.msra.mxu1 %v4103_v48  ;;  %v4112_v38 = vpack.c.bf16 %v4032_v47, %v4028_v8  ;;  %v4031_v48 = vmul.f32 %v5389_v0, %v10305_v32 }
 0x7e4   : > { %4183 = vmatprep.subr.bf16.mxu1 %v4108_v31  ;;  %v4027_v31 = vmul.f32 %v5387_v57, %v10306_v30  ;;  %v10308_v57 = vld [vmem:[#allocation58_spill] sm:$0xff] }
 0x7e6   : > { %v4111_v52 = vpack.c.bf16 %v4031_v48, %v4027_v31 }
 0x7eb   : > { %4184 = vmatpush1.bf16.xpose.msra.mxu1 %v4107_v63 }
 0x7ec   : > { %4185 = vmatprep.subr.bf16.mxu1 %v4112_v38  ;;  %v10307_v38 = vld [vmem:[#allocation55_spill] sm:$0xff] }
 0x7f3   : > { %4186 = vmatpush1.bf16.xpose.msra.mxu1 %v4111_v52 }
 0x823   : > { %v3871_v58 = vpop.xlane.xlu1 %3870 }
 0x824   : > { %5390 = vrcp.f32 %v3871_v58 }
 0x82d   : > { %v3876_v60 = vpop.xlane.xlu0 %3875 }
 0x82e   : > { %5392 = vrcp.f32 %v3876_v60  ;;  %v5391_v35 = vpop.eup %5390 }
 0x82f   : > { %v4036_v63 = vmul.f32 %v5391_v35, %v8488_v36  ;;  %v4035_v0 = vmul.f32 %v5391_v35, %v8486_v14  ;;  %v8851_v8 = vmul.f32 %v5391_v35, %v10309_v24  ;;  %v10312_v24 = vld [vmem:[#allocation32_spill] sm:$0xff] }
 0x830   : > { %v3881_v1 = vpop.xlane.xlu1 %3880 }
 0x831   : > { %5394 = vrcp.f32 %v3881_v1  ;;  %v10310_v1 = vld [vmem:[#allocation25_spill] sm:$0xff] }
 0x832   : > { %v8857_v32 = vmul.f32 %v5391_v35, %v10310_v1  ;;  %v10313_v1 = vld [vmem:[#allocation41_spill] sm:$0xff] }
 0x834   : > { %v3886_v53 = vpop.xlane.xlu0 %3885 }
 0x835   : > { %5396 = vrcp.f32 %v3886_v53 }
 0x837   : > { %v3891_v23 = vpop.xlane.xlu1 %3890 }
 0x838   : > { %v5393_v39 = vpop.eup %5392  ;;  %5398 = vrcp.f32 %v3891_v23 }
 0x839   : > { %v4040_v47 = vmul.f32 %v5393_v39, %v10307_v38  ;;  %v4039_v15 = vmul.f32 %v5393_v39, %v10308_v57  ;;  %v8854_v60 = vmul.f32 %v5393_v39, %v8526_v19  ;;  %v8860_v53 = vmul.f32 %v5393_v39, %v8520_v51 }
 0x83b   : > { %v5395_v48 = vpop.eup %5394  ;;  %v4116_v36 = vpack.c.bf16 %v4040_v47, %v4036_v63  ;;  %v4115_v14 = vpack.c.bf16 %v4039_v15, %v4035_v0  ;;  %v4118_v30 = vpack.c.bf16 %v8854_v60, %v8851_v8  ;;  %v4117_v52 = vpack.c.bf16 %v8860_v53, %v8857_v32 }
 0x83c   : > { %v3896_v31 = vpop.xlane.xlu0 %3895  ;;  %v4044_v58 = vmul.f32 %v5395_v48, %v8540_v45  ;;  %v8868_v51 = vmul.f32 %v5395_v48, %v8548_v46  ;;  %v8871_v35 = vmul.f32 %v5395_v48, %v8546_v7  ;;  %v4043_v38 = vmul.f32 %v5395_v48, %v8534_v40  ;;  %v10314_v40 = vld [vmem:[#allocation42_spill] sm:$0xff] }
 0x83d   : > { %4187 = vmatprep.subr.bf16.mxu1 %v4116_v36  ;;  %5400 = vrcp.f32 %v3896_v31 }
 0x83e   : > { %4188 = vmatpush1.bf16.xpose.msra.mxu1 %v4115_v14 }
 0x83f   : > { %v5397_v19 = vpop.eup %5396 }
 0x840   : > { %v4048_v39 = vmul.f32 %v5397_v19, %v8559_v5  ;;  %v4047_v23 = vmul.f32 %v5397_v19, %v8553_v16  ;;  %v8876_v63 = vmul.f32 %v5397_v19, %v8565_v59  ;;  %v8879_v0 = vmul.f32 %v5397_v19, %v8562_v4  ;;  %v10311_v59 = vld [vmem:[#allocation31_spill] sm:$0xff] }
 0x841   : > { %v3901_v47 = vpop.xlane.xlu1 %3900 }
 0x842   : > { %v4120_v45 = vpack.c.bf16 %v4048_v39, %v4044_v58  ;;  %v4122_v46 = vpack.c.bf16 %v8876_v63, %v8868_v51  ;;  %v4119_v57 = vpack.c.bf16 %v4047_v23, %v4043_v38  ;;  %5402 = vrcp.f32 %v3901_v47  ;;  %v5399_v16 = vpop.eup %5398 }
 0x843   : > { %v4052_v19 = vmul.f32 %v5399_v16, %v8585_v20  ;;  %v4051_v58 = vmul.f32 %v5399_v16, %v8580_v11  ;;  %v8893_v39 = vmul.f32 %v5399_v16, %v8600_v56  ;;  %v8896_v23 = vmul.f32 %v5399_v16, %v8597_v43 }
 0x844   : > { %4189 = vmatprep.subr.bf16.mxu1 %v4120_v45 }
 0x845   : > { %v467_v5 = vpop.permute.xlu1 %466 }
 0x846   : > { %v575_v15 = vadd.f32 %v10311_v59, %v467_v5  ;;  %v577_v4 = vadd.f32 %v10312_v24, %v467_v5  ;;  %v670_v36 = vadd.f32 %v10313_v1, %v467_v5  ;;  %v672_v48 = vadd.f32 %v10314_v40, %v467_v5  ;;  %v3906_v14 = vpop.xlane.xlu0 %3905  ;;  %4190 = vmatpush1.bf16.xpose.msra.mxu1 %v4119_v57  ;;  %v10315_v5 = vld [vmem:[#allocation114_spill] sm:$0xff]  ;;  %v10316_v59 = vld [vmem:[#allocation111_spill] sm:$0xff]  ;;  %v10317_v24 = vld [vmem:[#allocation116_spill] sm:$0xff] }
 0x847   : > { %v5401_v31 = vpop.eup %5400  ;;  %5404 = vrcp.f32 %v3906_v14  ;;  %v10318_v1 = vld [vmem:[#allocation113_spill] sm:$0xff] }
 0x848   : > { %v4056_v38 = vmul.f32 %v5401_v31, %v8621_v50  ;;  %v4055_v47 = vmul.f32 %v5401_v31, %v8618_v61  ;;  %v8901_v45 = vmul.f32 %v5401_v31, %v8632_v3  ;;  %v8904_v57 = vmul.f32 %v5401_v31, %v8627_v22 }
 0x849   : > { %v4131_v20 = vpack.c.bf16 %v575_v15, %v10315_v5  ;;  %v4132_v11 = vpack.c.bf16 %v577_v4, %v10316_v59  ;;  %v4133_v56 = vpack.c.bf16 %v670_v36, %v10317_v24  ;;  %v4134_v40 = vpack.c.bf16 %v672_v48, %v10318_v1  ;;  %v10319_v4 = vld [vmem:[#allocation33_spill] sm:$0xff]  ;;  %v10320_v59 = vld [vmem:[#allocation34_spill] sm:$0xff] }
 0x84a   : > { %v4124_v43 = vpack.c.bf16 %v4056_v38, %v4052_v19  ;;  %v4123_v16 = vpack.c.bf16 %v4055_v47, %v4051_v58  ;;  %v10321_v19 = vld [vmem:[#allocation43_spill] sm:$0xff]  ;;  %v10322_v38 = vld [vmem:[#allocation44_spill] sm:$0xff] }
 0x84b   : > { %v4147_v22 = vrot.slane %v4131_v20, 2  ;;  %v4150_v14 = vrot.slane %v4132_v11, 2  ;;  %v4153_v31 = vrot.slane %v4133_v56, 2  ;;  %v4156_v15 = vrot.slane %v4134_v40, 2 }
 0x84c   : > { %v5403_v3 = vpop.eup %5402  ;;  %4191 = vmatprep.subr.bf16.mxu1 %v4124_v43 }
 0x84d   : > { %v4060_v24 = vmul.f32 %v5403_v3, %v8647_v28  ;;  %v4059_v1 = vmul.f32 %v5403_v3, %v8640_v18  ;;  %v4062_v43 = vmul.f32 %v5403_v3, %v8660_v44  ;;  %v4061_v20 = vmul.f32 %v5403_v3, %v8656_v13 }
 0x84e   : > { %v472_v5 = vpop.permute.xlu0 %471  ;;  %4192 = vmatpush1.bf16.xpose.msra.mxu1 %v4123_v16 }
 0x84f   : > { %v581_v36 = vadd.f32 %v10319_v4, %v472_v5  ;;  %v583_v48 = vadd.f32 %v10320_v59, %v472_v5  ;;  %v676_v58 = vadd.f32 %v10321_v19, %v472_v5  ;;  %v678_v47 = vadd.f32 %v10322_v38, %v472_v5 }
 0x851   : > { %v5405_v11 = vpop.eup %5404  ;;  %v4135_v56 = vpack.c.bf16 %v581_v36, %v581_v36  ;;  %v4136_v40 = vpack.c.bf16 %v583_v48, %v583_v48  ;;  %v4137_v16 = vpack.c.bf16 %v676_v58, %v676_v58  ;;  %v4138_v61 = vpack.c.bf16 %v678_v47, %v678_v47  ;;  %v10327_v47 = vld [vmem:[#allocation38_spill] sm:$0xff] }
 0x852   : > { %v4064_v4 = vmul.f32 %v5405_v11, %v8669_v21  ;;  %v4063_v59 = vmul.f32 %v5405_v11, %v8667_v12  ;;  %v4066_v19 = vmul.f32 %v5405_v11, %v8676_v2  ;;  %v4065_v5 = vmul.f32 %v5405_v11, %v8672_v29  ;;  %v10323_v29 = vld [vmem:[#allocation47_spill] sm:$0xff]  ;;  %v10324_v2 = vld [vmem:[#allocation26_spill] sm:$0xff]  ;;  %v10338_v11 = vld [vmem:[#allocation40_spill] sm:$0xff] }
 0x853   : > { %v4148_v28 = vrot.slane %v4135_v56, 2  ;;  %v4151_v38 = vrot.slane %v4136_v40, 2  ;;  %v4154_v18 = vrot.slane %v4137_v16, 2  ;;  %v4157_v50 = vrot.slane %v4138_v61, 2  ;;  %v10326_v61 = vld [vmem:[#allocation54_spill] sm:$0xff]  ;;  %v10345_v56 = vld [vmem:[#allocation56_spill] sm:$0xff] }
 0x854   : > { %v4128_v44 = vpack.c.bf16 %v4064_v4, %v4060_v24  ;;  %v4127_v7 = vpack.c.bf16 %v4063_v59, %v4059_v1  ;;  %v4130_v13 = vpack.c.bf16 %v4066_v19, %v4062_v43  ;;  %v4129_v3 = vpack.c.bf16 %v4065_v5, %v4061_v20  ;;  %v10335_v1 = vld [vmem:[#allocation59_spill] sm:$0xff]  ;;  %v10337_v20 = vld [vmem:[#allocation60_spill] sm:$0xff]  ;;  %v10347_v40 = vld [vmem:[#allocation66_spill] sm:$0xff] }
 0x855   : > { %v4152_v36 = vsel %vm2401_vm3, %v4150_v14, %v4151_v38  ;;  %v4149_v48 = vsel %vm2401_vm3, %v4147_v22, %v4148_v28  ;;  %v4158_v21 = vsel %vm2401_vm3, %v4156_v15, %v4157_v50  ;;  %v4155_v12 = vsel %vm2401_vm3, %v4153_v31, %v4154_v18  ;;  %v10332_v14 = vld [vmem:[#allocation30_spill] sm:$0xff]  ;;  %v10334_v15 = vld [vmem:[#allocation57_spill] sm:$0xff]  ;;  %v10348_v16 = vld [vmem:[#allocation28_spill] sm:$0xff] }
 0x856   : > { %4193 = vmatprep.subr.bf16.mxu1 %v4128_v44  ;;  %4195 = vmatprep.mubr.bf16.mxu1 %v4152_v36  ;;  %v10325_v58 = vpack.c.bf16 %v10323_v29, %v10324_v2  ;;  %v10328_v24 = vpack.c.bf16 %v10326_v61, %v10327_v47  ;;  %v10329_v22 = vpack.c.bf16 %v8578_v62, %v8574_v10  ;;  %v10350_v59 = vld [vmem:[#allocation29_spill] sm:$0xff]  ;;  %v10351_v19 = vld [vmem:[#allocation63_spill] sm:$0xff]  ;;  %v10359_v36 = vld [vmem:[#allocation24_spill] sm:$0xff] }
 0x857   : > { %4194 = vmatpush1.bf16.xpose.msra.mxu1 %v4127_v7  ;;  %v10330_v50 = vpack.c.bf16 %v8595_v6, %v8591_v33  ;;  %v10331_v7 = vpack.c.bf16 %v8610_v25, %v8607_v27  ;;  %v10333_v31 = vpack.c.bf16 %v8616_v9, %v10332_v14  ;;  %v10336_v43 = vpack.c.bf16 %v10334_v15, %v10335_v1  ;;  %v10341_v33 = vld [vmem:[#allocation125_spill] sm:$0xff]  ;;  %v10342_v6 = vld [vmem:[#allocation23_spill] sm:$0xff]  ;;  %v10344_v25 = vld [vmem:[#allocation62_spill] sm:$0xff] }
 0x858   : > { %4206 = vmatprep.subr.bf16.mxu1 %v10325_v58  ;;  %v10339_v10 = vpack.c.bf16 %v10337_v20, %v10338_v11  ;;  %v10340_v62 = vpack.c.bf16 %v8684_v37, %v8692_v34  ;;  %v10343_v27 = vpack.c.bf16 %v10341_v33, %v10342_v6  ;;  %v10346_v9 = vpack.c.bf16 %v10344_v25, %v10345_v56  ;;  %v10353_v28 = vld [vmem:[#allocation65_spill] sm:$0xff]  ;;  %v10354_v38 = vld [vmem:[#allocation67_spill] sm:$0xff]  ;;  %v10356_v34 = vld [vmem:[#allocation68_spill] sm:$0xff] }
 0x859   : > { %v10349_v4 = vpack.c.bf16 %v10347_v40, %v10348_v16  ;;  %v10352_v5 = vpack.c.bf16 %v10350_v59, %v10351_v19  ;;  %v10355_v37 = vpack.c.bf16 %v10353_v28, %v10354_v38  ;;  %v10357_v18 = vld [vmem:[#allocation39_spill] sm:$0xff]  ;;  %v10362_v29 = vpack.c.bf16 %v8766_v26, %v8763_v41  ;;  %v10363_v2 = vld [vmem:[#allocation70_spill] sm:$0xff]  ;;  %v10364_v58 = vld [vmem:[#allocation64_spill] sm:$0xff] }
 0x85a   : > { %v10358_v44 = vpack.c.bf16 %v10356_v34, %v10357_v18  ;;  %v10365_v61 = vpack.c.bf16 %v10363_v2, %v10364_v58  ;;  %v10366_v47 = vld [vmem:[#allocation115_spill] sm:$0xff]  ;;  %v10375_v26 = vld [vmem:[#allocation73_spill] sm:$0xff]  ;;  %v10378_v1 = vld [vmem:[#allocation72_spill] sm:$0xff]  ;;  %v10380_v20 = vpack.c.bf16 %v8834_v55, %v8831_v54  ;;  %v10382_v55 = vpack.c.bf16 %v8901_v45, %v8893_v39 }
 0x85b   : > { %v10376_v41 = vpack.c.bf16 %v8814_v42, %v10375_v26  ;;  %v10384_v42 = vpack.c.bf16 %v8904_v57, %v8896_v23 }
 0x85e   : > { %4196 = vmatmul.mubr.bf16.vlgmr.msra.gmra.mrb[80].mxu1 %v4149_v48  ;;  %v10360_v48 = vld [vmem:[#allocation61_spill] sm:$0xff] }
 0x85f   : > { %4207 = vmatpush1.bf16.xpose.msra.mxu1 %v10328_v24  ;;  %4238 = vmatprep.mubr.bf16.mxu1 %v4158_v21  ;;  %v10361_v21 = vpack.c.bf16 %v10359_v36, %v10360_v48  ;;  %v10367_v24 = vld [vmem:[#allocation27_spill] sm:$0xff] }
 0x860   : > { %4208 = vmatprep.subr.bf16.mxu1 %v10329_v22  ;;  %v10368_v22 = vpack.c.bf16 %v10366_v47, %v10367_v24 }
 0x867   : > { %4209 = vmatpush1.bf16.xpose.msra.mxu1 %v10330_v50  ;;  %v10369_v50 = vld [vmem:[#allocation71_spill] sm:$0xff] }
 0x868   : > { %4210 = vmatprep.subr.bf16.mxu1 %v10331_v7  ;;  %v10370_v7 = vld [vmem:[#allocation74_spill] sm:$0xff] }
 0x869   : > { %v10371_v14 = vpack.c.bf16 %v10369_v50, %v10370_v7 }
 0x86f   : > { %4211 = vmatpush1.bf16.xpose.msra.mxu1 %v10333_v31  ;;  %v10372_v31 = vld [vmem:[#allocation75_spill] sm:$0xff] }
 0x870   : > { %4212 = vmatprep.subr.bf16.mxu1 %v10336_v43  ;;  %v10373_v15 = vpack.c.bf16 %v8808_v49, %v10372_v31  ;;  %v10379_v43 = vpack.c.bf16 %v8828_v17, %v10378_v1  ;;  %v10381_v49 = vpack.c.bf16 %v8879_v0, %v8871_v35 }
 0x877   : > { %4213 = vmatpush1.bf16.xpose.msra.mxu1 %v10339_v10 }
 0x878   : > { %4214 = vmatprep.subr.bf16.mxu1 %v10340_v62 }
 0x87f   : > { %4215 = vmatpush1.bf16.xpose.msra.mxu1 %v10343_v27 }
 0x880   : > { %4216 = vmatprep.subr.bf16.mxu1 %v10346_v9 }
 0x887   : > { %4217 = vmatpush1.bf16.xpose.msra.mxu1 %v10349_v4 }
 0x888   : > { %4218 = vmatprep.subr.bf16.mxu1 %v10352_v5 }
 0x88f   : > { %4219 = vmatpush1.bf16.xpose.msra.mxu1 %v10355_v37 }
 0x890   : > { %4220 = vmatprep.subr.bf16.mxu1 %v10358_v44 }
 0x897   : > { %4221 = vmatpush1.bf16.xpose.msra.mxu1 %v10361_v21 }
 0x898   : > { %4222 = vmatprep.subr.bf16.mxu1 %v10362_v29 }
 0x89f   : > { %4223 = vmatpush1.bf16.xpose.msra.mxu1 %v10365_v61 }
 0x8a0   : > { %4224 = vmatprep.subr.bf16.mxu1 %v10368_v22 }
 0x8a7   : > { %4225 = vmatpush1.bf16.xpose.msra.mxu1 %v10371_v14 }
 0x8a8   : > { %4226 = vmatprep.subr.bf16.mxu1 %v10373_v15 }
 0x8af   : > { %4227 = vmatpush1.bf16.xpose.msra.mxu1 %v10376_v41 }
 0x8b0   : > { %4228 = vmatprep.subr.bf16.mxu1 %v10379_v43 }
 0x8b7   : > { %4229 = vmatpush1.bf16.xpose.msra.mxu1 %v10380_v20 }
 0x8b8   : > { %4230 = vmatprep.subr.bf16.mxu1 %v4118_v30 }
 0x8bf   : > { %4231 = vmatpush1.bf16.xpose.msra.mxu1 %v4117_v52 }
 0x8c0   : > { %4232 = vmatprep.subr.bf16.mxu1 %v4122_v46 }
 0x8c7   : > { %4233 = vmatpush1.bf16.xpose.msra.mxu1 %v10381_v49 }
 0x8c8   : > { %4234 = vmatprep.subr.bf16.mxu1 %v10382_v55 }
 0x8cf   : > { %4235 = vmatpush1.bf16.xpose.msra.mxu1 %v10384_v42 }
 0x8d0   : > { %4236 = vmatprep.subr.bf16.mxu1 %v4130_v13 }
 0x8d7   : > { %4237 = vmatpush1.bf16.xpose.msra.mxu1 %v4129_v3 }
 0x8de   : > { %4239 = vmatmul.mubr.bf16.vlgmr.msra.gmra.mrb[80].mxu1 %v4155_v12 }
 0x8df   : > { %5487 = shalt.err (!%p5484_p12)
}
 0x8e0   : > { %s5488_s7 = scalar_lea.hbm %s9033_s11, 512  ;;  %s5492_s30 = scalar_lea.hbm %s10385_s24, 2048 }
 0x8e1   : > { %p5489_p9 = scmp.ne.s32.totalorder %s9033_s11, %s5488_s7  ;;  %p5493_p3 = scmp.lt.u32.totalorder %s9033_s11, %s10385_s24 }
 0x8e2   : > { %p5494_p11 = scmp.lt.u32.totalorder %s5492_s30, %s5488_s7  ;;  %p5496_p2 = scmp.lt.u32.totalorder %s5488_s7, %s9033_s11 }
 0x8e3   : > { %p5490_p4 = pnand %p5489_p9, %p10386_p1 }
 0x8e4   : > { %p5495_p6 = por %p5494_p11, %p5493_p3 }
 0x8e5   : > { %p5491_p0 = pneg %p5490_p4 }
 0x8e6   : > { %p5497_p10 = por %p5496_p2, %p5495_p6 }
 0x8e8   : > { %p5498_p7 = pnand %p5497_p10, %p5491_p0 }
 0x8ea   : > { %5501 = shalt.err (!%p5498_p7)
}
 0x8eb   : > { %s9534_s22 = smov 256   ;;  %s5644_s9 = smov 512   ;;  %v5410_v30 = vld [vmem:[%s5943_s12] sm:$0xff]  ;;  %v5411_v63 = vld [vmem:[%s5943_s12 + $0x8] sm:$0xff]  ;;  %v5412_v39 = vld [vmem:[%s5943_s12 + $0x10] sm:$0xff] }
 0x8ec   : > { %s5645_s5 = smov 16   ;;  %s761_s7 = sld [smem:[#allocation2]]  ;;  %v5413_v45 = vld [vmem:[%s5943_s12 + $0x18] sm:$0xff] }
 0x8ed   : > { %4648 = dma.vmem_to_hbm [thread:$0]  (%p10386_p1), %s9021_s3, 512, %s9033_s11, %s4268_s25, %s9534_s22, %s5644_s9, %s5645_s5  }
 0x8ee   : > { %s416_s26 = scalar_lea.vmem [#allocation9], %s5939_s2  ;;  %s10387_s11 = sld [smem:[#allocation130_spill]] }
 0x8ef   : > { %s4283_s16 = sshll.u32 %s416_s26, 4  ;;  %s4263_s30 = scalar_lea.sflag [#allocation6], %s5936_s28  ;;  %s9065_s16 = int_to_ptr.vmem [resolvable:$true] %s4283_s16 }
 0x8f0   : > { %s5502_s0 = scalar_lea.vmem %s9065_s16, 512  ;;  %s5646_s23 = smov [#allocation9]  }
 0x8f1   : > { %p5503_p13 = scmp.ne.s32.totalorder %s9065_s16, %s5502_s0 }
 0x8f2   : > { %v4249_v17 = vstv %s761_s7  ;;  %s5506_s7 = sshll.u32 %s5646_s23, 4  ;;  %s5507_s7 = int_to_ptr.vmem [resolvable:$false] %s5506_s7 }
 0x8f3   : > { %p5504_p5 = pnand %p5503_p13, %p10386_p1  ;;  %s5508_s22 = scalar_lea.vmem %s5507_s7, 1024 }
 0x8f4   : > { %s9074_s25 = scalar_lea.hbm %s10387_s11, %s4616_s29  ;;  %p5509_p12 = scmp.lt.s32.totalorder %s9065_s16, %s5507_s7 }
 0x8f5   : > { %p5505_p8 = pneg %p5504_p5  ;;  %p5510_p9 = scmp.lt.s32.totalorder %s5508_s22, %s5502_s0 }
 0x8f7   : > { %p5511_p4 = por %p5510_p9, %p5509_p12 }
 0x8f9   : > { %p5512_p0 = pnand %p5511_p4, %p5505_p8 }
 0x9b1   : > { %v4240_v54 = vpop.f32.mrb[80].mxu1 }
 0x9b2   : > { %v4250_v8 = vmul.f32 %v4249_v17, %v4240_v54  ;;  %v4242_v60 = vpop.f32.mrb[81].mxu1 }
 0x9b3   : > { %v4251_v32 = vmul.f32 %v4249_v17, %v4242_v60  ;;  %v4244_v53 = vpop.f32.mrb[82].mxu1 }
 0x9b4   : > { %v4254_v52 = vadd.f32 %v5410_v30, %v4250_v8  ;;  %v4252_v51 = vmul.f32 %v4249_v17, %v4244_v53  ;;  %v4246_v35 = vpop.f32.mrb[83].mxu1 }
 0x9b5   : > { %v4255_v0 = vadd.f32 %v5411_v63, %v4251_v32  ;;  %v4253_v46 = vmul.f32 %v4249_v17, %v4246_v35 }
 0x9b6   : > { %4258 = vst [vmem:[%s416_s26] sm:$0xff] %v4254_v52  ;;  %v4256_v23 = vadd.f32 %v5412_v39, %v4252_v51 }
 0x9b7   : > { %4259 = vst [vmem:[%s416_s26 + $0x8] sm:$0xff] %v4255_v0  ;;  %v4257_v57 = vadd.f32 %v5413_v45, %v4253_v46 }
 0x9b8   : > { %4260 = vst [vmem:[%s416_s26 + $0x10] sm:$0xff] %v4256_v23 }
 0x9b9   : > { %4261 = vst [vmem:[%s416_s26 + $0x18] sm:$0xff] %v4257_v57 }
 0x9ba   : > { %5515 = shalt.err (!%p5512_p0)
}
 0x9bb   : > { %s5516_s12 = scalar_lea.hbm %s9074_s25, 512  ;;  %s5520_s26 = scalar_lea.hbm %s10387_s11, 2048 }
 0x9bc   : > { %p5517_p3 = scmp.ne.s32.totalorder %s9074_s25, %s5516_s12  ;;  %p5521_p2 = scmp.lt.u32.totalorder %s9074_s25, %s10387_s11 }
 0x9bd   : > { %p5522_p10 = scmp.lt.u32.totalorder %s5520_s26, %s5516_s12  ;;  %p5524_p13 = scmp.lt.u32.totalorder %s5516_s12, %s9074_s25 }
 0x9be   : > { %p5518_p11 = pnand %p5517_p3, %p10386_p1 }
 0x9bf   : > { %p5523_p7 = por %p5522_p10, %p5521_p2 }
 0x9c0   : > { %p5519_p6 = pneg %p5518_p11 }
 0x9c1   : > { %p5525_p5 = por %p5524_p13, %p5523_p7 }
 0x9c3   : > { %p5526_p8 = pnand %p5525_p5, %p5519_p6 }
 0x9c5   : > { %5529 = shalt.err (!%p5526_p8)
}
 0x9c6   : > { %s10388_s22 = smov 256  }
 0x9c7   : > { %4647 = dma.vmem_to_hbm [thread:$0]  (%p10386_p1), %s9065_s16, 512, %s9074_s25, %s4263_s30, %s10388_s22, %s5644_s9, %s5645_s5  }
 0x9c8 PF: > { %s10389_s0 = sld [smem:[#allocation16_spill]]  ;;  %s10390_s23 = sld [smem:[#allocation22_spill]] }
 0x9c9   : > { %p4666_p12 = scmp.ge.s32.totalorder %s5632_s21, 2 }
 0x9ce   : > { %s4316_s7 = sand.u32 1, %s10389_s0   ;;  %p10391_p9 = scmp.ne.s32.totalorder %s10390_s23, 0 }
 0x9cf   : > { %s4317_s12 = scalar_lea.sflag [#allocation6], %s4316_s7 }
 0x9d0   : > { %p4659_p4 = pnand %p4666_p12, %p10391_p9 }
 0x9d2   : > { %5583 = dma.done.wait (!%p4659_p4), %s4317_s12, 512  }
 0x9d3   : > { %5585 = vsyncadd (!%p4659_p4), %s4317_s12, 4294966784  ;;  %s4326_s18 = scalar_lea.sflag [#allocation11], %s4316_s7 }
 0x9d4   : > { %5587 = dma.done.wait (!%p4659_p4), %s4326_s18, 512  }
 0x9d5   : > { %5589 = vsyncadd (!%p4659_p4), %s4326_s18, 4294966784  ;;  %s34_s21 = sadd.s32 1, %s5632_s21   ;;  %s10392_s28 = smov %s5878_s13 }
 0x9d6   : > { %p31_p0 = scmp.ge.s32.totalorder %s34_s21, 6   ;;  %s10393_s9 = sld [smem:[#allocation19_spill]] }
 0x9d7   : > { %s10394_s5 = sld [smem:[#allocation20_spill]]  ;;  %s10395_s13 = smov %s5596_s14 }
 0x9d8   : > { %s10396_s14 = smov %s5600_s15  ;;  %s10397_s15 = smov %s10392_s28 }
 0x9d9   : > { %s10398_s16 = smov %s5608_s6  ;;  %s10399_s6 = smov %s5612_s17 }
 0x9da   : > { %s10400_s17 = smov %s5875_s27  ;;  %s10401_s7 = smov %s5624_s19 }
 0x9db   : > { %s10402_s18 = smov %s5628_s20  ;;  %33 = sbr.rel (!%p31_p0) target bundleno = 22 (0x16), region = 127 }
 0x9dc   : > { %s10403_s19 = smov %s10393_s9 }
 0x9dd   : > { %s10404_s20 = smov %s10394_s5 }
 0x9e2   :  { %4331 = vsyncpa [#allocation5], 1 }
 0x9e3   :  { %4333 = vsyncpa [#allocation5 + $0x1], 1 }
 0x9e4   :  { %4334 = vsyncpa [#allocation8], 1 }
 0x9e5   :  { %4336 = vsyncpa [#allocation8 + $0x1], 1 }
 0x9e6   :  { %4337 = vsyncpa [#allocation6], 1 }
 0x9e7   :  { %4339 = vsyncpa [#allocation6 + $0x1], 1 }
 0x9e8   :  { %4340 = vsyncpa [#allocation11], 1 }
 0x9e9   :  { %4342 = vsyncpa [#allocation11 + $0x1], 1 }

</bundles_post_ra>
